<compile_context>
chip_gen: v6e
topology: v6e:2x2x1
jax: 0.10.0
libtpu: 0.0.40
codegen_flags: <defaults>
</compile_context>

<pallas_src>
import functools

import jax
import jax.numpy as jnp
import numpy as np
from jax.experimental import pallas as pl
from jax.experimental.pallas import tpu as pltpu

EPS = 1e-5


# ------------------------------ small helpers --------------------------------

def _vmem_limit_bytes():
    """Generation-aware scoped-VMEM limit: ~half of physical, safe fallback."""
    try:
        cap = getattr(pltpu.get_tpu_info(), "vmem_capacity_bytes", None)
    except Exception:
        cap = None
    if not cap:
        return 32 * 1024 * 1024          # conservative (v7x-safe) fallback
    return min(cap // 2, 96 * 1024 * 1024)


def _pick_tile(m, cap, quantum):
    """Largest divisor of m that is a multiple of `quantum` and <= cap."""
    best = None
    t = quantum
    while t <= min(cap, m):
        if m % t == 0:
            best = t
        t += quantum
    # TODO(synk): add a masked-tail path for sizes with no aligned divisor.
    return best if best is not None else m


def _pick_row_block(h, wpad, c):
    """Largest divisor of H giving >= 2 row blocks and a small padded block."""
    best = None
    for th in range(1, h + 1):
        if h % th == 0 and h // th >= 2 and (th + 2) * wpad * c * 4 <= (2 << 20):
            best = th
    return best if best is not None else h


def _finalize_bn(partial_stats, count, gamma, beta):
    """Reduce per-tile (sum, sumsq) and fold BN into one f32 scale/shift."""
    s = jnp.sum(partial_stats, axis=0)                        # (2, C)
    mean = s[0] / count
    var = jnp.maximum(s[1] / count - mean * mean, 0.0)        # biased variance
    scale = gamma.reshape(1, -1) * jax.lax.rsqrt(var + EPS)
    shift = beta.reshape(1, -1) - mean.reshape(1, -1) * scale
    return scale.astype(jnp.float32), shift.astype(jnp.float32)


def _partial_stats(y2d):
    """(S, C) f32 -> (2, C) partial (sum, sum of squares) over rows."""
    return jnp.concatenate([jnp.sum(y2d, axis=0, keepdims=True),
                            jnp.sum(y2d * y2d, axis=0, keepdims=True)], axis=0)


# ------------------------------ kernel bodies --------------------------------

def _stage1_kernel(x_ref, w1_ref, h1_ref, st_ref, *, mm_dtype):
    """conv1 (1x1) on an NCHW spatial chunk (transpose folded in) + bn1 stats.

    x_ref: (1, Cin, thw) f32   w1_ref: (Cin, width) mm_dtype
    h1_ref: (1, thw, width) act_dtype   st_ref: (1, 1, 2, width) f32
    """
    xt = x_ref[0].T                                    # (thw, Cin) f32, XLU
    y = jnp.dot(xt.astype(mm_dtype), w1_ref[...],
                preferred_element_type=jnp.float32)    # (thw, width) f32
    h1_ref[...] = y.reshape(h1_ref.shape).astype(h1_ref.dtype)
    st_ref[...] = _partial_stats(y).reshape(st_ref.shape)


def _stage2_kernel(mid_ref, top_ref, bot_ref, sc_ref, sh_ref, w2_ref,
                   o_ref, st_ref, *, mm_dtype, wpad):
    """bn1-apply + relu + 3x3 conv (stride 1, pad 1) on one H-row block + stats.

    mid_ref: (1, th, W, C) act  -- rows [i*th, i*th+th) of sample n
    top_ref: (1, 1, W, C)  act  -- row i*th-1   (zeroed at the image top)
    bot_ref: (1, 1, W, C)  act  -- row i*th+th  (zeroed at the image bottom)
    w2_ref : (3, 3, C, C)  mm_dtype
    o_ref  : (1, th, W, C) act      st_ref: (1, 1, 2, C) f32
    """
    _, th, W, C = mid_ref.shape
    i = pl.program_id(1)
    nh = pl.num_programs(1)
    sc = sc_ref[...].reshape(1, 1, C)
    sh = sh_ref[...].reshape(1, 1, C)

    def bn_relu(ref):
        return jnp.maximum(ref[0].astype(jnp.float32) * sc + sh, 0.0)

    mid = bn_relu(mid_ref)                                    # (th, W, C) f32
    top = jnp.where(i == 0, 0.0, bn_relu(top_ref))            # (1, W, C)
    bot = jnp.where(i == nh - 1, 0.0, bn_relu(bot_ref))       # (1, W, C)

    # Padded block: data in columns [0, W), zeros in [W, wpad) -- aligned
    # full-width composition only.  The "x = -1" column of the conv padding is
    # never materialised: the roll below wraps onto the zeroed right pad.
    rows = jnp.concatenate([top, mid, bot], axis=0)           # (th+2, W, C)
    zpad = jnp.zeros((th + 2, wpad - W, C), jnp.float32)
    flat = jnp.concatenate([rows, zpad], axis=1).reshape((th + 2) * wpad, C)

    ntot = (th + 2) * wpad
    shifted = (pltpu.roll(flat, shift=1, axis=0),         # dx = 0  (x - 1)
               flat,                                      # dx = 1  (x)
               pltpu.roll(flat, shift=ntot - 1, axis=0))  # dx = 2  (x + 1)

    # 9 K=C matmuls on aligned slabs of the rolled blocks, f32 accumulation.
    # TODO(synk): switch to a single K=9C matmul for larger `width` if stage 2
    # ever becomes MXU-bound.
    w2 = w2_ref[...]                                          # (3, 3, C, C)
    acc = jnp.zeros((th * wpad, C), jnp.float32)
    for dy in range(3):
        for dx in range(3):
            lhs = shifted[dx][dy * wpad:dy * wpad + th * wpad]
            acc = acc + jnp.dot(lhs.astype(mm_dtype), w2[dy, dx],
                                preferred_element_type=jnp.float32)

    y = acc.reshape(th, wpad, C)[:, 0:W, :]        # drop garbage pad columns
    o_ref[...] = y.reshape(o_ref.shape).astype(o_ref.dtype)
    st_ref[...] = _partial_stats(y.reshape(th * W, C)).reshape(st_ref.shape)


def _stage3_kernel(h2_ref, sc_ref, sh_ref, w3_ref, h3_ref, st_ref, *, mm_dtype):
    """bn2-apply + relu + conv3 (1x1) + partial bn3 stats (row-tiled over M)."""
    h = jnp.maximum(h2_ref[...].astype(jnp.float32) * sc_ref[...] + sh_ref[...],
                    0.0)                                      # (tm, width) f32
    y = jnp.dot(h.astype(mm_dtype), w3_ref[...],
                preferred_element_type=jnp.float32)           # (tm, Cout) f32
    h3_ref[...] = y.astype(h3_ref.dtype)
    st_ref[...] = _partial_stats(y).reshape(st_ref.shape)


def _stage4_kernel(h3_ref, sc_ref, sh_ref, x_ref, o_ref):
    """bn3-apply + identity residual + relu; writes NCHW directly (lane = HW)."""
    h = h3_ref[0].astype(jnp.float32) * sc_ref[...] + sh_ref[...]  # (thw, Cout)
    o_ref[...] = jnp.maximum(h.T + x_ref[0], 0.0).reshape(o_ref.shape)


# ------------------------------ host wrapper ---------------------------------

@functools.partial(jax.jit, static_argnames=("mm_dtype", "act_dtype"))
def bottleneck_forward(x_nchw, params,
                       mm_dtype=jnp.bfloat16, act_dtype=jnp.bfloat16):
    """Bottleneck forward (stride=1, downsample=None).  x_nchw: (N, Cin, H, W)."""
    w1, w2, w3, g1, b1, g2, b2, g3, b3 = params

    x = x_nchw.astype(jnp.float32)
    N, Cin, H, W = x.shape
    width = w1.shape[1]
    Cout = w3.shape[1]
    assert Cin == Cout, "identity residual requires inplanes == planes*4"

    HW = H * W
    M = N * HW
    x3 = x.reshape(N, Cin, HW)                     # NCHW, spatial flattened

    thw = _pick_tile(HW, cap=2048, quantum=128)    # spatial tile, stages 1 & 4
    nhw = HW // thw
    wpad = ((W + 2 + 7) // 8) * 8                  # padded conv width (aligned)
    th = _pick_row_block(H, wpad, width)           # rows per stage-2 block
    nh = H // th
    tm = _pick_tile(M, cap=4096, quantum=8)        # row tile for stage 3
    gm = M // tm

    w1c = w1.astype(mm_dtype)
    w2c = w2.astype(mm_dtype)
    w3c = w3.astype(mm_dtype)

    vmem = _vmem_limit_bytes()

    def cparams(sem):
        return pltpu.CompilerParams(dimension_semantics=sem,
                                    vmem_limit_bytes=vmem)

    # ---- stage 1: conv1 (1x1) on NCHW chunks + partial bn1 stats ------------
    h1, st1 = pl.pallas_call(
        functools.partial(_stage1_kernel, mm_dtype=mm_dtype),
        grid=(N, nhw),
        in_specs=[pl.BlockSpec((1, Cin, thw), lambda n, j: (n, 0, j)),
                  pl.BlockSpec((Cin, width), lambda n, j: (0, 0))],
        out_specs=[pl.BlockSpec((1, thw, width), lambda n, j: (n, j, 0)),
                   pl.BlockSpec((1, 1, 2, width), lambda n, j: (n, j, 0, 0))],
        out_shape=[jax.ShapeDtypeStruct((N, HW, width), act_dtype),
                   jax.ShapeDtypeStruct((N, nhw, 2, width), jnp.float32)],
        compiler_params=cparams(("parallel", "parallel")),
    )(x3, w1c)
    sc1, sh1 = _finalize_bn(st1.reshape(-1, 2, width), M, g1, b1)

    # ---- stage 2: bn1+relu, 3x3 conv over (N, H-row blocks) + bn2 stats -----
    h1n = h1.reshape(N, H, W, width)
    h2, st2 = pl.pallas_call(
        functools.partial(_stage2_kernel, mm_dtype=mm_dtype, wpad=wpad),
        grid=(N, nh),
        in_specs=[
            pl.BlockSpec((1, th, W, width), lambda n, i: (n, i, 0, 0)),
            pl.BlockSpec((1, 1, W, width),
                         lambda n, i: (n, jnp.maximum(i * th - 1, 0), 0, 0)),
            pl.BlockSpec((1, 1, W, width),
                         lambda n, i: (n, jnp.minimum(i * th + th, H - 1), 0, 0)),
            pl.BlockSpec((1, width), lambda n, i: (0, 0)),
            pl.BlockSpec((1, width), lambda n, i: (0, 0)),
            pl.BlockSpec((3, 3, width, width), lambda n, i: (0, 0, 0, 0)),
        ],
        out_specs=[pl.BlockSpec((1, th, W, width), lambda n, i: (n, i, 0, 0)),
                   pl.BlockSpec((1, 1, 2, width), lambda n, i: (n, i, 0, 0))],
        out_shape=[jax.ShapeDtypeStruct((N, H, W, width), act_dtype),
                   jax.ShapeDtypeStruct((N, nh, 2, width), jnp.float32)],
        compiler_params=cparams(("parallel", "parallel")),
    )(h1n, h1n, h1n, sc1, sh1, w2c)
    sc2, sh2 = _finalize_bn(st2.reshape(-1, 2, width), M, g2, b2)

    # ---- stage 3: bn2+relu, conv3 (1x1) + partial bn3 stats -----------------
    h2m = h2.reshape(M, width)
    h3, st3 = pl.pallas_call(
        functools.partial(_stage3_kernel, mm_dtype=mm_dtype),
        grid=(gm,),
        in_specs=[pl.BlockSpec((tm, width), lambda i: (i, 0)),
                  pl.BlockSpec((1, width), lambda i: (0, 0)),
                  pl.BlockSpec((1, width), lambda i: (0, 0)),
                  pl.BlockSpec((width, Cout), lambda i: (0, 0))],
        out_specs=[pl.BlockSpec((tm, Cout), lambda i: (i, 0)),
                   pl.BlockSpec((1, 2, Cout), lambda i: (i, 0, 0))],
        out_shape=[jax.ShapeDtypeStruct((M, Cout), act_dtype),
                   jax.ShapeDtypeStruct((gm, 2, Cout), jnp.float32)],
        compiler_params=cparams(("parallel",)),
    )(h2m, sc2, sh2, w3c)
    sc3, sh3 = _finalize_bn(st3, M, g3, b3)

    # ---- stage 4: bn3 + identity residual + relu, NCHW output (lane = HW) ---
    h3n = h3.reshape(N, HW, Cout)
    out = pl.pallas_call(
        _stage4_kernel,
        grid=(N, nhw),
        in_specs=[pl.BlockSpec((1, thw, Cout), lambda n, j: (n, j, 0)),
                  pl.BlockSpec((1, Cout), lambda n, j: (0, 0)),
                  pl.BlockSpec((1, Cout), lambda n, j: (0, 0)),
                  pl.BlockSpec((1, Cout, thw), lambda n, j: (n, 0, j))],
        out_specs=pl.BlockSpec((1, Cout, thw), lambda n, j: (n, 0, j)),
        out_shape=jax.ShapeDtypeStruct((N, Cout, HW), jnp.float32),
        compiler_params=cparams(("parallel", "parallel")),
    )(h3n, sc3, sh3, x3)

    return out.reshape(N, Cout, H, W)


# ------------------------------ reference ------------------------------------

def bottleneck_ref(x_nchw, params):
    """Pure-JAX reference (training-mode BN, same math as the PyTorch module)."""
    w1, w2, w3, g1, b1, g2, b2, g3, b3 = params
    hi = jax.lax.Precision.HIGHEST
    x = jnp.transpose(x_nchw, (0, 2, 3, 1)).astype(jnp.float32)
    N, H, W, Cin = x.shape
    width = w1.shape[1]

    def bn(h, g, b):
        mu = jnp.mean(h, axis=0, keepdims=True)
        var = jnp.mean((h - mu) ** 2, axis=0, keepdims=True)
        return (h - mu) * jax.lax.rsqrt(var + EPS) * g + b

    x2d = x.reshape(-1, Cin)
    h = jnp.maximum(bn(jnp.dot(x2d, w1, precision=hi), g1, b1), 0.0)
    hp = jnp.pad(h.reshape(N, H, W, width), ((0, 0), (1, 1), (1, 1), (0, 0)))
    acc = jnp.zeros((N * H * W, width), jnp.float32)
    for dy in range(3):
        for dx in range(3):
            acc = acc + jnp.dot(hp[:, dy:dy + H, dx:dx + W, :].reshape(-1, width),
                                w2[dy, dx], precision=hi)
    h = jnp.maximum(bn(acc, g2, b2), 0.0)
    h = bn(jnp.dot(h, w3, precision=hi), g3, b3)
    out = jnp.maximum(h + x2d, 0.0).reshape(N, H, W, -1)
    return jnp.transpose(out, (0, 3, 1, 2))


def make_params(key, inplanes, planes, base_width=64, groups=1, expansion=4):
    width = int(planes * (base_width / 64.0)) * groups
    cout = planes * expansion
    ks = jax.random.split(key, 9)
    w1 = 0.1 * jax.random.normal(ks[0], (inplanes, width), jnp.float32)
    w2 = 0.1 * jax.random.normal(ks[1], (3, 3, width, width), jnp.float32)
    w3 = 0.1 * jax.random.normal(ks[2], (width, cout), jnp.float32)
    g1 = 1.0 + 0.1 * jax.random.normal(ks[3], (1, width), jnp.float32)
    b1 = 0.1 * jax.random.normal(ks[4], (1, width), jnp.float32)
    g2 = 1.0 + 0.1 * jax.random.normal(ks[5], (1, width), jnp.float32)
    b2 = 0.1 * jax.random.normal(ks[6], (1, width), jnp.float32)
    g3 = 1.0 + 0.1 * jax.random.normal(ks[7], (1, cout), jnp.float32)
    b3 = 0.1 * jax.random.normal(ks[8], (1, cout), jnp.float32)
    return (w1, w2, w3, g1, b1, g2, b2, g3, b3)


if __name__ == "__main__":
    # Bottleneck(inplanes=128, planes=32): width=32, out channels = 128
    # (== inplanes -> identity skip).  Cout=128 keeps the residual / output
    # stores lane-dense while the problem stays small: x is (2, 128, 16, 16).
    N, H, W = 2, 16, 16
    inplanes, planes = 128, 32

    key = jax.random.PRNGKey(0)
    kx, kp = jax.random.split(key)
    x = jax.random.normal(kx, (N, inplanes, H, W), jnp.float32)   # NCHW input
    params = make_params(kp, inplanes, planes)

    ref = jax.block_until_ready(bottleneck_ref(x, params))

    # Strict structural-correctness check on the f32 path (tight tolerance).
    out_f32 = jax.block_until_ready(
        bottleneck_forward(x, params, mm_dtype=jnp.float32,
                           act_dtype=jnp.float32))
    np.testing.assert_allclose(np.asarray(out_f32), np.asarray(ref),
                               rtol=2e-4, atol=2e-4)

    # Production path: bf16 MXU operands + bf16 inter-stage activations.
    # bf16 storage/matmuls trade ~1e-2-level error for ~2x less HBM traffic on
    # these mem-bound stages, so the check is deliberately looser.
    out = jax.block_until_ready(bottleneck_forward(x, params))
    assert out.shape == (N, planes * 4, H, W)
    max_err = float(np.max(np.abs(np.asarray(out) - np.asarray(ref))))
    assert max_err < 0.25, f"bf16 path max abs error too large: {max_err}"

    print("KERNEL_OK")
</pallas_src>

<mosaic_0001>
module attributes {stable_mosaic.version = 11 : i64} {
  func.func @_stage1_kernel(%arg0: i32, %arg1: i32, %arg2: memref<1x128x256xf32, #tpu.memory_space<vmem>>, %arg3: memref<128x32xf32, #tpu.memory_space<vmem>>, %arg4: memref<1x256x32xf32, #tpu.memory_space<vmem>>, %arg5: memref<1x1x2x32xf32, #tpu.memory_space<vmem>>) attributes {dimension_semantics = [#tpu.dimension_semantics<parallel>, #tpu.dimension_semantics<parallel>], iteration_bounds = array<i64: 2, 1>, scalar_prefetch = 0 : i64, scratch_operands = 0 : i64, tpu.core_type = #tpu.core_type<tc>, window_params = [{transform_indices = @transform_0, window_bounds = array<i64: 1, 128, 256>}, {pipeline_mode = #tpu.pipeline_mode<synchronous>, transform_indices = @transform_1, window_bounds = array<i64: 128, 32>}, {transform_indices = @transform_2, window_bounds = array<i64: 1, 256, 32>}, {transform_indices = @transform_3, window_bounds = array<i64: 1, 1, 2, 32>}]} {
    %c0 = arith.constant 0 : index
    %c0_0 = arith.constant 0 : index
    %c0_1 = arith.constant 0 : index
    %0 = vector.load %arg2[%c0, %c0_0, %c0_1] : memref<1x128x256xf32, #tpu.memory_space<vmem>>, vector<1x128x256xf32>
    %1 = vector.shape_cast %0 : vector<1x128x256xf32> to vector<128x256xf32>
    %2 = tpu.transpose %1, [1, 0] : vector<128x256xf32> -> vector<256x128xf32>
    %c0_2 = arith.constant 0 : index
    %c0_3 = arith.constant 0 : index
    %3 = vector.load %arg3[%c0_2, %c0_3] : memref<128x32xf32, #tpu.memory_space<vmem>>, vector<128x32xf32>
    %cst = arith.constant dense<0.000000e+00> : vector<256x32xf32>
    %4 = tpu.matmul %2, %3, %cst {dimension_numbers = #tpu.dot_dimension_numbers<[1], [0], [0], [1], [0, 0, 1, 1], [], []>} : vector<256x128xf32>, vector<128x32xf32>, vector<256x32xf32> -> vector<256x32xf32>
    %5 = vector.shape_cast %4 : vector<256x32xf32> to vector<1x256x32xf32>
    %c0_4 = arith.constant 0 : index
    %c0_5 = arith.constant 0 : index
    %c0_6 = arith.constant 0 : index
    %6 = vector.load %arg4[%c0_4, %c0_5, %c0_6] : memref<1x256x32xf32, #tpu.memory_space<vmem>>, vector<1x256x32xf32>
    tpu.vector_store %arg4[%c0_4, %c0_5, %c0_6], %5 {strides = array<i32>} : memref<1x256x32xf32, #tpu.memory_space<vmem>>, vector<1x256x32xf32>,
    %cst_7 = arith.constant dense<0.000000e+00> : vector<32xf32>
    %7 = vector.multi_reduction <add>, %4, %cst_7 [0] : vector<256x32xf32> to vector<32xf32>
    %8 = vector.shape_cast %7 : vector<32xf32> to vector<1x32xf32>
    %9 = arith.mulf %4, %4 : vector<256x32xf32>
    %cst_8 = arith.constant dense<0.000000e+00> : vector<32xf32>
    %10 = vector.multi_reduction <add>, %9, %cst_8 [0] : vector<256x32xf32> to vector<32xf32>
    %11 = vector.shape_cast %10 : vector<32xf32> to vector<1x32xf32>
    %12 = tpu.concatenate %8, %11 in 0 : vector<1x32xf32>, vector<1x32xf32> -> vector<2x32xf32>
    %13 = vector.shape_cast %12 : vector<2x32xf32> to vector<1x1x2x32xf32>
    %c0_9 = arith.constant 0 : index
    %c0_10 = arith.constant 0 : index
    %c0_11 = arith.constant 0 : index
    %c0_12 = arith.constant 0 : index
    %14 = vector.load %arg5[%c0_9, %c0_10, %c0_11, %c0_12] : memref<1x1x2x32xf32, #tpu.memory_space<vmem>>, vector<1x1x2x32xf32>
    tpu.vector_store %arg5[%c0_9, %c0_10, %c0_11, %c0_12], %13 {strides = array<i32>} : memref<1x1x2x32xf32, #tpu.memory_space<vmem>>, vector<1x1x2x32xf32>,
    return
  }
  func.func @transform_0(%arg0: i32, %arg1: i32) -> (i32, i32, i32) {
    %c0_i32 = arith.constant 0 : i32
    %c0_i32_0 = arith.constant 0 : i32
    return %arg0, %c0_i32, %arg1 : i32, i32, i32
  }
  func.func @transform_1(%arg0: i32, %arg1: i32) -> (i32, i32) {
    %c0_i32 = arith.constant 0 : i32
    %c0_i32_0 = arith.constant 0 : i32
    %c0_i32_1 = arith.constant 0 : i32
    return %c0_i32, %c0_i32_0 : i32, i32
  }
  func.func @transform_2(%arg0: i32, %arg1: i32) -> (i32, i32, i32) {
    %c0_i32 = arith.constant 0 : i32
    %c0_i32_0 = arith.constant 0 : i32
    return %arg0, %arg1, %c0_i32 : i32, i32, i32
  }
  func.func @transform_3(%arg0: i32, %arg1: i32) -> (i32, i32, i32, i32) {
    %c0_i32 = arith.constant 0 : i32
    %c0_i32_0 = arith.constant 0 : i32
    %c0_i32_1 = arith.constant 0 : i32
    return %arg0, %arg1, %c0_i32, %c0_i32_0 : i32, i32, i32, i32
  }
}

module attributes {stable_mosaic.version = 11 : i64} {
  func.func @_stage2_kernel(%arg0: i32, %arg1: i32, %arg2: memref<1x8x16x32xf32, #tpu.memory_space<vmem>>, %arg3: memref<1x1x16x32xf32, #tpu.memory_space<vmem>>, %arg4: memref<1x1x16x32xf32, #tpu.memory_space<vmem>>, %arg5: memref<1x32xf32, #tpu.memory_space<vmem>>, %arg6: memref<1x32xf32, #tpu.memory_space<vmem>>, %arg7: memref<3x3x32x32xf32, #tpu.memory_space<vmem>>, %arg8: memref<1x8x16x32xf32, #tpu.memory_space<vmem>>, %arg9: memref<1x1x2x32xf32, #tpu.memory_space<vmem>>) attributes {dimension_semantics = [#tpu.dimension_semantics<parallel>, #tpu.dimension_semantics<parallel>], iteration_bounds = array<i64: 2, 2>, scalar_prefetch = 0 : i64, scratch_operands = 0 : i64, tpu.core_type = #tpu.core_type<tc>, window_params = [{transform_indices = @transform_0, window_bounds = array<i64: 1, 8, 16, 32>}, {transform_indices = @transform_1, window_bounds = array<i64: 1, 1, 16, 32>}, {transform_indices = @transform_2, window_bounds = array<i64: 1, 1, 16, 32>}, {pipeline_mode = #tpu.pipeline_mode<synchronous>, transform_indices = @transform_3, window_bounds = array<i64: 1, 32>}, {pipeline_mode = #tpu.pipeline_mode<synchronous>, transform_indices = @transform_4, window_bounds = array<i64: 1, 32>}, {pipeline_mode = #tpu.pipeline_mode<synchronous>, transform_indices = @transform_5, window_bounds = array<i64: 3, 3, 32, 32>}, {transform_indices = @transform_6, window_bounds = array<i64: 1, 8, 16, 32>}, {transform_indices = @transform_7, window_bounds = array<i64: 1, 1, 2, 32>}]} {
    %c0 = arith.constant 0 : index
    %c0_0 = arith.constant 0 : index
    %0 = vector.load %arg5[%c0, %c0_0] : memref<1x32xf32, #tpu.memory_space<vmem>>, vector<1x32xf32>
    %1 = vector.shape_cast %0 : vector<1x32xf32> to vector<1x1x32xf32>
    %c0_1 = arith.constant 0 : index
    %c0_2 = arith.constant 0 : index
    %2 = vector.load %arg6[%c0_1, %c0_2] : memref<1x32xf32, #tpu.memory_space<vmem>>, vector<1x32xf32>
    %3 = vector.shape_cast %2 : vector<1x32xf32> to vector<1x1x32xf32>
    %c0_3 = arith.constant 0 : index
    %c0_4 = arith.constant 0 : index
    %c0_5 = arith.constant 0 : index
    %c0_6 = arith.constant 0 : index
    %4 = vector.load %arg2[%c0_3, %c0_4, %c0_5, %c0_6] : memref<1x8x16x32xf32, #tpu.memory_space<vmem>>, vector<1x8x16x32xf32>
    %5 = vector.shape_cast %4 : vector<1x8x16x32xf32> to vector<8x16x32xf32>
    %6 = vector.broadcast %1 : vector<1x1x32xf32> to vector<8x16x32xf32>
    %7 = arith.mulf %5, %6 : vector<8x16x32xf32>
    %8 = vector.broadcast %3 : vector<1x1x32xf32> to vector<8x16x32xf32>
    %9 = arith.addf %7, %8 : vector<8x16x32xf32>
    %cst = arith.constant 0.000000e+00 : f32
    %10 = vector.broadcast %cst : f32 to vector<8x16x32xf32>
    %11 = arith.maximumf %9, %10 : vector<8x16x32xf32>
    %c0_i32 = arith.constant 0 : i32
    %12 = arith.cmpi eq, %arg1, %c0_i32 : i32
    %c0_7 = arith.constant 0 : index
    %c0_8 = arith.constant 0 : index
    %c0_9 = arith.constant 0 : index
    %c0_10 = arith.constant 0 : index
    %13 = vector.load %arg3[%c0_7, %c0_8, %c0_9, %c0_10] : memref<1x1x16x32xf32, #tpu.memory_space<vmem>>, vector<1x1x16x32xf32>
    %14 = vector.shape_cast %13 : vector<1x1x16x32xf32> to vector<1x16x32xf32>
    %15 = vector.broadcast %1 : vector<1x1x32xf32> to vector<1x16x32xf32>
    %16 = arith.mulf %14, %15 : vector<1x16x32xf32>
    %17 = vector.broadcast %3 : vector<1x1x32xf32> to vector<1x16x32xf32>
    %18 = arith.addf %16, %17 : vector<1x16x32xf32>
    %cst_11 = arith.constant 0.000000e+00 : f32
    %19 = vector.broadcast %cst_11 : f32 to vector<1x16x32xf32>
    %20 = arith.maximumf %18, %19 : vector<1x16x32xf32>
    %cst_12 = arith.constant 0.000000e+00 : f32
    %21 = vector.broadcast %cst_12 : f32 to vector<1x16x32xf32>
    %22 = arith.select %12, %21, %20 : vector<1x16x32xf32>
    %c1_i32 = arith.constant 1 : i32
    %23 = arith.cmpi eq, %arg1, %c1_i32 : i32
    %c0_13 = arith.constant 0 : index
    %c0_14 = arith.constant 0 : index
    %c0_15 = arith.constant 0 : index
    %c0_16 = arith.constant 0 : index
    %24 = vector.load %arg4[%c0_13, %c0_14, %c0_15, %c0_16] : memref<1x1x16x32xf32, #tpu.memory_space<vmem>>, vector<1x1x16x32xf32>
    %25 = vector.shape_cast %24 : vector<1x1x16x32xf32> to vector<1x16x32xf32>
    %26 = vector.broadcast %1 : vector<1x1x32xf32> to vector<1x16x32xf32>
    %27 = arith.mulf %25, %26 : vector<1x16x32xf32>
    %28 = vector.broadcast %3 : vector<1x1x32xf32> to vector<1x16x32xf32>
    %29 = arith.addf %27, %28 : vector<1x16x32xf32>
    %cst_17 = arith.constant 0.000000e+00 : f32
    %30 = vector.broadcast %cst_17 : f32 to vector<1x16x32xf32>
    %31 = arith.maximumf %29, %30 : vector<1x16x32xf32>
    %cst_18 = arith.constant 0.000000e+00 : f32
    %32 = vector.broadcast %cst_18 : f32 to vector<1x16x32xf32>
    %33 = arith.select %23, %32, %31 : vector<1x16x32xf32>
    %34 = tpu.concatenate %22, %11, %33 in 0 : vector<1x16x32xf32>, vector<8x16x32xf32>, vector<1x16x32xf32> -> vector<10x16x32xf32>
    %cst_19 = arith.constant 0.000000e+00 : f32
    %35 = vector.broadcast %cst_19 : f32 to vector<10x8x32xf32>
    %36 = tpu.concatenate %34, %35 in 1 : vector<10x16x32xf32>, vector<10x8x32xf32> -> vector<10x24x32xf32>
    %37 = vector.shape_cast %36 : vector<10x24x32xf32> to vector<240x32xf32>
    %c1_i32_20 = arith.constant 1 : i32
    %38 = tpu.dynamic_rotate %37 by %c1_i32_20 dim 0 : vector<240x32xf32>, i32 -> vector<240x32xf32>
    %c239_i32 = arith.constant 239 : i32
    %39 = tpu.dynamic_rotate %37 by %c239_i32 dim 0 : vector<240x32xf32>, i32 -> vector<240x32xf32>
    %c0_21 = arith.constant 0 : index
    %c0_22 = arith.constant 0 : index
    %c0_23 = arith.constant 0 : index
    %c0_24 = arith.constant 0 : index
    %40 = vector.load %arg7[%c0_21, %c0_22, %c0_23, %c0_24] : memref<3x3x32x32xf32, #tpu.memory_space<vmem>>, vector<3x3x32x32xf32>
    %cst_25 = arith.constant 0.000000e+00 : f32
    %41 = vector.broadcast %cst_25 : f32 to vector<192x32xf32>
    %42 = vector.extract_strided_slice %38 {offsets = [0, 0], sizes = [192, 32], strides = [1, 1]} : vector<240x32xf32> to vector<192x32xf32>
    %43 = vector.extract_strided_slice %40 {offsets = [0, 0, 0, 0], sizes = [1, 1, 32, 32], strides = [1, 1, 1, 1]} : vector<3x3x32x32xf32> to vector<1x1x32x32xf32>
    %44 = vector.shape_cast %43 : vector<1x1x32x32xf32> to vector<32x32xf32>
    %cst_26 = arith.constant dense<0.000000e+00> : vector<192x32xf32>
    %45 = tpu.matmul %42, %44, %cst_26 {dimension_numbers = #tpu.dot_dimension_numbers<[1], [0], [0], [1], [0, 0, 1, 1], [], []>} : vector<192x32xf32>, vector<32x32xf32>, vector<192x32xf32> -> vector<192x32xf32>
    %46 = arith.addf %41, %45 : vector<192x32xf32>
    %47 = vector.extract_strided_slice %37 {offsets = [0, 0], sizes = [192, 32], strides = [1, 1]} : vector<240x32xf32> to vector<192x32xf32>
    %48 = vector.extract_strided_slice %40 {offsets = [0, 1, 0, 0], sizes = [1, 1, 32, 32], strides = [1, 1, 1, 1]} : vector<3x3x32x32xf32> to vector<1x1x32x32xf32>
    %49 = vector.shape_cast %48 : vector<1x1x32x32xf32> to vector<32x32xf32>
    %cst_27 = arith.constant dense<0.000000e+00> : vector<192x32xf32>
    %50 = tpu.matmul %47, %49, %cst_27 {dimension_numbers = #tpu.dot_dimension_numbers<[1], [0], [0], [1], [0, 0, 1, 1], [], []>} : vector<192x32xf32>, vector<32x32xf32>, vector<192x32xf32> -> vector<192x32xf32>
    %51 = arith.addf %46, %50 : vector<192x32xf32>
    %52 = vector.extract_strided_slice %39 {offsets = [0, 0], sizes = [192, 32], strides = [1, 1]} : vector<240x32xf32> to vector<192x32xf32>
    %53 = vector.extract_strided_slice %40 {offsets = [0, 2, 0, 0], sizes = [1, 1, 32, 32], strides = [1, 1, 1, 1]} : vector<3x3x32x32xf32> to vector<1x1x32x32xf32>
    %54 = vector.shape_cast %53 : vector<1x1x32x32xf32> to vector<32x32xf32>
    %cst_28 = arith.constant dense<0.000000e+00> : vector<192x32xf32>
    %55 = tpu.matmul %52, %54, %cst_28 {dimension_numbers = #tpu.dot_dimension_numbers<[1], [0], [0], [1], [0, 0, 1, 1], [], []>} : vector<192x32xf32>, vector<32x32xf32>, vector<192x32xf32> -> vector<192x32xf32>
    %56 = arith.addf %51, %55 : vector<192x32xf32>
    %57 = vector.extract_strided_slice %38 {offsets = [24, 0], sizes = [192, 32], strides = [1, 1]} : vector<240x32xf32> to vector<192x32xf32>
    %58 = vector.extract_strided_slice %40 {offsets = [1, 0, 0, 0], sizes = [1, 1, 32, 32], strides = [1, 1, 1, 1]} : vector<3x3x32x32xf32> to vector<1x1x32x32xf32>
    %59 = vector.shape_cast %58 : vector<1x1x32x32xf32> to vector<32x32xf32>
    %cst_29 = arith.constant dense<0.000000e+00> : vector<192x32xf32>
    %60 = tpu.matmul %57, %59, %cst_29 {dimension_numbers = #tpu.dot_dimension_numbers<[1], [0], [0], [1], [0, 0, 1, 1], [], []>} : vector<192x32xf32>, vector<32x32xf32>, vector<192x32xf32> -> vector<192x32xf32>
    %61 = arith.addf %56, %60 : vector<192x32xf32>
    %62 = vector.extract_strided_slice %37 {offsets = [24, 0], sizes = [192, 32], strides = [1, 1]} : vector<240x32xf32> to vector<192x32xf32>
    %63 = vector.extract_strided_slice %40 {offsets = [1, 1, 0, 0], sizes = [1, 1, 32, 32], strides = [1, 1, 1, 1]} : vector<3x3x32x32xf32> to vector<1x1x32x32xf32>
    %64 = vector.shape_cast %63 : vector<1x1x32x32xf32> to vector<32x32xf32>
    %cst_30 = arith.constant dense<0.000000e+00> : vector<192x32xf32>
    %65 = tpu.matmul %62, %64, %cst_30 {dimension_numbers = #tpu.dot_dimension_numbers<[1], [0], [0], [1], [0, 0, 1, 1], [], []>} : vector<192x32xf32>, vector<32x32xf32>, vector<192x32xf32> -> vector<192x32xf32>
    %66 = arith.addf %61, %65 : vector<192x32xf32>
    %67 = vector.extract_strided_slice %39 {offsets = [24, 0], sizes = [192, 32], strides = [1, 1]} : vector<240x32xf32> to vector<192x32xf32>
    %68 = vector.extract_strided_slice %40 {offsets = [1, 2, 0, 0], sizes = [1, 1, 32, 32], strides = [1, 1, 1, 1]} : vector<3x3x32x32xf32> to vector<1x1x32x32xf32>
    %69 = vector.shape_cast %68 : vector<1x1x32x32xf32> to vector<32x32xf32>
    %cst_31 = arith.constant dense<0.000000e+00> : vector<192x32xf32>
    %70 = tpu.matmul %67, %69, %cst_31 {dimension_numbers = #tpu.dot_dimension_numbers<[1], [0], [0], [1], [0, 0, 1, 1], [], []>} : vector<192x32xf32>, vector<32x32xf32>, vector<192x32xf32> -> vector<192x32xf32>
    %71 = arith.addf %66, %70 : vector<192x32xf32>
    %72 = vector.extract_strided_slice %38 {offsets = [48, 0], sizes = [192, 32], strides = [1, 1]} : vector<240x32xf32> to vector<192x32xf32>
    %73 = vector.extract_strided_slice %40 {offsets = [2, 0, 0, 0], sizes = [1, 1, 32, 32], strides = [1, 1, 1, 1]} : vector<3x3x32x32xf32> to vector<1x1x32x32xf32>
    %74 = vector.shape_cast %73 : vector<1x1x32x32xf32> to vector<32x32xf32>
    %cst_32 = arith.constant dense<0.000000e+00> : vector<192x32xf32>
    %75 = tpu.matmul %72, %74, %cst_32 {dimension_numbers = #tpu.dot_dimension_numbers<[1], [0], [0], [1], [0, 0, 1, 1], [], []>} : vector<192x32xf32>, vector<32x32xf32>, vector<192x32xf32> -> vector<192x32xf32>
    %76 = arith.addf %71, %75 : vector<192x32xf32>
    %77 = vector.extract_strided_slice %37 {offsets = [48, 0], sizes = [192, 32], strides = [1, 1]} : vector<240x32xf32> to vector<192x32xf32>
    %78 = vector.extract_strided_slice %40 {offsets = [2, 1, 0, 0], sizes = [1, 1, 32, 32], strides = [1, 1, 1, 1]} : vector<3x3x32x32xf32> to vector<1x1x32x32xf32>
    %79 = vector.shape_cast %78 : vector<1x1x32x32xf32> to vector<32x32xf32>
    %cst_33 = arith.constant dense<0.000000e+00> : vector<192x32xf32>
    %80 = tpu.matmul %77, %79, %cst_33 {dimension_numbers = #tpu.dot_dimension_numbers<[1], [0], [0], [1], [0, 0, 1, 1], [], []>} : vector<192x32xf32>, vector<32x32xf32>, vector<192x32xf32> -> vector<192x32xf32>
    %81 = arith.addf %76, %80 : vector<192x32xf32>
    %82 = vector.extract_strided_slice %39 {offsets = [48, 0], sizes = [192, 32], strides = [1, 1]} : vector<240x32xf32> to vector<192x32xf32>
    %83 = vector.extract_strided_slice %40 {offsets = [2, 2, 0, 0], sizes = [1, 1, 32, 32], strides = [1, 1, 1, 1]} : vector<3x3x32x32xf32> to vector<1x1x32x32xf32>
    %84 = vector.shape_cast %83 : vector<1x1x32x32xf32> to vector<32x32xf32>
    %cst_34 = arith.constant dense<0.000000e+00> : vector<192x32xf32>
    %85 = tpu.matmul %82, %84, %cst_34 {dimension_numbers = #tpu.dot_dimension_numbers<[1], [0], [0], [1], [0, 0, 1, 1], [], []>} : vector<192x32xf32>, vector<32x32xf32>, vector<192x32xf32> -> vector<192x32xf32>
    %86 = arith.addf %81, %85 : vector<192x32xf32>
    %87 = vector.shape_cast %86 : vector<192x32xf32> to vector<8x24x32xf32>
    %88 = vector.extract_strided_slice %87 {offsets = [0, 0, 0], sizes = [8, 16, 32], strides = [1, 1, 1]} : vector<8x24x32xf32> to vector<8x16x32xf32>
    %89 = vector.shape_cast %88 : vector<8x16x32xf32> to vector<1x8x16x32xf32>
    %c0_35 = arith.constant 0 : index
    %c0_36 = arith.constant 0 : index
    %c0_37 = arith.constant 0 : index
    %c0_38 = arith.constant 0 : index
    %90 = vector.load %arg8[%c0_35, %c0_36, %c0_37, %c0_38] : memref<1x8x16x32xf32, #tpu.memory_space<vmem>>, vector<1x8x16x32xf32>
    tpu.vector_store %arg8[%c0_35, %c0_36, %c0_37, %c0_38], %89 {strides = array<i32>} : memref<1x8x16x32xf32, #tpu.memory_space<vmem>>, vector<1x8x16x32xf32>,
    %91 = vector.shape_cast %88 : vector<8x16x32xf32> to vector<128x32xf32>
    %cst_39 = arith.constant dense<0.000000e+00> : vector<32xf32>
    %92 = vector.multi_reduction <add>, %91, %cst_39 [0] : vector<128x32xf32> to vector<32xf32>
    %93 = vector.shape_cast %92 : vector<32xf32> to vector<1x32xf32>
    %94 = arith.mulf %91, %91 : vector<128x32xf32>
    %cst_40 = arith.constant dense<0.000000e+00> : vector<32xf32>
    %95 = vector.multi_reduction <add>, %94, %cst_40 [0] : vector<128x32xf32> to vector<32xf32>
    %96 = vector.shape_cast %95 : vector<32xf32> to vector<1x32xf32>
    %97 = tpu.concatenate %93, %96 in 0 : vector<1x32xf32>, vector<1x32xf32> -> vector<2x32xf32>
    %98 = vector.shape_cast %97 : vector<2x32xf32> to vector<1x1x2x32xf32>
    %c0_41 = arith.constant 0 : index
    %c0_42 = arith.constant 0 : index
    %c0_43 = arith.constant 0 : index
    %c0_44 = arith.constant 0 : index
    %99 = vector.load %arg9[%c0_41, %c0_42, %c0_43, %c0_44] : memref<1x1x2x32xf32, #tpu.memory_space<vmem>>, vector<1x1x2x32xf32>
    tpu.vector_store %arg9[%c0_41, %c0_42, %c0_43, %c0_44], %98 {strides = array<i32>} : memref<1x1x2x32xf32, #tpu.memory_space<vmem>>, vector<1x1x2x32xf32>,
    return
  }
  func.func @transform_0(%arg0: i32, %arg1: i32) -> (i32, i32, i32, i32) {
    %c0_i32 = arith.constant 0 : i32
    %c0_i32_0 = arith.constant 0 : i32
    %c0_i32_1 = arith.constant 0 : i32
    return %arg0, %arg1, %c0_i32, %c0_i32_0 : i32, i32, i32, i32
  }
  func.func @transform_1(%arg0: i32, %arg1: i32) -> (i32, i32, i32, i32) {
    %c8_i32 = arith.constant 8 : i32
    %0 = arith.muli %arg1, %c8_i32 : i32
    %c1_i32 = arith.constant 1 : i32
    %1 = arith.subi %0, %c1_i32 : i32
    %c0_i32 = arith.constant 0 : i32
    %2 = arith.maxsi %1, %c0_i32 : i32
    %c0_i32_0 = arith.constant 0 : i32
    %c0_i32_1 = arith.constant 0 : i32
    %c0_i32_2 = arith.constant 0 : i32
    return %arg0, %2, %c0_i32_0, %c0_i32_1 : i32, i32, i32, i32
  }
  func.func @transform_2(%arg0: i32, %arg1: i32) -> (i32, i32, i32, i32) {
    %c8_i32 = arith.constant 8 : i32
    %0 = arith.muli %arg1, %c8_i32 : i32
    %c8_i32_0 = arith.constant 8 : i32
    %1 = arith.addi %0, %c8_i32_0 : i32
    %c15_i32 = arith.constant 15 : i32
    %2 = arith.minsi %1, %c15_i32 : i32
    %c0_i32 = arith.constant 0 : i32
    %c0_i32_1 = arith.constant 0 : i32
    %c0_i32_2 = arith.constant 0 : i32
    return %arg0, %2, %c0_i32, %c0_i32_1 : i32, i32, i32, i32
  }
  func.func @transform_3(%arg0: i32, %arg1: i32) -> (i32, i32) {
    %c0_i32 = arith.constant 0 : i32
    %c0_i32_0 = arith.constant 0 : i32
    %c0_i32_1 = arith.constant 0 : i32
    return %c0_i32, %c0_i32_0 : i32, i32
  }
  func.func @transform_4(%arg0: i32, %arg1: i32) -> (i32, i32) {
    %c0_i32 = arith.constant 0 : i32
    %c0_i32_0 = arith.constant 0 : i32
    %c0_i32_1 = arith.constant 0 : i32
    return %c0_i32, %c0_i32_0 : i32, i32
  }
  func.func @transform_5(%arg0: i32, %arg1: i32) -> (i32, i32, i32, i32) {
    %c0_i32 = arith.constant 0 : i32
    %c0_i32_0 = arith.constant 0 : i32
    %c0_i32_1 = arith.constant 0 : i32
    %c0_i32_2 = arith.constant 0 : i32
    %c0_i32_3 = arith.constant 0 : i32
    return %c0_i32, %c0_i32_0, %c0_i32_1, %c0_i32_2 : i32, i32, i32, i32
  }
  func.func @transform_6(%arg0: i32, %arg1: i32) -> (i32, i32, i32, i32) {
    %c0_i32 = arith.constant 0 : i32
    %c0_i32_0 = arith.constant 0 : i32
    %c0_i32_1 = arith.constant 0 : i32
    return %arg0, %arg1, %c0_i32, %c0_i32_0 : i32, i32, i32, i32
  }
  func.func @transform_7(%arg0: i32, %arg1: i32) -> (i32, i32, i32, i32) {
    %c0_i32 = arith.constant 0 : i32
    %c0_i32_0 = arith.constant 0 : i32
    %c0_i32_1 = arith.constant 0 : i32
    return %arg0, %arg1, %c0_i32, %c0_i32_0 : i32, i32, i32, i32
  }
}

module attributes {stable_mosaic.version = 11 : i64} {
  func.func @_stage4_kernel(%arg0: i32, %arg1: i32, %arg2: memref<1x256x128xf32, #tpu.memory_space<vmem>>, %arg3: memref<1x128xf32, #tpu.memory_space<vmem>>, %arg4: memref<1x128xf32, #tpu.memory_space<vmem>>, %arg5: memref<1x128x256xf32, #tpu.memory_space<vmem>>, %arg6: memref<1x128x256xf32, #tpu.memory_space<vmem>>) attributes {dimension_semantics = [#tpu.dimension_semantics<parallel>, #tpu.dimension_semantics<parallel>], iteration_bounds = array<i64: 2, 1>, scalar_prefetch = 0 : i64, scratch_operands = 0 : i64, tpu.core_type = #tpu.core_type<tc>, window_params = [{transform_indices = @transform_0, window_bounds = array<i64: 1, 256, 128>}, {pipeline_mode = #tpu.pipeline_mode<synchronous>, transform_indices = @transform_1, window_bounds = array<i64: 1, 128>}, {pipeline_mode = #tpu.pipeline_mode<synchronous>, transform_indices = @transform_2, window_bounds = array<i64: 1, 128>}, {transform_indices = @transform_3, window_bounds = array<i64: 1, 128, 256>}, {transform_indices = @transform_4, window_bounds = array<i64: 1, 128, 256>}]} {
    %c0 = arith.constant 0 : index
    %c0_0 = arith.constant 0 : index
    %c0_1 = arith.constant 0 : index
    %0 = vector.load %arg2[%c0, %c0_0, %c0_1] : memref<1x256x128xf32, #tpu.memory_space<vmem>>, vector<1x256x128xf32>
    %1 = vector.shape_cast %0 : vector<1x256x128xf32> to vector<256x128xf32>
    %c0_2 = arith.constant 0 : index
    %c0_3 = arith.constant 0 : index
    %2 = vector.load %arg3[%c0_2, %c0_3] : memref<1x128xf32, #tpu.memory_space<vmem>>, vector<1x128xf32>
    %3 = vector.broadcast %2 : vector<1x128xf32> to vector<256x128xf32>
    %4 = arith.mulf %1, %3 : vector<256x128xf32>
    %c0_4 = arith.constant 0 : index
    %c0_5 = arith.constant 0 : index
    %5 = vector.load %arg4[%c0_4, %c0_5] : memref<1x128xf32, #tpu.memory_space<vmem>>, vector<1x128xf32>
    %6 = vector.broadcast %5 : vector<1x128xf32> to vector<256x128xf32>
    %7 = arith.addf %4, %6 : vector<256x128xf32>
    %8 = tpu.transpose %7, [1, 0] : vector<256x128xf32> -> vector<128x256xf32>
    %c0_6 = arith.constant 0 : index
    %c0_7 = arith.constant 0 : index
    %c0_8 = arith.constant 0 : index
    %9 = vector.load %arg5[%c0_6, %c0_7, %c0_8] : memref<1x128x256xf32, #tpu.memory_space<vmem>>, vector<1x128x256xf32>
    %10 = vector.shape_cast %9 : vector<1x128x256xf32> to vector<128x256xf32>
    %11 = arith.addf %8, %10 : vector<128x256xf32>
    %cst = arith.constant 0.000000e+00 : f32
    %12 = vector.broadcast %cst : f32 to vector<128x256xf32>
    %13 = arith.maximumf %11, %12 : vector<128x256xf32>
    %14 = vector.shape_cast %13 : vector<128x256xf32> to vector<1x128x256xf32>
    %c0_9 = arith.constant 0 : index
    %c0_10 = arith.constant 0 : index
    %c0_11 = arith.constant 0 : index
    %15 = vector.load %arg6[%c0_9, %c0_10, %c0_11] : memref<1x128x256xf32, #tpu.memory_space<vmem>>, vector<1x128x256xf32>
    tpu.vector_store %arg6[%c0_9, %c0_10, %c0_11], %14 {strides = array<i32>} : memref<1x128x256xf32, #tpu.memory_space<vmem>>, vector<1x128x256xf32>,
    return
  }
  func.func @transform_0(%arg0: i32, %arg1: i32) -> (i32, i32, i32) {
    %c0_i32 = arith.constant 0 : i32
    %c0_i32_0 = arith.constant 0 : i32
    return %arg0, %arg1, %c0_i32 : i32, i32, i32
  }
  func.func @transform_1(%arg0: i32, %arg1: i32) -> (i32, i32) {
    %c0_i32 = arith.constant 0 : i32
    %c0_i32_0 = arith.constant 0 : i32
    %c0_i32_1 = arith.constant 0 : i32
    return %c0_i32, %c0_i32_0 : i32, i32
  }
  func.func @transform_2(%arg0: i32, %arg1: i32) -> (i32, i32) {
    %c0_i32 = arith.constant 0 : i32
    %c0_i32_0 = arith.constant 0 : i32
    %c0_i32_1 = arith.constant 0 : i32
    return %c0_i32, %c0_i32_0 : i32, i32
  }
  func.func @transform_3(%arg0: i32, %arg1: i32) -> (i32, i32, i32) {
    %c0_i32 = arith.constant 0 : i32
    %c0_i32_0 = arith.constant 0 : i32
    return %arg0, %c0_i32, %arg1 : i32, i32, i32
  }
  func.func @transform_4(%arg0: i32, %arg1: i32) -> (i32, i32, i32) {
    %c0_i32 = arith.constant 0 : i32
    %c0_i32_0 = arith.constant 0 : i32
    return %arg0, %c0_i32, %arg1 : i32, i32, i32
  }
}

module attributes {stable_mosaic.version = 11 : i64} {
  func.func @_stage3_kernel(%arg0: i32, %arg1: memref<512x32xf32, #tpu.memory_space<vmem>>, %arg2: memref<1x32xf32, #tpu.memory_space<vmem>>, %arg3: memref<1x32xf32, #tpu.memory_space<vmem>>, %arg4: memref<32x128xf32, #tpu.memory_space<vmem>>, %arg5: memref<512x128xf32, #tpu.memory_space<vmem>>, %arg6: memref<1x2x128xf32, #tpu.memory_space<vmem>>) attributes {dimension_semantics = [#tpu.dimension_semantics<parallel>], iteration_bounds = array<i64: 1>, scalar_prefetch = 0 : i64, scratch_operands = 0 : i64, tpu.core_type = #tpu.core_type<tc>, window_params = [{transform_indices = @transform_0, window_bounds = array<i64: 512, 32>}, {pipeline_mode = #tpu.pipeline_mode<synchronous>, transform_indices = @transform_1, window_bounds = array<i64: 1, 32>}, {pipeline_mode = #tpu.pipeline_mode<synchronous>, transform_indices = @transform_2, window_bounds = array<i64: 1, 32>}, {pipeline_mode = #tpu.pipeline_mode<synchronous>, transform_indices = @transform_3, window_bounds = array<i64: 32, 128>}, {transform_indices = @transform_4, window_bounds = array<i64: 512, 128>}, {transform_indices = @transform_5, window_bounds = array<i64: 1, 2, 128>}]} {
    %c0 = arith.constant 0 : index
    %c0_0 = arith.constant 0 : index
    %0 = vector.load %arg1[%c0, %c0_0] : memref<512x32xf32, #tpu.memory_space<vmem>>, vector<512x32xf32>
    %c0_1 = arith.constant 0 : index
    %c0_2 = arith.constant 0 : index
    %1 = vector.load %arg2[%c0_1, %c0_2] : memref<1x32xf32, #tpu.memory_space<vmem>>, vector<1x32xf32>
    %2 = vector.broadcast %1 : vector<1x32xf32> to vector<512x32xf32>
    %3 = arith.mulf %0, %2 : vector<512x32xf32>
    %c0_3 = arith.constant 0 : index
    %c0_4 = arith.constant 0 : index
    %4 = vector.load %arg3[%c0_3, %c0_4] : memref<1x32xf32, #tpu.memory_space<vmem>>, vector<1x32xf32>
    %5 = vector.broadcast %4 : vector<1x32xf32> to vector<512x32xf32>
    %6 = arith.addf %3, %5 : vector<512x32xf32>
    %cst = arith.constant 0.000000e+00 : f32
    %7 = vector.broadcast %cst : f32 to vector<512x32xf32>
    %8 = arith.maximumf %6, %7 : vector<512x32xf32>
    %c0_5 = arith.constant 0 : index
    %c0_6 = arith.constant 0 : index
    %9 = vector.load %arg4[%c0_5, %c0_6] : memref<32x128xf32, #tpu.memory_space<vmem>>, vector<32x128xf32>
    %cst_7 = arith.constant dense<0.000000e+00> : vector<512x128xf32>
    %10 = tpu.matmul %8, %9, %cst_7 {dimension_numbers = #tpu.dot_dimension_numbers<[1], [0], [0], [1], [0, 0, 1, 1], [], []>} : vector<512x32xf32>, vector<32x128xf32>, vector<512x128xf32> -> vector<512x128xf32>
    %c0_8 = arith.constant 0 : index
    %c0_9 = arith.constant 0 : index
    %11 = vector.load %arg5[%c0_8, %c0_9] : memref<512x128xf32, #tpu.memory_space<vmem>>, vector<512x128xf32>
    tpu.vector_store %arg5[%c0_8, %c0_9], %10 {strides = array<i32>} : memref<512x128xf32, #tpu.memory_space<vmem>>, vector<512x128xf32>,
    %cst_10 = arith.constant dense<0.000000e+00> : vector<128xf32>
    %12 = vector.multi_reduction <add>, %10, %cst_10 [0] : vector<512x128xf32> to vector<128xf32>
    %13 = vector.shape_cast %12 : vector<128xf32> to vector<1x128xf32>
    %14 = arith.mulf %10, %10 : vector<512x128xf32>
    %cst_11 = arith.constant dense<0.000000e+00> : vector<128xf32>
    %15 = vector.multi_reduction <add>, %14, %cst_11 [0] : vector<512x128xf32> to vector<128xf32>
    %16 = vector.shape_cast %15 : vector<128xf32> to vector<1x128xf32>
    %17 = tpu.concatenate %13, %16 in 0 : vector<1x128xf32>, vector<1x128xf32> -> vector<2x128xf32>
    %18 = vector.shape_cast %17 : vector<2x128xf32> to vector<1x2x128xf32>
    %c0_12 = arith.constant 0 : index
    %c0_13 = arith.constant 0 : index
    %c0_14 = arith.constant 0 : index
    %19 = vector.load %arg6[%c0_12, %c0_13, %c0_14] : memref<1x2x128xf32, #tpu.memory_space<vmem>>, vector<1x2x128xf32>
    tpu.vector_store %arg6[%c0_12, %c0_13, %c0_14], %18 {strides = array<i32>} : memref<1x2x128xf32, #tpu.memory_space<vmem>>, vector<1x2x128xf32>,
    return
  }
  func.func @transform_0(%arg0: i32) -> (i32, i32) {
    %c0_i32 = arith.constant 0 : i32
    %c0_i32_0 = arith.constant 0 : i32
    return %arg0, %c0_i32 : i32, i32
  }
  func.func @transform_1(%arg0: i32) -> (i32, i32) {
    %c0_i32 = arith.constant 0 : i32
    %c0_i32_0 = arith.constant 0 : i32
    %c0_i32_1 = arith.constant 0 : i32
    return %c0_i32, %c0_i32_0 : i32, i32
  }
  func.func @transform_2(%arg0: i32) -> (i32, i32) {
    %c0_i32 = arith.constant 0 : i32
    %c0_i32_0 = arith.constant 0 : i32
    %c0_i32_1 = arith.constant 0 : i32
    return %c0_i32, %c0_i32_0 : i32, i32
  }
  func.func @transform_3(%arg0: i32) -> (i32, i32) {
    %c0_i32 = arith.constant 0 : i32
    %c0_i32_0 = arith.constant 0 : i32
    %c0_i32_1 = arith.constant 0 : i32
    return %c0_i32, %c0_i32_0 : i32, i32
  }
  func.func @transform_4(%arg0: i32) -> (i32, i32) {
    %c0_i32 = arith.constant 0 : i32
    %c0_i32_0 = arith.constant 0 : i32
    return %arg0, %c0_i32 : i32, i32
  }
  func.func @transform_5(%arg0: i32) -> (i32, i32, i32) {
    %c0_i32 = arith.constant 0 : i32
    %c0_i32_0 = arith.constant 0 : i32
    %c0_i32_1 = arith.constant 0 : i32
    return %arg0, %c0_i32, %c0_i32_0 : i32, i32, i32
  }
}

</mosaic_0001>

<bundles_post_ra>
// kernel: bottleneck_forward.4
= control target key start
LH: loop header
LB: loop body
LE: loop exit
PB: predicated region body
PF: predicated region fallthrough
CT: control target
= control target key end

     0   :  { %s1143_s12 = smov 0   ;;  %s1145_s13 = smov 0   ;;  %s1498_s0 = inlined_call_operand.vmem [shape: f32[2,128,256], index: 0, kind: input, shape index: {}]   ;;  %s1499_s1 = inlined_call_operand.vmem [shape: f32[128,32], index: 1, kind: input, shape index: {}]   ;;  %s1500_s2 = inlined_call_operand.vmem [shape: f32[2,256,32], index: 2, kind: output, shape index: {0}]   ;;  %s1501_s3 = inlined_call_operand.vmem [shape: f32[2,1,2,32], index: 3, kind: output, shape index: {1}]  }
   0x1   :  { %s1147_s14 = smov 0  }
   0x2 LB: > { %s26_s15 = sadd.s32 1, %s1117_s13  ;;  %p905_p0 = scmp.ge.s32.totalorder %s1121_s14, 1  ;;  %s1121_s14 = sphi %s1147_s14, %s14_s14   ;;  %s1117_s13 = sphi %s1145_s13, %s1503_s13   ;;  %s1113_s12 = sphi %s1143_s12, %s1502_s12  }
   0x3   : > { %p28_p1 = scmp.ge.s32.totalorder %s26_s15, 2  ;;  %p163_p2 = scmp.lt.s32.totalorder %s1121_s14, 3 }
   0x5   : > { %s1505_s15 = smov (%p28_p1, %s26_s15), 0  ;;  %p164_p3 = pnand %p905_p0, %p163_p2 }
   0x6   : > { %p203_p4 = scmp.lt.s32.totalorder (!%p164_p3), %s1113_s12, 1 }
   0x7   : > { %167 = sbr.rel (%p164_p3) target bundleno = 452 (0x1c4), region = 28 }
   0xc   : > { %v340_v0 = vld [vmem:[%s1499_s1 + $0x78] sm:$0xff]  ;;  %v339_v1 = vld [vmem:[%s1499_s1 + $0x70] sm:$0xff]  ;;  %s1507_s12 = smov (!%p203_p4, %s1113_s12), 1  ;;  %v338_v2 = vld [vmem:[%s1499_s1 + $0x68] sm:$0xff]  ;;  %vm566_vm0 = vcmask 261120   ;;  %vm769_vm1 = vcmask 1040384  }
   0xd   : > { %963 = vmatprep.subr.mxu0 %v340_v0  ;;  %1043 = vmatprep.subr.mxu1 %v340_v0  ;;  %s913_s22 = sshll.u32 %s1507_s12, 8  ;;  %v337_v3 = vld [vmem:[%s1499_s1 + $0x60] sm:$0xff]  ;;  %v336_v5 = vld [vmem:[%s1499_s1 + $0x58] sm:$0xff]  ;;  %v335_v8 = vld [vmem:[%s1499_s1 + $0x50] sm:$0xff]  ;;  %vm771_vm2 = vcmask 254976  }
   0xe   : > { %964 = vmatpush3.msra.mxu0 %v340_v0  ;;  %1059 = vmatpush3.msra.mxu1 %v340_v0  ;;  %s1181_s27 = scalar_lea.vmem %s1498_s0, %s913_s22  ;;  %v334_v10 = vld [vmem:[%s1499_s1 + $0x48] sm:$0xff]  ;;  %v333_v12 = vld [vmem:[%s1499_s1 + $0x40] sm:$0xff]  ;;  %v332_v14 = vld [vmem:[%s1499_s1 + $0x38] sm:$0xff]  ;;  %s1256_s5 = scalar_lea.vmem %s1500_s2, %s913_s22 }
   0xf   : > { %965 = vmatprep.subr.mxu0 %v339_v1  ;;  %1044 = vmatprep.subr.mxu1 %v339_v1  ;;  %v229_v4 = vld [vmem:[%s1181_s27] sm:$0xff]  ;;  %v231_v6 = vld [vmem:[%s1181_s27 + $0x10] sm:$0xff]  ;;  %v230_v7 = vld [vmem:[%s1181_s27 + $0x8] sm:$0xff]  ;;  %s910_s22 = sshll.u32 %s1507_s12, 1 }
  0x10   : > { %966 = vmatpush3.msra.mxu0 %v339_v1  ;;  %1060 = vmatpush3.msra.mxu1 %v339_v1  ;;  %v232_v9 = vld [vmem:[%s1181_s27 + $0x18] sm:$0xff]  ;;  %v233_v11 = vld [vmem:[%s1181_s27 + $0x20] sm:$0xff]  ;;  %v234_v13 = vld [vmem:[%s1181_s27 + $0x28] sm:$0xff]  ;;  %s228_s8 = scalar_lea.vmem %s1501_s3, %s910_s22 }
  0x11   : > { %967 = vmatprep.subr.mxu0 %v338_v2  ;;  %1045 = vmatprep.subr.mxu1 %v338_v2  ;;  %v235_v15 = vld [vmem:[%s1181_s27 + $0x30] sm:$0xff]  ;;  %v236_v17 = vld [vmem:[%s1181_s27 + $0x38] sm:$0xff]  ;;  %v330_v18 = vld [vmem:[%s1499_s1 + $0x28] sm:$0xff] }
  0x12   : > { %968 = vmatpush3.msra.mxu0 %v338_v2  ;;  %1061 = vmatpush3.msra.mxu1 %v338_v2  ;;  %v331_v16 = vld [vmem:[%s1499_s1 + $0x30] sm:$0xff]  ;;  %v237_v19 = vld [vmem:[%s1181_s27 + $0x40] sm:$0xff]  ;;  %v238_v21 = vld [vmem:[%s1181_s27 + $0x48] sm:$0xff] }
  0x13   : > { %261 = vxpose.xlu0.b32.start [1/16] %v229_v4, 128  ;;  %969 = vmatprep.subr.mxu0 %v337_v3  ;;  %v329_v20 = vld [vmem:[%s1499_s1 + $0x20] sm:$0xff]  ;;  %v328_v22 = vld [vmem:[%s1499_s1 + $0x18] sm:$0xff]  ;;  %v239_v23 = vld [vmem:[%s1181_s27 + $0x50] sm:$0xff] }
  0x14   : > { %970 = vmatpush3.msra.mxu0 %v337_v3  ;;  %1046 = vmatprep.subr.mxu1 %v337_v3  ;;  %v327_v24 = vld [vmem:[%s1499_s1 + $0x10] sm:$0xff]  ;;  %v240_v25 = vld [vmem:[%s1181_s27 + $0x58] sm:$0xff]  ;;  %v326_v26 = vld [vmem:[%s1499_s1 + $0x8] sm:$0xff] }
  0x15   : > { %293 = vxpose.xlu1.b32.start [1/16] %v230_v7, 128  ;;  %971 = vmatprep.subr.mxu0 %v336_v5  ;;  %v241_v27 = vld [vmem:[%s1181_s27 + $0x60] sm:$0xff]  ;;  %v242_v29 = vld [vmem:[%s1181_s27 + $0x68] sm:$0xff]  ;;  %v243_v30 = vld [vmem:[%s1181_s27 + $0x70] sm:$0xff] }
  0x16   : > { %972 = vmatpush3.msra.mxu0 %v336_v5  ;;  %1062 = vmatpush3.msra.mxu1 %v337_v3  ;;  %v325_v28 = vld [vmem:[%s1499_s1] sm:$0xff]  ;;  %v244_v31 = vld [vmem:[%s1181_s27 + $0x78] sm:$0xff]  ;;  %v246_v33 = vld [vmem:[%s1181_s27 + $0x88] sm:$0xff] }
  0x17   : > { %262 = vxpose.xlu0.b32.cont [2/16] %v231_v6, 128  ;;  %973 = vmatprep.subr.mxu0 %v335_v8  ;;  %v245_v32 = vld [vmem:[%s1181_s27 + $0x80] sm:$0xff]  ;;  %v247_v34 = vld [vmem:[%s1181_s27 + $0x90] sm:$0xff]  ;;  %v248_v35 = vld [vmem:[%s1181_s27 + $0x98] sm:$0xff] }
  0x18   : > { %974 = vmatpush3.msra.mxu0 %v335_v8  ;;  %1047 = vmatprep.subr.mxu1 %v336_v5  ;;  %v249_v36 = vld [vmem:[%s1181_s27 + $0xa0] sm:$0xff]  ;;  %v250_v37 = vld [vmem:[%s1181_s27 + $0xa8] sm:$0xff]  ;;  %v251_v38 = vld [vmem:[%s1181_s27 + $0xb0] sm:$0xff] }
  0x19   : > { %294 = vxpose.xlu1.b32.cont [2/16] %v232_v9, 128  ;;  %975 = vmatprep.subr.mxu0 %v334_v10  ;;  %v252_v39 = vld [vmem:[%s1181_s27 + $0xb8] sm:$0xff]  ;;  %v253_v40 = vld [vmem:[%s1181_s27 + $0xc0] sm:$0xff]  ;;  %v254_v41 = vld [vmem:[%s1181_s27 + $0xc8] sm:$0xff] }
  0x1a   : > { %976 = vmatpush3.msra.mxu0 %v334_v10  ;;  %1063 = vmatpush3.msra.mxu1 %v336_v5  ;;  %v255_v42 = vld [vmem:[%s1181_s27 + $0xd0] sm:$0xff]  ;;  %v256_v43 = vld [vmem:[%s1181_s27 + $0xd8] sm:$0xff]  ;;  %v257_v44 = vld [vmem:[%s1181_s27 + $0xe0] sm:$0xff] }
  0x1b   : > { %263 = vxpose.xlu0.b32.cont [3/16] %v233_v11, 128  ;;  %977 = vmatprep.subr.mxu0 %v333_v12  ;;  %v258_v45 = vld [vmem:[%s1181_s27 + $0xe8] sm:$0xff]  ;;  %v259_v46 = vld [vmem:[%s1181_s27 + $0xf0] sm:$0xff]  ;;  %v260_v47 = vld [vmem:[%s1181_s27 + $0xf8] sm:$0xff] }
  0x1c   : > { %978 = vmatpush3.msra.mxu0 %v333_v12  ;;  %1048 = vmatprep.subr.mxu1 %v335_v8 }
  0x1d   : > { %295 = vxpose.xlu1.b32.cont [3/16] %v234_v13, 128  ;;  %979 = vmatprep.subr.mxu0 %v332_v14 }
  0x1e   : > { %980 = vmatpush3.msra.mxu0 %v332_v14  ;;  %1064 = vmatpush3.msra.mxu1 %v335_v8 }
  0x1f   : > { %264 = vxpose.xlu0.b32.cont [4/16] %v235_v15, 128  ;;  %981 = vmatprep.subr.mxu0 %v331_v16 }
  0x20   : > { %982 = vmatpush3.msra.mxu0 %v331_v16  ;;  %1049 = vmatprep.subr.mxu1 %v334_v10 }
  0x21   : > { %296 = vxpose.xlu1.b32.cont [4/16] %v236_v17, 128  ;;  %983 = vmatprep.subr.mxu0 %v330_v18 }
  0x22   : > { %984 = vmatpush3.msra.mxu0 %v330_v18  ;;  %1065 = vmatpush3.msra.mxu1 %v334_v10 }
  0x23   : > { %265 = vxpose.xlu0.b32.cont [5/16] %v237_v19, 128  ;;  %985 = vmatprep.subr.mxu0 %v329_v20 }
  0x24   : > { %986 = vmatpush3.msra.mxu0 %v329_v20  ;;  %1050 = vmatprep.subr.mxu1 %v333_v12 }
  0x25   : > { %297 = vxpose.xlu1.b32.cont [5/16] %v238_v21, 128  ;;  %987 = vmatprep.subr.mxu0 %v328_v22 }
  0x26   : > { %988 = vmatpush3.msra.mxu0 %v328_v22  ;;  %1066 = vmatpush3.msra.mxu1 %v333_v12 }
  0x27   : > { %266 = vxpose.xlu0.b32.cont [6/16] %v239_v23, 128  ;;  %989 = vmatprep.subr.mxu0 %v327_v24 }
  0x28   : > { %990 = vmatpush3.msra.mxu0 %v327_v24  ;;  %1051 = vmatprep.subr.mxu1 %v332_v14 }
  0x29   : > { %298 = vxpose.xlu1.b32.cont [6/16] %v240_v25, 128  ;;  %991 = vmatprep.subr.mxu0 %v326_v26 }
  0x2a   : > { %992 = vmatpush3.msra.mxu0 %v326_v26  ;;  %1067 = vmatpush3.msra.mxu1 %v332_v14 }
  0x2b   : > { %267 = vxpose.xlu0.b32.cont [7/16] %v241_v27, 128  ;;  %993 = vmatprep.subr.mxu0 %v325_v28 }
  0x2c   : > { %994 = vmatpush3.msra.mxu0 %v325_v28  ;;  %1052 = vmatprep.subr.mxu1 %v331_v16 }
  0x2d   : > { %299 = vxpose.xlu1.b32.cont [7/16] %v242_v29, 128  ;;  %1068 = vmatpush3.msra.mxu1 %v331_v16 }
  0x2e   : > { %1053 = vmatprep.subr.mxu1 %v330_v18 }
  0x2f   : > { %268 = vxpose.xlu0.b32.cont [8/16] %v243_v30, 128  ;;  %1069 = vmatpush3.msra.mxu1 %v330_v18 }
  0x30   : > { %1054 = vmatprep.subr.mxu1 %v329_v20 }
  0x31   : > { %300 = vxpose.xlu1.b32.cont [8/16] %v244_v31, 128  ;;  %1070 = vmatpush3.msra.mxu1 %v329_v20 }
  0x32   : > { %1055 = vmatprep.subr.mxu1 %v328_v22 }
  0x33   : > { %269 = vxpose.xlu0.b32.cont [9/16] %v245_v32, 128  ;;  %1071 = vmatpush3.msra.mxu1 %v328_v22 }
  0x34   : > { %1056 = vmatprep.subr.mxu1 %v327_v24 }
  0x35   : > { %301 = vxpose.xlu1.b32.cont [9/16] %v246_v33, 128  ;;  %1072 = vmatpush3.msra.mxu1 %v327_v24 }
  0x36   : > { %1057 = vmatprep.subr.mxu1 %v326_v26 }
  0x37   : > { %270 = vxpose.xlu0.b32.cont [10/16] %v247_v34, 128  ;;  %1073 = vmatpush3.msra.mxu1 %v326_v26 }
  0x38   : > { %1058 = vmatprep.subr.mxu1 %v325_v28 }
  0x39   : > { %302 = vxpose.xlu1.b32.cont [10/16] %v248_v35, 128  ;;  %1074 = vmatpush3.msra.mxu1 %v325_v28 }
  0x3b   : > { %271 = vxpose.xlu0.b32.cont [11/16] %v249_v36, 128 }
  0x3d   : > { %303 = vxpose.xlu1.b32.cont [11/16] %v250_v37, 128 }
  0x3f   : > { %272 = vxpose.xlu0.b32.cont [12/16] %v251_v38, 128 }
  0x41   : > { %304 = vxpose.xlu1.b32.cont [12/16] %v252_v39, 128 }
  0x43   : > { %273 = vxpose.xlu0.b32.cont [13/16] %v253_v40, 128 }
  0x45   : > { %305 = vxpose.xlu1.b32.cont [13/16] %v254_v41, 128 }
  0x47   : > { %274 = vxpose.xlu0.b32.cont [14/16] %v255_v42, 128 }
  0x49   : > { %306 = vxpose.xlu1.b32.cont [14/16] %v256_v43, 128 }
  0x4b   : > { %275 = vxpose.xlu0.b32.cont [15/16] %v257_v44, 128 }
  0x4d   : > { %307 = vxpose.xlu1.b32.cont [15/16] %v258_v45, 128 }
  0x4f   : > { %276 = vxpose.xlu0.b32.end [16/16] %v259_v46, 128 }
  0x51   : > { %308 = vxpose.xlu1.b32.end [16/16] %v260_v47, 128 }
  0x8f   : > { %v277_v48 = vpop.trf.xlu0 }
  0x90   : > { %995 = vmatprep.mubr.f32.mxu0 %v277_v48 }
  0x91   : > { %v309_v49 = vpop.trf.xlu1 }
  0x92   : > { %1019 = vmatprep.mubr.f32.mxu1 %v309_v49 }
  0x93   : > { %v278_v50 = vpop.trf.xlu0 }
  0x94   : > { %996 = vmatmul.mubr.f32.vlgmr.msra.gmra.mxu0 %v278_v50 }
  0x95   : > { %v310_v51 = vpop.trf.xlu1 }
  0x96   : > { %1020 = vmatmul.mubr.f32.vlgmr.msra.gmra.mxu1 %v310_v51 }
  0x97   : > { %v279_v52 = vpop.trf.xlu0 }
  0x98   : > { %998 = vmatprep.mubr.f32.mxu0 %v279_v52 }
  0x99   : > { %v311_v53 = vpop.trf.xlu1 }
  0x9a   : > { %1022 = vmatprep.mubr.f32.mxu1 %v311_v53 }
  0x9b   : > { %v280_v54 = vpop.trf.xlu0 }
  0x9c   : > { %999 = vmatmul.mubr.f32.gmra.mxu0 %v280_v54 }
  0x9d   : > { %v312_v55 = vpop.trf.xlu1 }
  0x9e   : > { %1023 = vmatmul.mubr.f32.gmra.mxu1 %v312_v55 }
  0x9f   : > { %v281_v56 = vpop.trf.xlu0 }
  0xa0   : > { %1001 = vmatprep.mubr.f32.mxu0 %v281_v56 }
  0xa1   : > { %v313_v57 = vpop.trf.xlu1 }
  0xa2   : > { %1025 = vmatprep.mubr.f32.mxu1 %v313_v57 }
  0xa3   : > { %v282_v58 = vpop.trf.xlu0 }
  0xa4   : > { %1002 = vmatmul.mubr.f32.gmra.mxu0 %v282_v58 }
  0xa5   : > { %v314_v59 = vpop.trf.xlu1 }
  0xa6   : > { %1026 = vmatmul.mubr.f32.gmra.mxu1 %v314_v59 }
  0xa7   : > { %v283_v60 = vpop.trf.xlu0 }
  0xa8   : > { %1004 = vmatprep.mubr.f32.mxu0 %v283_v60 }
  0xa9   : > { %v315_v61 = vpop.trf.xlu1 }
  0xaa   : > { %1028 = vmatprep.mubr.f32.mxu1 %v315_v61 }
  0xab   : > { %v284_v62 = vpop.trf.xlu0 }
  0xac   : > { %1005 = vmatmul.mubr.f32.gmra.mxu0 %v284_v62 }
  0xad   : > { %v316_v63 = vpop.trf.xlu1 }
  0xae   : > { %1029 = vmatmul.mubr.f32.gmra.mxu1 %v316_v63 }
  0xaf   : > { %v285_v0 = vpop.trf.xlu0 }
  0xb0   : > { %1007 = vmatprep.mubr.f32.mxu0 %v285_v0 }
  0xb1   : > { %v317_v1 = vpop.trf.xlu1 }
  0xb2   : > { %1031 = vmatprep.mubr.f32.mxu1 %v317_v1 }
  0xb3   : > { %v286_v2 = vpop.trf.xlu0 }
  0xb4   : > { %1008 = vmatmul.mubr.f32.gmra.mxu0 %v286_v2 }
  0xb5   : > { %v318_v3 = vpop.trf.xlu1 }
  0xb6   : > { %1032 = vmatmul.mubr.f32.gmra.mxu1 %v318_v3 }
  0xb7   : > { %v287_v4 = vpop.trf.xlu0 }
  0xb8   : > { %1010 = vmatprep.mubr.f32.mxu0 %v287_v4 }
  0xb9   : > { %v319_v5 = vpop.trf.xlu1 }
  0xba   : > { %1034 = vmatprep.mubr.f32.mxu1 %v319_v5 }
  0xbb   : > { %v288_v6 = vpop.trf.xlu0 }
  0xbc   : > { %1011 = vmatmul.mubr.f32.gmra.mxu0 %v288_v6 }
  0xbd   : > { %v320_v7 = vpop.trf.xlu1 }
  0xbe   : > { %1035 = vmatmul.mubr.f32.gmra.mxu1 %v320_v7 }
  0xbf   : > { %v289_v8 = vpop.trf.xlu0 }
  0xc0   : > { %1013 = vmatprep.mubr.f32.mxu0 %v289_v8 }
  0xc1   : > { %v321_v9 = vpop.trf.xlu1 }
  0xc2   : > { %1037 = vmatprep.mubr.f32.mxu1 %v321_v9 }
  0xc3   : > { %v290_v10 = vpop.trf.xlu0 }
  0xc4   : > { %1014 = vmatmul.mubr.f32.gmra.mxu0 %v290_v10 }
  0xc5   : > { %v322_v11 = vpop.trf.xlu1 }
  0xc6   : > { %1038 = vmatmul.mubr.f32.gmra.mxu1 %v322_v11 }
  0xc7   : > { %v291_v12 = vpop.trf.xlu0 }
  0xc8   : > { %1016 = vmatprep.mubr.f32.mxu0 %v291_v12 }
  0xc9   : > { %v323_v13 = vpop.trf.xlu1 }
  0xca   : > { %1040 = vmatprep.mubr.f32.mxu1 %v323_v13 }
  0xcb   : > { %v292_v14 = vpop.trf.xlu0 }
  0xcc   : > { %1017 = vmatmul.mubr.f32.gmra.mxu0 %v292_v14 }
  0xcd   : > { %v324_v15 = vpop.trf.xlu1 }
  0xce   : > { %1041 = vmatmul.mubr.f32.gmra.mxu1 %v324_v15 }
 0x154   : > { %v997_v16 = vpop.f32.mrf.mxu0 }
 0x155   : > { %568 = vst.msk [vmem:[%s1256_s5 + $0x8] sm:$0xff] %vm566_vm0, %v997_v16  ;;  %v669_v29 = vmul.f32 %v997_v16, %v997_v16  ;;  %v600_v33 = vsel %vm566_vm0, %v997_v16, 0.0 }
 0x156   : > { %v407_v17 = vpop.f32.mrf.mxu0  ;;  %v1260_v18 = vpop.f32.mrf.mxu1 }
 0x157   : > { %567 = vst.msk [vmem:[%s1256_s5] sm:$0xff] %vm566_vm0, %v407_v17  ;;  %584 = vst.msk [vmem:[%s1256_s5 + $0x88] sm:$0xff] %vm566_vm0, %v1260_v18  ;;  %v1269_v19 = vsel %vm566_vm0, %v1260_v18, 0.0  ;;  %v668_v26 = vmul.f32 %v407_v17, %v407_v17  ;;  %v599_v30 = vsel %vm566_vm0, %v407_v17, 0.0  ;;  %v701_v37 = vsel %vm566_vm0, %v669_v29, 0.0 }
 0x158   : > { %v1271_v20 = vpop.f32.mrf.mxu1  ;;  %v601_v36 = vadd.f32 %v600_v33, %v599_v30 }
 0x159   : > { %583 = vst.msk [vmem:[%s1256_s5 + $0x80] sm:$0xff] %vm566_vm0, %v1271_v20  ;;  %v700_v34 = vsel %vm566_vm0, %v668_v26, 0.0 }
 0x15a   : > { %v702_v39 = vadd.f32 %v701_v37, %v700_v34 }
 0x15c   : > { %v1000_v21 = vpop.f32.mrf.mxu0 }
 0x15d   : > { %570 = vst.msk [vmem:[%s1256_s5 + $0x18] sm:$0xff] %vm566_vm0, %v1000_v21  ;;  %v671_v42 = vmul.f32 %v1000_v21, %v1000_v21  ;;  %v604_v47 = vsel %vm566_vm0, %v1000_v21, 0.0 }
 0x15e   : > { %v417_v22 = vpop.f32.mrf.mxu0  ;;  %v1278_v23 = vpop.f32.mrf.mxu1 }
 0x15f   : > { %569 = vst.msk [vmem:[%s1256_s5 + $0x10] sm:$0xff] %vm566_vm0, %v417_v22  ;;  %586 = vst.msk [vmem:[%s1256_s5 + $0x98] sm:$0xff] %vm566_vm0, %v1278_v23  ;;  %v670_v31 = vmul.f32 %v417_v22, %v417_v22  ;;  %v602_v35 = vsel %vm566_vm0, %v417_v22, 0.0  ;;  %v705_v51 = vsel %vm566_vm0, %v671_v42, 0.0 }
 0x160   : > { %v1285_v24 = vpop.f32.mrf.mxu1  ;;  %v603_v40 = vadd.f32 %v602_v35, %v601_v36 }
 0x161   : > { %585 = vst.msk [vmem:[%s1256_s5 + $0x90] sm:$0xff] %vm566_vm0, %v1285_v24  ;;  %v703_v38 = vsel %vm566_vm0, %v670_v31, 0.0 }
 0x162   : > { %v704_v44 = vadd.f32 %v703_v38, %v702_v39  ;;  %v605_v49 = vadd.f32 %v604_v47, %v603_v40 }
 0x164   : > { %v1003_v25 = vpop.f32.mrf.mxu0  ;;  %v706_v54 = vadd.f32 %v705_v51, %v704_v44 }
 0x165   : > { %572 = vst.msk [vmem:[%s1256_s5 + $0x28] sm:$0xff] %vm566_vm0, %v1003_v25  ;;  %v673_v55 = vmul.f32 %v1003_v25, %v1003_v25  ;;  %v608_v59 = vsel %vm566_vm0, %v1003_v25, 0.0 }
 0x166   : > { %v427_v27 = vpop.f32.mrf.mxu0  ;;  %v1292_v28 = vpop.f32.mrf.mxu1 }
 0x167   : > { %571 = vst.msk [vmem:[%s1256_s5 + $0x20] sm:$0xff] %vm566_vm0, %v427_v27  ;;  %588 = vst.msk [vmem:[%s1256_s5 + $0xa8] sm:$0xff] %vm566_vm0, %v1292_v28  ;;  %v672_v43 = vmul.f32 %v427_v27, %v427_v27  ;;  %v606_v48 = vsel %vm566_vm0, %v427_v27, 0.0  ;;  %v709_v0 = vsel %vm566_vm0, %v673_v55, 0.0 }
 0x168   : > { %v1300_v32 = vpop.f32.mrf.mxu1  ;;  %v607_v53 = vadd.f32 %v606_v48, %v605_v49 }
 0x169   : > { %587 = vst.msk [vmem:[%s1256_s5 + $0xa0] sm:$0xff] %vm566_vm0, %v1300_v32  ;;  %v707_v52 = vsel %vm566_vm0, %v672_v43, 0.0 }
 0x16a   : > { %v708_v57 = vadd.f32 %v707_v52, %v706_v54  ;;  %v609_v61 = vadd.f32 %v608_v59, %v607_v53 }
 0x16c   : > { %v1006_v41 = vpop.f32.mrf.mxu0  ;;  %v710_v3 = vadd.f32 %v709_v0, %v708_v57 }
 0x16d   : > { %574 = vst.msk [vmem:[%s1256_s5 + $0x38] sm:$0xff] %vm566_vm0, %v1006_v41  ;;  %v675_v5 = vmul.f32 %v1006_v41, %v1006_v41  ;;  %v612_v8 = vsel %vm566_vm0, %v1006_v41, 0.0 }
 0x16e   : > { %v437_v45 = vpop.f32.mrf.mxu0  ;;  %v1312_v46 = vpop.f32.mrf.mxu1 }
 0x16f   : > { %573 = vst.msk [vmem:[%s1256_s5 + $0x30] sm:$0xff] %vm566_vm0, %v437_v45  ;;  %590 = vst.msk [vmem:[%s1256_s5 + $0xb8] sm:$0xff] %vm566_vm0, %v1312_v46  ;;  %v674_v56 = vmul.f32 %v437_v45, %v437_v45  ;;  %v610_v60 = vsel %vm566_vm0, %v437_v45, 0.0  ;;  %v713_v12 = vsel %vm566_vm0, %v675_v5, 0.0 }
 0x170   : > { %v1321_v50 = vpop.f32.mrf.mxu1  ;;  %v611_v2 = vadd.f32 %v610_v60, %v609_v61 }
 0x171   : > { %589 = vst.msk [vmem:[%s1256_s5 + $0xb0] sm:$0xff] %vm566_vm0, %v1321_v50  ;;  %v711_v1 = vsel %vm566_vm0, %v674_v56, 0.0 }
 0x172   : > { %v712_v7 = vadd.f32 %v711_v1, %v710_v3  ;;  %v613_v10 = vadd.f32 %v612_v8, %v611_v2  ;;  %v684_v3 = vmul.f32 %v1271_v20, %v1271_v20 }
 0x174   : > { %v1009_v58 = vpop.f32.mrf.mxu0  ;;  %v714_v15 = vadd.f32 %v713_v12, %v712_v7 }
 0x175   : > { %576 = vst.msk [vmem:[%s1256_s5 + $0x48] sm:$0xff] %vm566_vm0, %v1009_v58  ;;  %v677_v21 = vmul.f32 %v1009_v58, %v1009_v58  ;;  %v616_v27 = vsel %vm566_vm0, %v1009_v58, 0.0 }
 0x176   : > { %v447_v62 = vpop.f32.mrf.mxu0  ;;  %v1332_v63 = vpop.f32.mrf.mxu1 }
 0x177   : > { %575 = vst.msk [vmem:[%s1256_s5 + $0x40] sm:$0xff] %vm566_vm0, %v447_v62  ;;  %592 = vst.msk [vmem:[%s1256_s5 + $0xc8] sm:$0xff] %vm566_vm0, %v1332_v63  ;;  %v676_v6 = vmul.f32 %v447_v62, %v447_v62  ;;  %v614_v9 = vsel %vm566_vm0, %v447_v62, 0.0  ;;  %v717_v31 = vsel %vm566_vm0, %v677_v21, 0.0 }
 0x178   : > { %v1341_v4 = vpop.f32.mrf.mxu1  ;;  %v615_v14 = vadd.f32 %v614_v9, %v613_v10  ;;  %v685_v9 = vmul.f32 %v1260_v18, %v1260_v18  ;;  %v630_v10 = vsel %vm566_vm0, %v1271_v20, 0.0  ;;  %v687_v18 = vmul.f32 %v1278_v23, %v1278_v23 }
 0x179   : > { %591 = vst.msk [vmem:[%s1256_s5 + $0xc0] sm:$0xff] %vm566_vm0, %v1341_v4  ;;  %v715_v13 = vsel %vm566_vm0, %v676_v6, 0.0  ;;  %v634_v20 = vsel %vm566_vm0, %v1285_v24, 0.0 }
 0x17a   : > { %v716_v25 = vadd.f32 %v715_v13, %v714_v15  ;;  %v617_v30 = vadd.f32 %v616_v27, %v615_v14  ;;  %v731_v14 = vsel %vm566_vm0, %v684_v3, 0.0  ;;  %v686_v15 = vmul.f32 %v1285_v24, %v1285_v24 }
 0x17b   : > { %v638_v24 = vsel %vm566_vm0, %v1300_v32, 0.0 }
 0x17c   : > { %v1012_v11 = vpop.f32.mrf.mxu0  ;;  %v718_v35 = vadd.f32 %v717_v31, %v716_v25  ;;  %v688_v31 = vmul.f32 %v1300_v32, %v1300_v32  ;;  %v642_v32 = vsel %vm566_vm0, %v1321_v50, 0.0 }
 0x17d   : > { %578 = vst.msk [vmem:[%s1256_s5 + $0x58] sm:$0xff] %vm566_vm0, %v1012_v11  ;;  %v679_v37 = vmul.f32 %v1012_v11, %v1012_v11  ;;  %v620_v41 = vsel %vm566_vm0, %v1012_v11, 0.0 }
 0x17e   : > { %v457_v16 = vpop.f32.mrf.mxu0  ;;  %v1352_v17 = vpop.f32.mrf.mxu1 }
 0x17f   : > { %577 = vst.msk [vmem:[%s1256_s5 + $0x50] sm:$0xff] %vm566_vm0, %v457_v16  ;;  %v678_v22 = vmul.f32 %v457_v16, %v457_v16  ;;  %594 = vst.msk [vmem:[%s1256_s5 + $0xd8] sm:$0xff] %vm566_vm0, %v1352_v17  ;;  %v618_v29 = vsel %vm566_vm0, %v457_v16, 0.0  ;;  %v721_v47 = vsel %vm566_vm0, %v679_v37, 0.0 }
 0x180   : > { %v1359_v26 = vpop.f32.mrf.mxu1  ;;  %v619_v34 = vadd.f32 %v618_v29, %v617_v30  ;;  %v636_v29 = vsel %vm566_vm0, %v1278_v23, 0.0  ;;  %v735_v30 = vsel %vm566_vm0, %v686_v15, 0.0  ;;  %v640_v23 = vsel %vm566_vm0, %v1292_v28, 0.0 }
 0x181   : > { %593 = vst.msk [vmem:[%s1256_s5 + $0xd0] sm:$0xff] %vm566_vm0, %v1359_v26  ;;  %v719_v33 = vsel %vm566_vm0, %v678_v22, 0.0  ;;  %v733_v22 = vsel %vm566_vm0, %v685_v9, 0.0 }
 0x182   : > { %v720_v38 = vadd.f32 %v719_v33, %v718_v35  ;;  %v621_v44 = vadd.f32 %v620_v41, %v619_v34  ;;  %v737_v34 = vsel %vm566_vm0, %v687_v18, 0.0  ;;  %v689_v35 = vmul.f32 %v1292_v28, %v1292_v28 }
 0x183   : > { %v644_v28 = vsel %vm566_vm0, %v1312_v46, 0.0 }
 0x184   : > { %v1015_v36 = vpop.f32.mrf.mxu0  ;;  %v722_v51 = vadd.f32 %v721_v47, %v720_v38  ;;  %v739_v38 = vsel %vm566_vm0, %v688_v31, 0.0 }
 0x185   : > { %580 = vst.msk [vmem:[%s1256_s5 + $0x68] sm:$0xff] %vm566_vm0, %v1015_v36  ;;  %v681_v52 = vmul.f32 %v1015_v36, %v1015_v36  ;;  %v624_v55 = vsel %vm566_vm0, %v1015_v36, 0.0 }
 0x186   : > { %v467_v39 = vpop.f32.mrf.mxu0  ;;  %v1370_v40 = vpop.f32.mrf.mxu1 }
 0x187   : > { %579 = vst.msk [vmem:[%s1256_s5 + $0x60] sm:$0xff] %vm566_vm0, %v467_v39  ;;  %v622_v42 = vsel %vm566_vm0, %v467_v39, 0.0  ;;  %v680_v43 = vmul.f32 %v467_v39, %v467_v39  ;;  %596 = vst.msk [vmem:[%s1256_s5 + $0xe8] sm:$0xff] %vm566_vm0, %v1370_v40  ;;  %v725_v59 = vsel %vm566_vm0, %v681_v52, 0.0  ;;  %v690_v39 = vmul.f32 %v1321_v50, %v1321_v50 }
 0x188   : > { %v1379_v45 = vpop.f32.mrf.mxu1  ;;  %v623_v49 = vadd.f32 %v622_v42, %v621_v44  ;;  %v691_v44 = vmul.f32 %v1312_v46, %v1312_v46  ;;  %v646_v50 = vsel %vm566_vm0, %v1341_v4, 0.0  ;;  %v648_v46 = vsel %vm566_vm0, %v1332_v63, 0.0 }
 0x189   : > { %v723_v48 = vsel %vm566_vm0, %v680_v43, 0.0  ;;  %595 = vst.msk [vmem:[%s1256_s5 + $0xe0] sm:$0xff] %vm566_vm0, %v1379_v45  ;;  %v741_v43 = vsel %vm566_vm0, %v689_v35, 0.0 }
 0x18a   : > { %v724_v53 = vadd.f32 %v723_v48, %v722_v51  ;;  %v625_v57 = vadd.f32 %v624_v55, %v623_v49  ;;  %v743_v49 = vsel %vm566_vm0, %v690_v39, 0.0  ;;  %v692_v51 = vmul.f32 %v1341_v4, %v1341_v4 }
 0x18b   : > { %v693_v55 = vmul.f32 %v1332_v63, %v1332_v63  ;;  %v650_v4 = vsel %vm566_vm0, %v1359_v26, 0.0  ;;  %v652_v63 = vsel %vm566_vm0, %v1352_v17, 0.0 }
 0x18c   : > { %v1018_v54 = vpop.f32.mrf.mxu0  ;;  %v726_v1 = vadd.f32 %v725_v59, %v724_v53  ;;  %v747_v59 = vsel %vm566_vm0, %v692_v51, 0.0 }
 0x18d   : > { %582 = vst.msk [vmem:[%s1256_s5 + $0x78] sm:$0xff] %vm566_vm0, %v1018_v54  ;;  %v683_v60 = vmul.f32 %v1018_v54, %v1018_v54  ;;  %v628_v5 = vsel %vm566_vm0, %v1018_v54, 0.0  ;;  %v745_v54 = vsel %vm566_vm0, %v691_v44, 0.0 }
 0x18e   : > { %v477_v56 = vpop.f32.mrf.mxu0  ;;  %v1389_v58 = vpop.f32.mrf.mxu1 }
 0x18f   : > { %581 = vst.msk [vmem:[%s1256_s5 + $0x70] sm:$0xff] %vm566_vm0, %v477_v56  ;;  %v626_v61 = vsel %vm566_vm0, %v477_v56, 0.0  ;;  %v682_v62 = vmul.f32 %v477_v56, %v477_v56  ;;  %598 = vst.msk [vmem:[%s1256_s5 + $0xf8] sm:$0xff] %vm566_vm0, %v1389_v58  ;;  %v729_v11 = vsel %vm566_vm0, %v683_v60, 0.0  ;;  %v694_v60 = vmul.f32 %v1359_v26, %v1359_v26 }
 0x190   : > { %v627_v0 = vadd.f32 %v626_v61, %v625_v57  ;;  %v1398_v2 = vpop.f32.mrf.mxu1  ;;  %v654_v26 = vsel %vm566_vm0, %v1379_v45, 0.0  ;;  %v699_v18 = vmul.f32 %v1389_v58, %v1389_v58 }
 0x191   : > { %v727_v6 = vsel %vm566_vm0, %v682_v62, 0.0  ;;  %597 = vst.msk [vmem:[%s1256_s5 + $0xf0] sm:$0xff] %vm566_vm0, %v1398_v2  ;;  %v698_v15 = vmul.f32 %v1398_v2, %v1398_v2 }
 0x192   : > { %v629_v7 = vadd.f32 %v628_v5, %v627_v0  ;;  %v728_v8 = vadd.f32 %v727_v6, %v726_v1  ;;  %v749_v0 = vsel %vm566_vm0, %v693_v55, 0.0  ;;  %v695_v1 = vmul.f32 %v1352_v17, %v1352_v17 }
 0x193   : > { %v751_v6 = vsel %vm566_vm0, %v694_v60, 0.0  ;;  %v656_v17 = vsel %vm566_vm0, %v1370_v40, 0.0  ;;  %v761_v31 = vsel %vm566_vm0, %v699_v18, 0.0 }
 0x194   : > { %v631_v12 = vadd.f32 %v630_v10, %v629_v7  ;;  %v730_v13 = vadd.f32 %v729_v11, %v728_v8  ;;  %v696_v7 = vmul.f32 %v1379_v45, %v1379_v45  ;;  %v753_v10 = vsel %vm566_vm0, %v695_v1, 0.0 }
 0x195   : > { %v697_v11 = vmul.f32 %v1370_v40, %v1370_v40  ;;  %v658_v45 = vsel %vm566_vm0, %v1398_v2, 0.0  ;;  %v660_v40 = vsel %vm566_vm0, %v1389_v58, 0.0 }
 0x196   : > { %v633_v16 = vadd.f32 %v1269_v19, %v631_v12  ;;  %v732_v21 = vadd.f32 %v731_v14, %v730_v13  ;;  %v755_v14 = vsel %vm566_vm0, %v696_v7, 0.0 }
 0x198   : > { %v635_v25 = vadd.f32 %v634_v20, %v633_v16  ;;  %v734_v27 = vadd.f32 %v733_v22, %v732_v21  ;;  %v757_v22 = vsel %vm566_vm0, %v697_v11, 0.0 }
 0x19a   : > { %v637_v19 = vadd.f32 %v636_v29, %v635_v25  ;;  %v736_v33 = vadd.f32 %v735_v30, %v734_v27  ;;  %v759_v27 = vsel %vm566_vm0, %v698_v15, 0.0 }
 0x19c   : > { %v738_v36 = vadd.f32 %v737_v34, %v736_v33  ;;  %v639_v37 = vadd.f32 %v638_v24, %v637_v19 }
 0x19e   : > { %v641_v41 = vadd.f32 %v640_v23, %v639_v37  ;;  %v740_v42 = vadd.f32 %v739_v38, %v738_v36 }
 0x1a0   : > { %v643_v47 = vadd.f32 %v642_v32, %v641_v41  ;;  %v742_v48 = vadd.f32 %v741_v43, %v740_v42 }
 0x1a2   : > { %v645_v52 = vadd.f32 %v644_v28, %v643_v47  ;;  %v744_v53 = vadd.f32 %v743_v49, %v742_v48 }
 0x1a4   : > { %v647_v56 = vadd.f32 %v646_v50, %v645_v52  ;;  %v746_v57 = vadd.f32 %v745_v54, %v744_v53 }
 0x1a6   : > { %v748_v61 = vadd.f32 %v747_v59, %v746_v57  ;;  %v649_v62 = vadd.f32 %v648_v46, %v647_v56 }
 0x1a8   : > { %v651_v3 = vadd.f32 %v650_v4, %v649_v62  ;;  %v750_v5 = vadd.f32 %v749_v0, %v748_v61 }
 0x1aa   : > { %v752_v8 = vadd.f32 %v751_v6, %v750_v5  ;;  %v653_v9 = vadd.f32 %v652_v63, %v651_v3 }
 0x1ac   : > { %v655_v12 = vadd.f32 %v654_v26, %v653_v9  ;;  %v754_v13 = vadd.f32 %v753_v10, %v752_v8 }
 0x1ae   : > { %v756_v16 = vadd.f32 %v755_v14, %v754_v13  ;;  %v657_v21 = vadd.f32 %v656_v17, %v655_v12 }
 0x1b0   : > { %v659_v20 = vadd.f32 %v658_v45, %v657_v21  ;;  %v758_v25 = vadd.f32 %v757_v22, %v756_v16 }
 0x1b2   : > { %v661_v29 = vadd.f32 %v660_v40, %v659_v20  ;;  %v760_v30 = vadd.f32 %v759_v27, %v758_v25 }
 0x1b4   : > { %v662_v19 = vrot.slane %v661_v29, 4  ;;  %v762_v33 = vadd.f32 %v761_v31, %v760_v30 }
 0x1b6   : > { %v663_v34 = vadd.f32 %v662_v19, %v661_v29  ;;  %v763_v35 = vrot.slane %v762_v33, 4 }
 0x1b8   : > { %v664_v24 = vrot.slane %v663_v34, 2  ;;  %v764_v36 = vadd.f32 %v763_v35, %v762_v33 }
 0x1ba   : > { %v665_v37 = vadd.f32 %v664_v24, %v663_v34  ;;  %v765_v2 = vrot.slane %v764_v36, 2 }
 0x1bc   : > { %v666_v23 = vrot.slane %v665_v37, 1  ;;  %v766_v38 = vadd.f32 %v765_v2, %v764_v36 }
 0x1be   : > { %v767_v39 = vrot.slane %v766_v38, 1  ;;  %v667_v58 = vadd.f32 %v666_v23, %v665_v37 }
 0x1c0   : > { %v768_v41 = vadd.f32 %v767_v39, %v766_v38 }
 0x1c2   : > { %v770_v42 = vsel %vm769_vm1, %v667_v58, %v768_v41 }
 0x1c3   : > { %772 = vst.msk [vmem:[%s228_s8] sm:$0x3] %vm771_vm2, %v770_v42 }
 0x1c4 PF: > { %s14_s14 = sadd.s32 1, %s1121_s14   ;;  %s1502_s12 = smov %s1117_s13 }
 0x1c5   : > { %p11_p5 = scmp.ge.s32.totalorder %s14_s14, 4   ;;  %s1503_s13 = smov %s1505_s15 }
 0x1c7   :  { %13 = sbr.rel (!%p11_p5) target bundleno = 2 (0x2), region = 70 }

// kernel: bottleneck_forward.7
= control target key start
LH: loop header
LB: loop body
LE: loop exit
PB: predicated region body
PF: predicated region fallthrough
CT: control target
= control target key end

     0   :  { %s771_s15 = smov 0   ;;  %s773_s16 = smov 0   ;;  %s988_s0 = inlined_call_operand.vmem [shape: f32[2,256,128], index: 0, kind: input, shape index: {}]   ;;  %s989_s1 = inlined_call_operand.vmem [shape: f32[1,128], index: 1, kind: input, shape index: {}]   ;;  %s990_s2 = inlined_call_operand.vmem [shape: f32[1,128], index: 2, kind: input, shape index: {}]   ;;  %s991_s3 = inlined_call_operand.vmem [shape: f32[2,128,256], index: 3, kind: input, shape index: {}]   ;;  %s992_s4 = inlined_call_operand.vmem [shape: f32[2,128,256], index: 4, kind: output, shape index: {}]  }
   0x1   :  { %s775_s17 = smov 0  }
   0x2 LB: > { %s26_s18 = sadd.s32 1, %s740_s16  ;;  %p684_p0 = scmp.ge.s32.totalorder %s744_s17, 1  ;;  %s744_s17 = sphi %s775_s17, %s14_s17   ;;  %s740_s16 = sphi %s773_s16, %s994_s16   ;;  %s736_s15 = sphi %s771_s15, %s993_s15  }
   0x3   : > { %p28_p1 = scmp.ge.s32.totalorder %s26_s18, 2  ;;  %p200_p2 = scmp.lt.s32.totalorder %s744_s17, 3 }
   0x5   : > { %s996_s18 = smov (%p28_p1, %s26_s18), 0  ;;  %p201_p3 = pnand %p684_p0, %p200_p2 }
   0x6   : > { %p244_p4 = scmp.lt.s32.totalorder (!%p201_p3), %s736_s15, 1 }
   0x7   : > { %204 = sbr.rel (%p201_p3) target bundleno = 211 (0xd3), region = 36 }
   0xc   : > { %s998_s15 = smov (!%p244_p4, %s736_s15), 1  ;;  %v794_v0 = vld [vmem:[%s989_s1] ss:$0 sm:$0xff] }
   0xd   : > { %s789_s19 = sshll.u32 %s998_s15, 8  ;;  %v805_v1 = vld [vmem:[%s990_s2] ss:$0 sm:$0xff] }
   0xe   : > { %s800_s24 = scalar_lea.vmem %s988_s0, %s789_s19  ;;  %s907_s29 = scalar_lea.vmem %s991_s3, %s789_s19 }
   0xf   : > { %v289_v2 = vld [vmem:[%s800_s24 + $0x80] sm:$0xff]  ;;  %v290_v4 = vld [vmem:[%s800_s24 + $0x88] sm:$0xff]  ;;  %v291_v9 = vld [vmem:[%s800_s24 + $0x90] sm:$0xff]  ;;  %s915_s6 = scalar_lea.vmem %s992_s4, %s789_s19 }
  0x10   : > { %v273_v3 = vld [vmem:[%s800_s24] sm:$0xff]  ;;  %v328_v5 = vmul.f32 %v794_v0, %v289_v2  ;;  %v329_v7 = vmul.f32 %v794_v0, %v290_v4  ;;  %v274_v8 = vld [vmem:[%s800_s24 + $0x8] sm:$0xff]  ;;  %v275_v11 = vld [vmem:[%s800_s24 + $0x10] sm:$0xff]  ;;  %v330_v14 = vmul.f32 %v794_v0, %v291_v9 }
  0x11   : > { %v312_v6 = vmul.f32 %v794_v0, %v273_v3  ;;  %v313_v10 = vmul.f32 %v794_v0, %v274_v8  ;;  %v314_v17 = vmul.f32 %v794_v0, %v275_v11  ;;  %v292_v18 = vld [vmem:[%s800_s24 + $0x98] sm:$0xff]  ;;  %v293_v24 = vld [vmem:[%s800_s24 + $0xa0] sm:$0xff]  ;;  %v294_v30 = vld [vmem:[%s800_s24 + $0xa8] sm:$0xff] }
  0x12   : > { %v367_v12 = vadd.f32 %v805_v1, %v328_v5  ;;  %v368_v15 = vadd.f32 %v805_v1, %v329_v7  ;;  %v276_v19 = vld [vmem:[%s800_s24 + $0x18] sm:$0xff]  ;;  %v331_v20 = vmul.f32 %v794_v0, %v292_v18  ;;  %v369_v21 = vadd.f32 %v805_v1, %v330_v14  ;;  %v277_v25 = vld [vmem:[%s800_s24 + $0x20] sm:$0xff]  ;;  %v278_v31 = vld [vmem:[%s800_s24 + $0x28] sm:$0xff] }
  0x13   : > { %v351_v13 = vadd.f32 %v805_v1, %v312_v6  ;;  %v352_v16 = vadd.f32 %v805_v1, %v313_v10  ;;  %v353_v22 = vadd.f32 %v805_v1, %v314_v17  ;;  %v315_v23 = vmul.f32 %v794_v0, %v276_v19  ;;  %v295_v36 = vld [vmem:[%s800_s24 + $0xb0] sm:$0xff]  ;;  %v296_v42 = vld [vmem:[%s800_s24 + $0xb8] sm:$0xff]  ;;  %v297_v48 = vld [vmem:[%s800_s24 + $0xc0] sm:$0xff] }
  0x14   : > { %415 = vxpose.xlu1.b32.start [1/16] %v367_v12, 128  ;;  %v370_v26 = vadd.f32 %v805_v1, %v331_v20  ;;  %v332_v28 = vmul.f32 %v794_v0, %v293_v24  ;;  %v316_v29 = vmul.f32 %v794_v0, %v277_v25  ;;  %v333_v32 = vmul.f32 %v794_v0, %v294_v30  ;;  %v279_v37 = vld [vmem:[%s800_s24 + $0x30] sm:$0xff]  ;;  %v280_v43 = vld [vmem:[%s800_s24 + $0x38] sm:$0xff]  ;;  %v281_v49 = vld [vmem:[%s800_s24 + $0x40] sm:$0xff] }
  0x15   : > { %383 = vxpose.xlu0.b32.start [1/16] %v351_v13, 128  ;;  %v354_v27 = vadd.f32 %v805_v1, %v315_v23  ;;  %v317_v35 = vmul.f32 %v794_v0, %v278_v31  ;;  %v334_v38 = vmul.f32 %v794_v0, %v295_v36  ;;  %v318_v41 = vmul.f32 %v794_v0, %v279_v37  ;;  %v298_v54 = vld [vmem:[%s800_s24 + $0xc8] sm:$0xff]  ;;  %v299_v60 = vld [vmem:[%s800_s24 + $0xd0] sm:$0xff]  ;;  %v300_v4 = vld [vmem:[%s800_s24 + $0xd8] sm:$0xff] }
  0x16   : > { %v371_v33 = vadd.f32 %v805_v1, %v332_v28  ;;  %v355_v34 = vadd.f32 %v805_v1, %v316_v29  ;;  %v372_v39 = vadd.f32 %v805_v1, %v333_v32  ;;  %v335_v44 = vmul.f32 %v794_v0, %v296_v42  ;;  %v282_v55 = vld [vmem:[%s800_s24 + $0x48] sm:$0xff]  ;;  %v283_v61 = vld [vmem:[%s800_s24 + $0x50] sm:$0xff]  ;;  %v284_v5 = vld [vmem:[%s800_s24 + $0x58] sm:$0xff] }
  0x17   : > { %v356_v40 = vadd.f32 %v805_v1, %v317_v35  ;;  %v373_v45 = vadd.f32 %v805_v1, %v334_v38  ;;  %v357_v46 = vadd.f32 %v805_v1, %v318_v41  ;;  %v319_v47 = vmul.f32 %v794_v0, %v280_v43  ;;  %v301_v10 = vld [vmem:[%s800_s24 + $0xe0] sm:$0xff]  ;;  %v286_v17 = vld [vmem:[%s800_s24 + $0x68] sm:$0xff]  ;;  %v287_v23 = vld [vmem:[%s800_s24 + $0x70] sm:$0xff] }
  0x18   : > { %416 = vxpose.xlu1.b32.cont [2/16] %v368_v15, 128  ;;  %v374_v50 = vadd.f32 %v805_v1, %v335_v44  ;;  %v336_v52 = vmul.f32 %v794_v0, %v297_v48  ;;  %v320_v53 = vmul.f32 %v794_v0, %v281_v49  ;;  %v337_v56 = vmul.f32 %v794_v0, %v298_v54  ;;  %v285_v11 = vld [vmem:[%s800_s24 + $0x60] sm:$0xff]  ;;  %v304_v28 = vld [vmem:[%s800_s24 + $0xf8] sm:$0xff]  ;;  %v448_v36 = vld [vmem:[%s907_s29 + $0x8] sm:$0xff] }
  0x19   : > { %384 = vxpose.xlu0.b32.cont [2/16] %v352_v16, 128  ;;  %v358_v51 = vadd.f32 %v805_v1, %v319_v47  ;;  %v321_v59 = vmul.f32 %v794_v0, %v282_v55  ;;  %v338_v62 = vmul.f32 %v794_v0, %v299_v60  ;;  %v322_v3 = vmul.f32 %v794_v0, %v283_v61  ;;  %v302_v16 = vld [vmem:[%s800_s24 + $0xe8] sm:$0xff]  ;;  %v288_v29 = vld [vmem:[%s800_s24 + $0x78] sm:$0xff]  ;;  %v447_v37 = vld [vmem:[%s907_s29] sm:$0xff] }
  0x1a   : > { %v375_v57 = vadd.f32 %v805_v1, %v336_v52  ;;  %v359_v58 = vadd.f32 %v805_v1, %v320_v53  ;;  %v376_v63 = vadd.f32 %v805_v1, %v337_v56  ;;  %v339_v6 = vmul.f32 %v794_v0, %v300_v4  ;;  %v449_v41 = vld [vmem:[%s907_s29 + $0x10] sm:$0xff]  ;;  %v452_v48 = vld [vmem:[%s907_s29 + $0x28] sm:$0xff]  ;;  %v451_v49 = vld [vmem:[%s907_s29 + $0x20] sm:$0xff] }
  0x1b   : > { %v360_v2 = vadd.f32 %v805_v1, %v321_v59  ;;  %v377_v7 = vadd.f32 %v805_v1, %v338_v62  ;;  %v361_v8 = vadd.f32 %v805_v1, %v322_v3  ;;  %v323_v9 = vmul.f32 %v794_v0, %v284_v5  ;;  %v454_v56 = vld [vmem:[%s907_s29 + $0x38] sm:$0xff]  ;;  %v455_v3 = vld [vmem:[%s907_s29 + $0x40] sm:$0xff] }
  0x1c   : > { %417 = vxpose.xlu1.b32.cont [3/16] %v369_v21, 128  ;;  %v378_v12 = vadd.f32 %v805_v1, %v339_v6  ;;  %v340_v14 = vmul.f32 %v794_v0, %v301_v10  ;;  %v324_v15 = vmul.f32 %v794_v0, %v285_v11  ;;  %v341_v18 = vmul.f32 %v794_v0, %v302_v16  ;;  %v458_v10 = vld [vmem:[%s907_s29 + $0x58] sm:$0xff]  ;;  %v457_v11 = vld [vmem:[%s907_s29 + $0x50] sm:$0xff] }
  0x1d   : > { %385 = vxpose.xlu0.b32.cont [3/16] %v353_v22, 128  ;;  %v362_v13 = vadd.f32 %v805_v1, %v323_v9  ;;  %v325_v21 = vmul.f32 %v794_v0, %v286_v17  ;;  %v303_v22 = vld [vmem:[%s800_s24 + $0xf0] sm:$0xff]  ;;  %v343_v30 = vmul.f32 %v794_v0, %v304_v28 }
  0x1e   : > { %v379_v19 = vadd.f32 %v805_v1, %v340_v14  ;;  %v363_v20 = vadd.f32 %v805_v1, %v324_v15  ;;  %v342_v24 = vmul.f32 %v794_v0, %v303_v22  ;;  %v380_v25 = vadd.f32 %v805_v1, %v341_v18  ;;  %v460_v18 = vld [vmem:[%s907_s29 + $0x68] sm:$0xff] }
  0x20   : > { %418 = vxpose.xlu1.b32.cont [4/16] %v370_v26, 128  ;;  %v364_v26 = vadd.f32 %v805_v1, %v325_v21  ;;  %v381_v31 = vadd.f32 %v805_v1, %v342_v24 }
  0x21   : > { %386 = vxpose.xlu0.b32.cont [4/16] %v354_v27, 128  ;;  %v326_v27 = vmul.f32 %v794_v0, %v287_v23 }
  0x23   : > { %v365_v32 = vadd.f32 %v805_v1, %v326_v27  ;;  %v461_v27 = vld [vmem:[%s907_s29 + $0x70] sm:$0xff] }
  0x24   : > { %419 = vxpose.xlu1.b32.cont [5/16] %v371_v33, 128  ;;  %v327_v33 = vmul.f32 %v794_v0, %v288_v29 }
  0x25   : > { %387 = vxpose.xlu0.b32.cont [5/16] %v355_v34, 128  ;;  %v382_v34 = vadd.f32 %v805_v1, %v343_v30 }
  0x26   : > { %v366_v35 = vadd.f32 %v805_v1, %v327_v33  ;;  %v450_v1 = vld [vmem:[%s907_s29 + $0x18] sm:$0xff] }
  0x28   : > { %420 = vxpose.xlu1.b32.cont [6/16] %v372_v39, 128 }
  0x29   : > { %388 = vxpose.xlu0.b32.cont [6/16] %v356_v40, 128 }
  0x2c   : > { %421 = vxpose.xlu1.b32.cont [7/16] %v373_v45, 128 }
  0x2d   : > { %389 = vxpose.xlu0.b32.cont [7/16] %v357_v46, 128 }
  0x30   : > { %422 = vxpose.xlu1.b32.cont [8/16] %v374_v50, 128 }
  0x31   : > { %390 = vxpose.xlu0.b32.cont [8/16] %v358_v51, 128 }
  0x34   : > { %423 = vxpose.xlu1.b32.cont [9/16] %v375_v57, 128  ;;  %v453_v57 = vld [vmem:[%s907_s29 + $0x30] sm:$0xff] }
  0x35   : > { %391 = vxpose.xlu0.b32.cont [9/16] %v359_v58, 128 }
  0x38   : > { %424 = vxpose.xlu1.b32.cont [10/16] %v376_v63, 128 }
  0x39   : > { %392 = vxpose.xlu0.b32.cont [10/16] %v360_v2, 128  ;;  %v456_v2 = vld [vmem:[%s907_s29 + $0x48] sm:$0xff] }
  0x3c   : > { %425 = vxpose.xlu1.b32.cont [11/16] %v377_v7, 128 }
  0x3d   : > { %393 = vxpose.xlu0.b32.cont [11/16] %v361_v8, 128 }
  0x40   : > { %426 = vxpose.xlu1.b32.cont [12/16] %v378_v12, 128 }
  0x41   : > { %394 = vxpose.xlu0.b32.cont [12/16] %v362_v13, 128 }
  0x44   : > { %427 = vxpose.xlu1.b32.cont [13/16] %v379_v19, 128  ;;  %v459_v19 = vld [vmem:[%s907_s29 + $0x60] sm:$0xff] }
  0x45   : > { %395 = vxpose.xlu0.b32.cont [13/16] %v363_v20, 128 }
  0x48   : > { %428 = vxpose.xlu1.b32.cont [14/16] %v380_v25, 128 }
  0x49   : > { %396 = vxpose.xlu0.b32.cont [14/16] %v364_v26, 128  ;;  %v462_v26 = vld [vmem:[%s907_s29 + $0x78] sm:$0xff] }
  0x4c   : > { %429 = vxpose.xlu1.b32.cont [15/16] %v381_v31, 128 }
  0x4d   : > { %397 = vxpose.xlu0.b32.cont [15/16] %v365_v32, 128 }
  0x50   : > { %430 = vxpose.xlu1.b32.end [16/16] %v382_v34, 128  ;;  %v464_v34 = vld [vmem:[%s907_s29 + $0x88] sm:$0xff] }
  0x51   : > { %398 = vxpose.xlu0.b32.end [16/16] %v366_v35, 128  ;;  %v463_v35 = vld [vmem:[%s907_s29 + $0x80] sm:$0xff] }
  0x90   : > { %v431_v0 = vpop.trf.xlu1 }
  0x91   : > { %v399_v38 = vpop.trf.xlu0  ;;  %v480_v39 = vadd.f32 %v448_v36, %v431_v0 }
  0x92   : > { %v479_v40 = vadd.f32 %v447_v37, %v399_v38 }
  0x93   : > { %v512_v42 = vmax.f32 %v480_v39, 0.0 }
  0x94   : > { %v511_v43 = vmax.f32 %v479_v40, 0.0  ;;  %v432_v44 = vpop.trf.xlu1 }
  0x95   : > { %v400_v45 = vpop.trf.xlu0  ;;  %544 = vst [vmem:[%s915_s6 + $0x8] sm:$0xff] %v512_v42  ;;  %v482_v46 = vadd.f32 %v450_v1, %v432_v44  ;;  %v466_v1 = vld [vmem:[%s907_s29 + $0x98] sm:$0xff] }
  0x96   : > { %543 = vst [vmem:[%s915_s6] sm:$0xff] %v511_v43  ;;  %v481_v47 = vadd.f32 %v449_v41, %v400_v45  ;;  %v465_v41 = vld [vmem:[%s907_s29 + $0x90] sm:$0xff] }
  0x97   : > { %v514_v50 = vmax.f32 %v482_v46, 0.0 }
  0x98   : > { %v513_v51 = vmax.f32 %v481_v47, 0.0  ;;  %v433_v52 = vpop.trf.xlu1 }
  0x99   : > { %v401_v53 = vpop.trf.xlu0  ;;  %546 = vst [vmem:[%s915_s6 + $0x18] sm:$0xff] %v514_v50  ;;  %v484_v54 = vadd.f32 %v452_v48, %v433_v52  ;;  %v468_v48 = vld [vmem:[%s907_s29 + $0xa8] sm:$0xff] }
  0x9a   : > { %545 = vst [vmem:[%s915_s6 + $0x10] sm:$0xff] %v513_v51  ;;  %v483_v55 = vadd.f32 %v451_v49, %v401_v53  ;;  %v467_v49 = vld [vmem:[%s907_s29 + $0xa0] sm:$0xff] }
  0x9b   : > { %v516_v58 = vmax.f32 %v484_v54, 0.0 }
  0x9c   : > { %v515_v59 = vmax.f32 %v483_v55, 0.0  ;;  %v434_v60 = vpop.trf.xlu1 }
  0x9d   : > { %v402_v61 = vpop.trf.xlu0  ;;  %548 = vst [vmem:[%s915_s6 + $0x28] sm:$0xff] %v516_v58  ;;  %v486_v62 = vadd.f32 %v454_v56, %v434_v60  ;;  %v470_v56 = vld [vmem:[%s907_s29 + $0xb8] sm:$0xff] }
  0x9e   : > { %547 = vst [vmem:[%s915_s6 + $0x20] sm:$0xff] %v515_v59  ;;  %v485_v63 = vadd.f32 %v453_v57, %v402_v61  ;;  %v469_v57 = vld [vmem:[%s907_s29 + $0xb0] sm:$0xff] }
  0x9f   : > { %v518_v4 = vmax.f32 %v486_v62, 0.0 }
  0xa0   : > { %v517_v5 = vmax.f32 %v485_v63, 0.0  ;;  %v435_v6 = vpop.trf.xlu1 }
  0xa1   : > { %v403_v7 = vpop.trf.xlu0  ;;  %550 = vst [vmem:[%s915_s6 + $0x38] sm:$0xff] %v518_v4  ;;  %v488_v8 = vadd.f32 %v456_v2, %v435_v6  ;;  %v472_v2 = vld [vmem:[%s907_s29 + $0xc8] sm:$0xff] }
  0xa2   : > { %549 = vst [vmem:[%s915_s6 + $0x30] sm:$0xff] %v517_v5  ;;  %v487_v9 = vadd.f32 %v455_v3, %v403_v7  ;;  %v471_v3 = vld [vmem:[%s907_s29 + $0xc0] sm:$0xff] }
  0xa3   : > { %v520_v12 = vmax.f32 %v488_v8, 0.0 }
  0xa4   : > { %v519_v13 = vmax.f32 %v487_v9, 0.0  ;;  %v436_v14 = vpop.trf.xlu1 }
  0xa5   : > { %v404_v15 = vpop.trf.xlu0  ;;  %552 = vst [vmem:[%s915_s6 + $0x48] sm:$0xff] %v520_v12  ;;  %v490_v16 = vadd.f32 %v458_v10, %v436_v14  ;;  %v474_v10 = vld [vmem:[%s907_s29 + $0xd8] sm:$0xff] }
  0xa6   : > { %551 = vst [vmem:[%s915_s6 + $0x40] sm:$0xff] %v519_v13  ;;  %v489_v17 = vadd.f32 %v457_v11, %v404_v15  ;;  %v473_v11 = vld [vmem:[%s907_s29 + $0xd0] sm:$0xff] }
  0xa7   : > { %v522_v20 = vmax.f32 %v490_v16, 0.0 }
  0xa8   : > { %v521_v21 = vmax.f32 %v489_v17, 0.0  ;;  %v437_v22 = vpop.trf.xlu1 }
  0xa9   : > { %v405_v23 = vpop.trf.xlu0  ;;  %554 = vst [vmem:[%s915_s6 + $0x58] sm:$0xff] %v522_v20  ;;  %v492_v24 = vadd.f32 %v460_v18, %v437_v22  ;;  %v476_v18 = vld [vmem:[%s907_s29 + $0xe8] sm:$0xff] }
  0xaa   : > { %553 = vst [vmem:[%s915_s6 + $0x50] sm:$0xff] %v521_v21  ;;  %v491_v25 = vadd.f32 %v459_v19, %v405_v23  ;;  %v475_v19 = vld [vmem:[%s907_s29 + $0xe0] sm:$0xff] }
  0xab   : > { %v524_v28 = vmax.f32 %v492_v24, 0.0 }
  0xac   : > { %v523_v29 = vmax.f32 %v491_v25, 0.0  ;;  %v438_v30 = vpop.trf.xlu1 }
  0xad   : > { %v406_v31 = vpop.trf.xlu0  ;;  %556 = vst [vmem:[%s915_s6 + $0x68] sm:$0xff] %v524_v28  ;;  %v494_v32 = vadd.f32 %v462_v26, %v438_v30  ;;  %v478_v26 = vld [vmem:[%s907_s29 + $0xf8] sm:$0xff] }
  0xae   : > { %555 = vst [vmem:[%s915_s6 + $0x60] sm:$0xff] %v523_v29  ;;  %v493_v33 = vadd.f32 %v461_v27, %v406_v31  ;;  %v477_v27 = vld [vmem:[%s907_s29 + $0xf0] sm:$0xff] }
  0xaf   : > { %v526_v36 = vmax.f32 %v494_v32, 0.0 }
  0xb0   : > { %v525_v37 = vmax.f32 %v493_v33, 0.0  ;;  %v439_v0 = vpop.trf.xlu1 }
  0xb1   : > { %v407_v38 = vpop.trf.xlu0  ;;  %558 = vst [vmem:[%s915_s6 + $0x78] sm:$0xff] %v526_v36  ;;  %v496_v39 = vadd.f32 %v464_v34, %v439_v0 }
  0xb2   : > { %557 = vst [vmem:[%s915_s6 + $0x70] sm:$0xff] %v525_v37  ;;  %v495_v40 = vadd.f32 %v463_v35, %v407_v38 }
  0xb3   : > { %v528_v42 = vmax.f32 %v496_v39, 0.0 }
  0xb4   : > { %v527_v43 = vmax.f32 %v495_v40, 0.0  ;;  %v440_v44 = vpop.trf.xlu1 }
  0xb5   : > { %v408_v45 = vpop.trf.xlu0  ;;  %560 = vst [vmem:[%s915_s6 + $0x88] sm:$0xff] %v528_v42  ;;  %v498_v46 = vadd.f32 %v466_v1, %v440_v44 }
  0xb6   : > { %559 = vst [vmem:[%s915_s6 + $0x80] sm:$0xff] %v527_v43  ;;  %v497_v47 = vadd.f32 %v465_v41, %v408_v45 }
  0xb7   : > { %v530_v50 = vmax.f32 %v498_v46, 0.0 }
  0xb8   : > { %v529_v51 = vmax.f32 %v497_v47, 0.0  ;;  %v441_v52 = vpop.trf.xlu1 }
  0xb9   : > { %v409_v53 = vpop.trf.xlu0  ;;  %562 = vst [vmem:[%s915_s6 + $0x98] sm:$0xff] %v530_v50  ;;  %v500_v54 = vadd.f32 %v468_v48, %v441_v52 }
  0xba   : > { %561 = vst [vmem:[%s915_s6 + $0x90] sm:$0xff] %v529_v51  ;;  %v499_v55 = vadd.f32 %v467_v49, %v409_v53 }
  0xbb   : > { %v532_v58 = vmax.f32 %v500_v54, 0.0 }
  0xbc   : > { %v531_v59 = vmax.f32 %v499_v55, 0.0  ;;  %v442_v60 = vpop.trf.xlu1 }
  0xbd   : > { %v410_v61 = vpop.trf.xlu0  ;;  %564 = vst [vmem:[%s915_s6 + $0xa8] sm:$0xff] %v532_v58  ;;  %v502_v62 = vadd.f32 %v470_v56, %v442_v60 }
  0xbe   : > { %563 = vst [vmem:[%s915_s6 + $0xa0] sm:$0xff] %v531_v59  ;;  %v501_v63 = vadd.f32 %v469_v57, %v410_v61 }
  0xbf   : > { %v534_v4 = vmax.f32 %v502_v62, 0.0 }
  0xc0   : > { %v533_v5 = vmax.f32 %v501_v63, 0.0  ;;  %v443_v6 = vpop.trf.xlu1 }
  0xc1   : > { %v411_v7 = vpop.trf.xlu0  ;;  %566 = vst [vmem:[%s915_s6 + $0xb8] sm:$0xff] %v534_v4  ;;  %v504_v8 = vadd.f32 %v472_v2, %v443_v6 }
  0xc2   : > { %565 = vst [vmem:[%s915_s6 + $0xb0] sm:$0xff] %v533_v5  ;;  %v503_v9 = vadd.f32 %v471_v3, %v411_v7 }
  0xc3   : > { %v536_v12 = vmax.f32 %v504_v8, 0.0 }
  0xc4   : > { %v535_v13 = vmax.f32 %v503_v9, 0.0  ;;  %v444_v14 = vpop.trf.xlu1 }
  0xc5   : > { %v412_v15 = vpop.trf.xlu0  ;;  %568 = vst [vmem:[%s915_s6 + $0xc8] sm:$0xff] %v536_v12  ;;  %v506_v16 = vadd.f32 %v474_v10, %v444_v14 }
  0xc6   : > { %567 = vst [vmem:[%s915_s6 + $0xc0] sm:$0xff] %v535_v13  ;;  %v505_v17 = vadd.f32 %v473_v11, %v412_v15 }
  0xc7   : > { %v538_v20 = vmax.f32 %v506_v16, 0.0 }
  0xc8   : > { %v537_v21 = vmax.f32 %v505_v17, 0.0  ;;  %v445_v22 = vpop.trf.xlu1 }
  0xc9   : > { %v413_v23 = vpop.trf.xlu0  ;;  %570 = vst [vmem:[%s915_s6 + $0xd8] sm:$0xff] %v538_v20  ;;  %v508_v24 = vadd.f32 %v476_v18, %v445_v22 }
  0xca   : > { %569 = vst [vmem:[%s915_s6 + $0xd0] sm:$0xff] %v537_v21  ;;  %v507_v25 = vadd.f32 %v475_v19, %v413_v23 }
  0xcb   : > { %v540_v28 = vmax.f32 %v508_v24, 0.0 }
  0xcc   : > { %v539_v29 = vmax.f32 %v507_v25, 0.0  ;;  %v446_v30 = vpop.trf.xlu1 }
  0xcd   : > { %v414_v31 = vpop.trf.xlu0  ;;  %572 = vst [vmem:[%s915_s6 + $0xe8] sm:$0xff] %v540_v28  ;;  %v510_v32 = vadd.f32 %v478_v26, %v446_v30 }
  0xce   : > { %571 = vst [vmem:[%s915_s6 + $0xe0] sm:$0xff] %v539_v29  ;;  %v509_v33 = vadd.f32 %v477_v27, %v414_v31 }
  0xcf   : > { %v542_v34 = vmax.f32 %v510_v32, 0.0 }
  0xd0   : > { %v541_v35 = vmax.f32 %v509_v33, 0.0 }
  0xd1   : > { %574 = vst [vmem:[%s915_s6 + $0xf8] sm:$0xff] %v542_v34 }
  0xd2   : > { %573 = vst [vmem:[%s915_s6 + $0xf0] sm:$0xff] %v541_v35 }
  0xd3 PF: > { %s14_s17 = sadd.s32 1, %s744_s17   ;;  %s993_s15 = smov %s740_s16 }
  0xd4   : > { %p11_p5 = scmp.ge.s32.totalorder %s14_s17, 4   ;;  %s994_s16 = smov %s996_s18 }
  0xd6   :  { %13 = sbr.rel (!%p11_p5) target bundleno = 2 (0x2), region = 69 }

// kernel: bottleneck_forward.6
= control target key start
LH: loop header
LB: loop body
LE: loop exit
PB: predicated region body
PF: predicated region fallthrough
CT: control target
= control target key end

     0   :  { %vm293_vm0 = vcmask 261120   ;;  %vm1137_vm1 = vcmask 1040384   ;;  %s2292_s3 = inlined_call_operand.vmem [shape: f32[32,128], index: 3, kind: input, shape index: {}]   ;;  %s2293_s0 = inlined_call_operand.vmem [shape: f32[512,32], index: 0, kind: input, shape index: {}]   ;;  %s2294_s1 = inlined_call_operand.vmem [shape: f32[1,32], index: 1, kind: input, shape index: {}]   ;;  %s2295_s2 = inlined_call_operand.vmem [shape: f32[1,32], index: 2, kind: input, shape index: {}]   ;;  %s2296_s4 = inlined_call_operand.vmem [shape: f32[512,128], index: 4, kind: output, shape index: {0}]   ;;  %s2297_s5 = inlined_call_operand.vmem [shape: f32[1,2,128], index: 5, kind: output, shape index: {1}]  }
   0x1   :  { %v292_v0 = vld [vmem:[%s2292_s3 + $0x18] sm:$0xff]  ;;  %v291_v1 = vld [vmem:[%s2292_s3 + $0x10] sm:$0xff]  ;;  %v290_v2 = vld [vmem:[%s2292_s3 + $0x8] sm:$0xff] }
   0x2   :  { %1282 = vmatprep.subr.mxu0 %v292_v0  ;;  %v19_v3 = vld [vmem:[%s2293_s0] sm:$0xff]  ;;  %1386 = vmatprep.subr.mxu1 %v292_v0  ;;  %v20_v7 = vld [vmem:[%s2293_s0 + $0x8] sm:$0xff]  ;;  %v21_v8 = vld [vmem:[%s2293_s0 + $0x10] sm:$0xff] }
   0x3   :  { %v1439_v4 = vld [vmem:[%s2294_s1] ss:$0 sm:$0xff]  ;;  %1283 = vmatpush3.msra.mxu0 %v292_v0  ;;  %1390 = vmatpush3.msra.mxu1 %v292_v0  ;;  %v22_v11 = vld [vmem:[%s2293_s0 + $0x18] sm:$0xff]  ;;  %v24_v13 = vld [vmem:[%s2293_s0 + $0x28] sm:$0xff] }
   0x4   :  { %v90_v5 = vmul.f32 %v1439_v4, %v19_v3  ;;  %v1445_v6 = vld [vmem:[%s2295_s2] ss:$0 sm:$0xff]  ;;  %1284 = vmatprep.subr.mxu0 %v291_v1  ;;  %v91_v9 = vmul.f32 %v1439_v4, %v20_v7  ;;  %v92_v10 = vmul.f32 %v1439_v4, %v21_v8  ;;  %1387 = vmatprep.subr.mxu1 %v291_v1  ;;  %v25_v18 = vld [vmem:[%s2293_s0 + $0x30] sm:$0xff]  ;;  %v26_v22 = vld [vmem:[%s2293_s0 + $0x38] sm:$0xff] }
   0x5   :  { %v23_v12 = vld [vmem:[%s2293_s0 + $0x20] sm:$0xff]  ;;  %1285 = vmatpush3.msra.mxu0 %v291_v1  ;;  %v93_v16 = vmul.f32 %v1439_v4, %v22_v11  ;;  %v95_v21 = vmul.f32 %v1439_v4, %v24_v13  ;;  %v96_v26 = vmul.f32 %v1439_v4, %v25_v18  ;;  %1391 = vmatpush3.msra.mxu1 %v291_v1  ;;  %v28_v36 = vld [vmem:[%s2293_s0 + $0x48] sm:$0xff]  ;;  %v29_v37 = vld [vmem:[%s2293_s0 + $0x50] sm:$0xff] }
   0x6   :  { %v289_v14 = vld [vmem:[%s2292_s3] sm:$0xff]  ;;  %v161_v15 = vadd.f32 %v1445_v6, %v90_v5  ;;  %v94_v17 = vmul.f32 %v1439_v4, %v23_v12  ;;  %1286 = vmatprep.subr.mxu0 %v290_v2  ;;  %v162_v19 = vadd.f32 %v1445_v6, %v91_v9  ;;  %v163_v20 = vadd.f32 %v1445_v6, %v92_v10  ;;  %v30_v44 = vld [vmem:[%s2293_s0 + $0x58] sm:$0xff]  ;;  %v32_v46 = vld [vmem:[%s2293_s0 + $0x68] sm:$0xff] }
   0x7   :  { %1287 = vmatpush3.msra.mxu0 %v290_v2  ;;  %v164_v24 = vadd.f32 %v1445_v6, %v93_v16  ;;  %v27_v29 = vld [vmem:[%s2293_s0 + $0x40] sm:$0xff]  ;;  %1388 = vmatprep.subr.mxu1 %v290_v2  ;;  %v97_v30 = vmul.f32 %v1439_v4, %v26_v22  ;;  %v166_v32 = vadd.f32 %v1445_v6, %v95_v21  ;;  %v33_v47 = vld [vmem:[%s2293_s0 + $0x70] sm:$0xff]  ;;  %v34_v53 = vld [vmem:[%s2293_s0 + $0x78] sm:$0xff] }
   0x8   :  { %v225_v23 = vmax.f32 %v161_v15, 0.0  ;;  %v165_v25 = vadd.f32 %v1445_v6, %v94_v17  ;;  %1288 = vmatprep.subr.mxu0 %v289_v14  ;;  %v226_v27 = vmax.f32 %v162_v19, 0.0  ;;  %v227_v28 = vmax.f32 %v163_v20, 0.0  ;;  %1392 = vmatpush3.msra.mxu1 %v290_v2  ;;  %v31_v45 = vld [vmem:[%s2293_s0 + $0x60] sm:$0xff]  ;;  %v36_v2 = vld [vmem:[%s2293_s0 + $0x88] sm:$0xff]  ;;  %v37_v3 = vld [vmem:[%s2293_s0 + $0x90] sm:$0xff] }
   0x9   :  { %1289 = vmatpush3.msra.mxu0 %v289_v14  ;;  %v228_v31 = vmax.f32 %v164_v24, 0.0  ;;  %v167_v34 = vadd.f32 %v1445_v6, %v96_v26  ;;  %v98_v35 = vmul.f32 %v1439_v4, %v27_v29  ;;  %1389 = vmatprep.subr.mxu1 %v289_v14  ;;  %v168_v38 = vadd.f32 %v1445_v6, %v97_v30  ;;  %v35_v58 = vld [vmem:[%s2293_s0 + $0x80] sm:$0xff]  ;;  %v38_v7 = vld [vmem:[%s2293_s0 + $0x98] sm:$0xff]  ;;  %v52_v8 = vld [vmem:[%s2293_s0 + $0x108] sm:$0xff] }
   0xa   :  { %1290 = vmatprep.mubr.msk.f32.mxu0 %vm293_vm0, %v225_v23  ;;  %v229_v33 = vmax.f32 %v165_v25, 0.0  ;;  %1393 = vmatpush3.msra.mxu1 %v289_v14  ;;  %v230_v39 = vmax.f32 %v166_v32, 0.0  ;;  %v99_v40 = vmul.f32 %v1439_v4, %v28_v36  ;;  %v100_v43 = vmul.f32 %v1439_v4, %v29_v37  ;;  %v51_v5 = vld [vmem:[%s2293_s0 + $0x100] sm:$0xff]  ;;  %v53_v9 = vld [vmem:[%s2293_s0 + $0x110] sm:$0xff]  ;;  %v54_v15 = vld [vmem:[%s2293_s0 + $0x118] sm:$0xff] }
   0xb   :  { %1291 = vmatmul.mubr.msk.f32.vlgmr.msra.gmra.mxu0 %vm293_vm0, %v226_v27  ;;  %v231_v41 = vmax.f32 %v167_v34, 0.0  ;;  %v169_v42 = vadd.f32 %v1445_v6, %v98_v35  ;;  %v232_v48 = vmax.f32 %v168_v38, 0.0  ;;  %v101_v50 = vmul.f32 %v1439_v4, %v30_v44  ;;  %v39_v14 = vld [vmem:[%s2293_s0 + $0xa0] sm:$0xff]  ;;  %v40_v20 = vld [vmem:[%s2293_s0 + $0xa8] sm:$0xff]  ;;  %v57_v27 = vld [vmem:[%s2293_s0 + $0x130] sm:$0xff] }
   0xc   :  { %1293 = vmatprep.mubr.msk.f32.mxu0 %vm293_vm0, %v227_v28  ;;  %v170_v49 = vadd.f32 %v1445_v6, %v99_v40  ;;  %v102_v51 = vmul.f32 %v1439_v4, %v31_v45  ;;  %v103_v52 = vmul.f32 %v1439_v4, %v32_v46  ;;  %v171_v55 = vadd.f32 %v1445_v6, %v100_v43  ;;  %v55_v16 = vld [vmem:[%s2293_s0 + $0x120] sm:$0xff]  ;;  %v56_v22 = vld [vmem:[%s2293_s0 + $0x128] sm:$0xff]  ;;  %v41_v29 = vld [vmem:[%s2293_s0 + $0xb0] sm:$0xff] }
   0xd   :  { %v233_v54 = vmax.f32 %v169_v42, 0.0  ;;  %v104_v56 = vmul.f32 %v1439_v4, %v33_v47  ;;  %v105_v57 = vmul.f32 %v1439_v4, %v34_v53  ;;  %v172_v60 = vadd.f32 %v1445_v6, %v101_v50  ;;  %v42_v30 = vld [vmem:[%s2293_s0 + $0xb8] sm:$0xff]  ;;  %v59_v47 = vld [vmem:[%s2293_s0 + $0x140] sm:$0xff] }
   0xe   :  { %v234_v59 = vmax.f32 %v170_v49, 0.0  ;;  %v173_v61 = vadd.f32 %v1445_v6, %v102_v51  ;;  %v174_v62 = vadd.f32 %v1445_v6, %v103_v52  ;;  %v235_v63 = vmax.f32 %v171_v55, 0.0  ;;  %v58_v42 = vld [vmem:[%s2293_s0 + $0x138] sm:$0xff]  ;;  %v43_v52 = vld [vmem:[%s2293_s0 + $0xc0] sm:$0xff] }
   0xf   :  { %1294 = vmatmul.mubr.msk.f32.gmra.mxu0 %vm293_vm0, %v228_v31  ;;  %v1537_v0 = vadd.f32 %v1445_v6, %v104_v56  ;;  %v106_v1 = vmul.f32 %v1439_v4, %v35_v58  ;;  %v236_v10 = vmax.f32 %v172_v60, 0.0  ;;  %v1560_v13 = vadd.f32 %v1445_v6, %v105_v57  ;;  %v44_v58 = vld [vmem:[%s2293_s0 + $0xc8] sm:$0xff] }
  0x10   :  { %1296 = vmatprep.mubr.msk.f32.mxu0 %vm293_vm0, %v229_v33  ;;  %v237_v11 = vmax.f32 %v173_v61, 0.0  ;;  %v238_v12 = vmax.f32 %v174_v62, 0.0  ;;  %v107_v18 = vmul.f32 %v1439_v4, %v36_v2  ;;  %v108_v19 = vmul.f32 %v1439_v4, %v37_v3  ;;  %v60_v62 = vld [vmem:[%s2293_s0 + $0x148] sm:$0xff]  ;;  %v45_v3 = vld [vmem:[%s2293_s0 + $0xd0] sm:$0xff] }
  0x11   :  { %v239_v17 = vmax.f32 %v1537_v0, 0.0  ;;  %v122_v21 = vmul.f32 %v1439_v4, %v51_v5  ;;  %v1583_v23 = vadd.f32 %v1445_v6, %v106_v1  ;;  %v109_v24 = vmul.f32 %v1439_v4, %v38_v7  ;;  %v61_v5 = vld [vmem:[%s2293_s0 + $0x150] sm:$0xff] }
  0x12   :  { %v123_v25 = vmul.f32 %v1439_v4, %v52_v8  ;;  %v124_v26 = vmul.f32 %v1439_v4, %v53_v9  ;;  %v110_v28 = vmul.f32 %v1439_v4, %v39_v14  ;;  %v125_v32 = vmul.f32 %v1439_v4, %v54_v15 }
  0x13   :  { %1297 = vmatmul.mubr.msk.f32.gmra.mxu0 %vm293_vm0, %v230_v39  ;;  %v193_v31 = vadd.f32 %v1445_v6, %v122_v21  ;;  %v126_v33 = vmul.f32 %v1439_v4, %v55_v16  ;;  %v111_v34 = vmul.f32 %v1439_v4, %v40_v20  ;;  %v127_v37 = vmul.f32 %v1439_v4, %v56_v22 }
  0x14   :  { %1299 = vmatprep.mubr.msk.f32.mxu0 %vm293_vm0, %v231_v41  ;;  %v194_v35 = vadd.f32 %v1445_v6, %v123_v25  ;;  %v195_v36 = vadd.f32 %v1445_v6, %v124_v26  ;;  %v196_v39 = vadd.f32 %v1445_v6, %v125_v32  ;;  %v128_v41 = vmul.f32 %v1439_v4, %v57_v27 }
  0x15   :  { %v257_v38 = vmax.f32 %v193_v31, 0.0  ;;  %v197_v40 = vadd.f32 %v1445_v6, %v126_v33  ;;  %v112_v43 = vmul.f32 %v1439_v4, %v41_v29  ;;  %v113_v44 = vmul.f32 %v1439_v4, %v42_v30  ;;  %v64_v33 = vld [vmem:[%s2293_s0 + $0x168] sm:$0xff] }
  0x16   :  { %v258_v45 = vmax.f32 %v194_v35, 0.0  ;;  %v259_v46 = vmax.f32 %v195_v36, 0.0  ;;  %v1620_v49 = vadd.f32 %v1445_v6, %v108_v19  ;;  %v1623_v50 = vadd.f32 %v1445_v6, %v109_v24  ;;  %v74_v35 = vld [vmem:[%s2293_s0 + $0x1b8] sm:$0xff] }
  0x17   :  { %1300 = vmatmul.mubr.msk.f32.gmra.mxu0 %vm293_vm0, %v232_v48  ;;  %v178_v48 = vadd.f32 %v1445_v6, %v107_v18  ;;  %v1626_v51 = vadd.f32 %v1445_v6, %v110_v28  ;;  %1338 = vmatprep.mubr.msk.f32.mxu1 %vm293_vm0, %v257_v38  ;;  %v240_v53 = vmax.f32 %v1560_v13, 0.0  ;;  %v198_v55 = vadd.f32 %v1445_v6, %v127_v37  ;;  %v47_v13 = vld [vmem:[%s2293_s0 + $0xe0] sm:$0xff]  ;;  %v73_v28 = vld [vmem:[%s2293_s0 + $0x1b0] sm:$0xff] }
  0x18   :  { %1302 = vmatprep.mubr.msk.f32.mxu0 %vm293_vm0, %v233_v54  ;;  %1339 = vmatmul.mubr.msk.f32.vlgmr.msra.gmra.mxu1 %vm293_vm0, %v258_v45  ;;  %v260_v54 = vmax.f32 %v196_v39, 0.0  ;;  %v129_v56 = vmul.f32 %v1439_v4, %v58_v42  ;;  %v241_v57 = vmax.f32 %v1583_v23, 0.0  ;;  %v199_v60 = vadd.f32 %v1445_v6, %v128_v41  ;;  %v63_v18 = vld [vmem:[%s2293_s0 + $0x160] sm:$0xff]  ;;  %v72_v23 = vld [vmem:[%s2293_s0 + $0x1a8] sm:$0xff] }
  0x19   :  { %1341 = vmatprep.mubr.msk.f32.mxu1 %vm293_vm0, %v259_v46  ;;  %v130_v61 = vmul.f32 %v1439_v4, %v59_v47  ;;  %v1652_v0 = vadd.f32 %v1445_v6, %v112_v43  ;;  %v1655_v1 = vadd.f32 %v1445_v6, %v113_v44  ;;  %v114_v2 = vmul.f32 %v1439_v4, %v43_v52  ;;  %v76_v45 = vld [vmem:[%s2293_s0 + $0x1c8] sm:$0xff]  ;;  %v77_v46 = vld [vmem:[%s2293_s0 + $0x1d0] sm:$0xff]  ;;  %v78_v52 = vld [vmem:[%s2293_s0 + $0x1d8] sm:$0xff] }
  0x1a   :  { %v242_v7 = vmax.f32 %v178_v48, 0.0  ;;  %v243_v8 = vmax.f32 %v1620_v49, 0.0  ;;  %v244_v9 = vmax.f32 %v1623_v50, 0.0  ;;  %v262_v14 = vmax.f32 %v198_v55, 0.0 }
  0x1b   :  { %1303 = vmatmul.mubr.msk.f32.gmra.mxu0 %vm293_vm0, %v234_v59  ;;  %v261_v59 = vmax.f32 %v197_v40, 0.0  ;;  %v200_v15 = vadd.f32 %v1445_v6, %v129_v56  ;;  %v131_v16 = vmul.f32 %v1439_v4, %v60_v62  ;;  %v116_v19 = vmul.f32 %v1439_v4, %v45_v3  ;;  %v75_v40 = vld [vmem:[%s2293_s0 + $0x1c0] sm:$0xff] }
  0x1c   :  { %1305 = vmatprep.mubr.msk.f32.mxu0 %vm293_vm0, %v235_v63  ;;  %v1649_v63 = vadd.f32 %v1445_v6, %v111_v34  ;;  %1342 = vmatmul.mubr.msk.f32.gmra.mxu1 %vm293_vm0, %v260_v54  ;;  %v263_v20 = vmax.f32 %v199_v60, 0.0  ;;  %v201_v21 = vadd.f32 %v1445_v6, %v130_v61  ;;  %v132_v22 = vmul.f32 %v1439_v4, %v61_v5  ;;  %v65_v34 = vld [vmem:[%s2293_s0 + $0x170] sm:$0xff]  ;;  %v66_v60 = vld [vmem:[%s2293_s0 + $0x178] sm:$0xff] }
  0x1d   :  { %1344 = vmatprep.mubr.msk.f32.mxu1 %vm293_vm0, %v261_v59  ;;  %v247_v25 = vmax.f32 %v1652_v0, 0.0  ;;  %v248_v26 = vmax.f32 %v1655_v1, 0.0  ;;  %v1696_v27 = vadd.f32 %v1445_v6, %v114_v2  ;;  %v1705_v30 = vmul.f32 %v1439_v4, %v47_v13  ;;  %v81_v2 = vld [vmem:[%s2293_s0 + $0x1f0] sm:$0xff] }
  0x1e   :  { %v246_v24 = vmax.f32 %v1649_v63, 0.0  ;;  %v134_v32 = vmul.f32 %v1439_v4, %v63_v18  ;;  %v264_v37 = vmax.f32 %v200_v15, 0.0  ;;  %v202_v38 = vadd.f32 %v1445_v6, %v131_v16  ;;  %v48_v18 = vld [vmem:[%s2293_s0 + $0xe8] sm:$0xff]  ;;  %v69_v0 = vld [vmem:[%s2293_s0 + $0x190] sm:$0xff] }
  0x1f   :  { %1306 = vmatmul.mubr.msk.f32.gmra.mxu0 %vm293_vm0, %v236_v10  ;;  %v245_v10 = vmax.f32 %v1626_v51, 0.0  ;;  %v143_v39 = vmul.f32 %v1439_v4, %v72_v23  ;;  %v1730_v41 = vadd.f32 %v1445_v6, %v116_v19  ;;  %v265_v42 = vmax.f32 %v201_v21, 0.0  ;;  %v67_v51 = vld [vmem:[%s2293_s0 + $0x180] sm:$0xff]  ;;  %v49_v19 = vld [vmem:[%s2293_s0 + $0xf0] sm:$0xff] }
  0x20   :  { %1308 = vmatprep.mubr.msk.f32.mxu0 %vm293_vm0, %v237_v11  ;;  %v46_v11 = vld [vmem:[%s2293_s0 + $0xd8] sm:$0xff]  ;;  %1345 = vmatmul.mubr.msk.f32.gmra.mxu1 %vm293_vm0, %v262_v14  ;;  %v203_v43 = vadd.f32 %v1445_v6, %v132_v22  ;;  %v144_v44 = vmul.f32 %v1439_v4, %v73_v28  ;;  %v135_v47 = vmul.f32 %v1439_v4, %v64_v33  ;;  %v266_v59 = vmax.f32 %v202_v38, 0.0 }
  0x21   :  { %v1702_v29 = vmul.f32 %v1439_v4, %v46_v11  ;;  %1347 = vmatprep.mubr.msk.f32.mxu1 %vm293_vm0, %v263_v20  ;;  %v136_v48 = vmul.f32 %v1439_v4, %v65_v34  ;;  %v1744_v49 = vadd.f32 %v1445_v6, %v143_v39  ;;  %v145_v50 = vmul.f32 %v1439_v4, %v74_v35  ;;  %v50_v39 = vld [vmem:[%s2293_s0 + $0xf8] sm:$0xff] }
  0x22   :  { %v205_v55 = vadd.f32 %v1445_v6, %v134_v32  ;;  %v1756_v56 = vadd.f32 %v1445_v6, %v144_v44  ;;  %v147_v62 = vmul.f32 %v1439_v4, %v76_v45  ;;  %v148_v63 = vmul.f32 %v1439_v4, %v77_v46  ;;  %v71_v44 = vld [vmem:[%s2293_s0 + $0x1a0] sm:$0xff] }
  0x23   :  { %1309 = vmatmul.mubr.msk.f32.gmra.mxu0 %vm293_vm0, %v238_v12  ;;  %v115_v12 = vmul.f32 %v1439_v4, %v44_v58  ;;  %v80_v58 = vld [vmem:[%s2293_s0 + $0x1e8] sm:$0xff]  ;;  %v1768_v61 = vadd.f32 %v1445_v6, %v145_v50  ;;  %v267_v3 = vmax.f32 %v203_v43, 0.0  ;;  %v249_v11 = vmax.f32 %v1696_v27, 0.0  ;;  %v70_v43 = vld [vmem:[%s2293_s0 + $0x198] sm:$0xff] }
  0x24   :  { %1311 = vmatprep.mubr.msk.f32.mxu0 %vm293_vm0, %v239_v17  ;;  %v62_v17 = vld [vmem:[%s2293_s0 + $0x158] sm:$0xff]  ;;  %1348 = vmatmul.mubr.msk.f32.gmra.mxu1 %vm293_vm0, %v264_v37  ;;  %v151_v13 = vmul.f32 %v1439_v4, %v80_v58  ;;  %v137_v14 = vmul.f32 %v1439_v4, %v66_v60  ;;  %v206_v21 = vadd.f32 %v1445_v6, %v135_v47 }
  0x25   :  { %v133_v31 = vmul.f32 %v1439_v4, %v62_v17  ;;  %v1720_v36 = vadd.f32 %v1445_v6, %v115_v12  ;;  %1350 = vmatprep.mubr.msk.f32.mxu1 %vm293_vm0, %v265_v42  ;;  %v1795_v12 = vadd.f32 %v1445_v6, %v148_v63  ;;  %v152_v17 = vmul.f32 %v1439_v4, %v81_v2 }
  0x26   :  { %v1816_v22 = vadd.f32 %v1445_v6, %v151_v13  ;;  %v207_v27 = vadd.f32 %v1445_v6, %v136_v48  ;;  %v138_v28 = vmul.f32 %v1439_v4, %v67_v51  ;;  %v188_v33 = vadd.f32 %v1445_v6, %v1702_v29 }
  0x27   :  { %1312 = vmatmul.mubr.msk.f32.gmra.mxu0 %vm293_vm0, %v240_v53  ;;  %v79_v53 = vld [vmem:[%s2293_s0 + $0x1e0] sm:$0xff]  ;;  %v204_v54 = vadd.f32 %v1445_v6, %v133_v31  ;;  %v68_v31 = vld [vmem:[%s2293_s0 + $0x188] sm:$0xff]  ;;  %v1829_v32 = vadd.f32 %v1445_v6, %v152_v17  ;;  %v189_v34 = vadd.f32 %v1445_v6, %v1705_v30  ;;  %v119_v35 = vmul.f32 %v1439_v4, %v48_v18 }
  0x28   :  { %1314 = vmatprep.mubr.msk.f32.mxu0 %vm293_vm0, %v241_v57  ;;  %v146_v57 = vmul.f32 %v1439_v4, %v75_v40  ;;  %1351 = vmatmul.mubr.msk.f32.gmra.mxu1 %vm293_vm0, %v266_v59  ;;  %v120_v37 = vmul.f32 %v1439_v4, %v49_v19  ;;  %v250_v38 = vmax.f32 %v1720_v36, 0.0  ;;  %v270_v29 = vmax.f32 %v206_v21, 0.0 }
  0x29   :  { %v268_v20 = vmax.f32 %v204_v54, 0.0  ;;  %1353 = vmatprep.mubr.msk.f32.mxu1 %vm293_vm0, %v267_v3  ;;  %v208_v40 = vadd.f32 %v1445_v6, %v137_v14  ;;  %v139_v30 = vmul.f32 %v1439_v4, %v68_v31  ;;  %v251_v42 = vmax.f32 %v1730_v41, 0.0 }
  0x2a   :  { %v1780_v5 = vadd.f32 %v1445_v6, %v146_v57  ;;  %v271_v1 = vmax.f32 %v207_v27, 0.0  ;;  %v140_v36 = vmul.f32 %v1439_v4, %v69_v0  ;;  %v190_v45 = vadd.f32 %v1445_v6, %v119_v35 }
  0x2b   :  { %1315 = vmatmul.mubr.msk.f32.gmra.mxu0 %vm293_vm0, %v242_v7  ;;  %v149_v7 = vmul.f32 %v1439_v4, %v78_v52  ;;  %v191_v46 = vadd.f32 %v1445_v6, %v120_v37  ;;  %v121_v41 = vmul.f32 %v1439_v4, %v50_v39  ;;  %v252_v47 = vmax.f32 %v188_v33, 0.0 }
  0x2c   :  { %1317 = vmatprep.mubr.msk.f32.mxu0 %vm293_vm0, %v243_v8  ;;  %v150_v8 = vmul.f32 %v1439_v4, %v79_v53  ;;  %1354 = vmatmul.mubr.msk.f32.gmra.mxu1 %vm293_vm0, %v268_v20  ;;  %v272_v48 = vmax.f32 %v208_v40, 0.0  ;;  %v210_v50 = vadd.f32 %v1445_v6, %v139_v30  ;;  %v141_v52 = vmul.f32 %v1439_v4, %v70_v43 }
  0x2d   :  { %v1800_v15 = vadd.f32 %v1445_v6, %v149_v7  ;;  %v253_v53 = vmax.f32 %v189_v34, 0.0  ;;  %v142_v57 = vmul.f32 %v1439_v4, %v71_v44  ;;  %v254_v58 = vmax.f32 %v190_v45, 0.0 }
  0x2e   :  { %v1803_v16 = vadd.f32 %v1445_v6, %v150_v8  ;;  %v192_v59 = vadd.f32 %v1445_v6, %v121_v41  ;;  %v274_v60 = vmax.f32 %v210_v50, 0.0  ;;  %v255_v63 = vmax.f32 %v191_v46, 0.0 }
  0x2f   :  { %1318 = vmatmul.mubr.msk.f32.gmra.mxu0 %vm293_vm0, %v244_v9  ;;  %v82_v9 = vld [vmem:[%s2293_s0 + $0x1f8] sm:$0xff]  ;;  %v213_v3 = vadd.f32 %v1445_v6, %v142_v57  ;;  %v281_v51 = vmax.f32 %v1780_v5, 0.0  ;;  %v286_v5 = vmax.f32 %v1816_v22, 0.0 }
  0x30   :  { %1320 = vmatprep.mubr.msk.f32.mxu0 %vm293_vm0, %v245_v10  ;;  %v1792_v10 = vadd.f32 %v1445_v6, %v147_v62  ;;  %v153_v23 = vmul.f32 %v1439_v4, %v82_v9  ;;  %v212_v62 = vadd.f32 %v1445_v6, %v141_v52  ;;  %v256_v4 = vmax.f32 %v192_v59, 0.0 }
  0x31   :  { %v277_v8 = vmax.f32 %v213_v3, 0.0  ;;  %v278_v9 = vmax.f32 %v1744_v49, 0.0  ;;  %v283_v49 = vmax.f32 %v1795_v12, 0.0 }
  0x32   :  { %v276_v7 = vmax.f32 %v212_v62, 0.0  ;;  %v282_v13 = vmax.f32 %v1792_v10, 0.0  ;;  %v287_v10 = vmax.f32 %v1829_v32, 0.0 }
  0x33   :  { %1321 = vmatmul.mubr.msk.f32.gmra.mxu0 %vm293_vm0, %v246_v24  ;;  %v269_v24 = vmax.f32 %v205_v55, 0.0  ;;  %v211_v55 = vadd.f32 %v1445_v6, %v140_v36 }
  0x34   :  { %1323 = vmatprep.mubr.msk.f32.mxu0 %vm293_vm0, %v247_v25  ;;  %v1835_v25 = vadd.f32 %v1445_v6, %v153_v23 }
  0x35   :  { %1356 = vmatprep.mubr.msk.f32.mxu1 %vm293_vm0, %v269_v24  ;;  %v275_v2 = vmax.f32 %v211_v55, 0.0 }
  0x36   :  { %1357 = vmatmul.mubr.msk.f32.gmra.mxu1 %vm293_vm0, %v270_v29  ;;  %v288_v12 = vmax.f32 %v1835_v25, 0.0 }
  0x37   :  { %1324 = vmatmul.mubr.msk.f32.gmra.mxu0 %vm293_vm0, %v248_v26  ;;  %v209_v26 = vadd.f32 %v1445_v6, %v138_v28  ;;  %1359 = vmatprep.mubr.msk.f32.mxu1 %vm293_vm0, %v271_v1  ;;  %v279_v6 = vmax.f32 %v1756_v56, 0.0  ;;  %v284_v56 = vmax.f32 %v1800_v15, 0.0 }
  0x38   :  { %1326 = vmatprep.mubr.msk.f32.mxu0 %vm293_vm0, %v249_v11  ;;  %v280_v11 = vmax.f32 %v1768_v61, 0.0  ;;  %v285_v61 = vmax.f32 %v1803_v16, 0.0 }
  0x39   :  { %v273_v54 = vmax.f32 %v209_v26, 0.0 }
  0x3a   :  { %1360 = vmatmul.mubr.msk.f32.gmra.mxu1 %vm293_vm0, %v272_v48 }
  0x3b   :  { %1327 = vmatmul.mubr.msk.f32.gmra.mxu0 %vm293_vm0, %v250_v38  ;;  %1362 = vmatprep.mubr.msk.f32.mxu1 %vm293_vm0, %v273_v54 }
  0x3c   :  { %1329 = vmatprep.mubr.msk.f32.mxu0 %vm293_vm0, %v251_v42 }
  0x3e   :  { %1363 = vmatmul.mubr.msk.f32.gmra.mxu1 %vm293_vm0, %v274_v60 }
  0x3f   :  { %1330 = vmatmul.mubr.msk.f32.gmra.mxu0 %vm293_vm0, %v252_v47  ;;  %1365 = vmatprep.mubr.msk.f32.mxu1 %vm293_vm0, %v275_v2 }
  0x40   :  { %1332 = vmatprep.mubr.msk.f32.mxu0 %vm293_vm0, %v253_v53 }
  0x42   :  { %1366 = vmatmul.mubr.msk.f32.gmra.mxu1 %vm293_vm0, %v276_v7 }
  0x43   :  { %1333 = vmatmul.mubr.msk.f32.gmra.mxu0 %vm293_vm0, %v254_v58  ;;  %1368 = vmatprep.mubr.msk.f32.mxu1 %vm293_vm0, %v277_v8 }
  0x44   :  { %1335 = vmatprep.mubr.msk.f32.mxu0 %vm293_vm0, %v255_v63 }
  0x46   :  { %1369 = vmatmul.mubr.msk.f32.gmra.mxu1 %vm293_vm0, %v278_v9 }
  0x47   :  { %1336 = vmatmul.mubr.msk.f32.gmra.mxu0 %vm293_vm0, %v256_v4  ;;  %1371 = vmatprep.mubr.msk.f32.mxu1 %vm293_vm0, %v279_v6 }
  0x4a   :  { %1372 = vmatmul.mubr.msk.f32.gmra.mxu1 %vm293_vm0, %v280_v11 }
  0x4b   :  { %1374 = vmatprep.mubr.msk.f32.mxu1 %vm293_vm0, %v281_v51 }
  0x4e   :  { %1375 = vmatmul.mubr.msk.f32.gmra.mxu1 %vm293_vm0, %v282_v13 }
  0x4f   :  { %1377 = vmatprep.mubr.msk.f32.mxu1 %vm293_vm0, %v283_v49 }
  0x52   :  { %1378 = vmatmul.mubr.msk.f32.gmra.mxu1 %vm293_vm0, %v284_v56 }
  0x53   :  { %1380 = vmatprep.mubr.msk.f32.mxu1 %vm293_vm0, %v285_v61 }
  0x56   :  { %1381 = vmatmul.mubr.msk.f32.gmra.mxu1 %vm293_vm0, %v286_v5 }
  0x57   :  { %1383 = vmatprep.mubr.msk.f32.mxu1 %vm293_vm0, %v287_v10 }
  0x5a   :  { %1384 = vmatmul.mubr.msk.f32.gmra.mxu1 %vm293_vm0, %v288_v12 }
  0xcb   :  { %v1292_v14 = vpop.f32.mrf.mxu0 }
  0xcc   :  { %872 = vst [vmem:[%s2296_s4 + $0x8] sm:$0xff] %v1292_v14  ;;  %v1005_v18 = vmul.f32 %v1292_v14, %v1292_v14 }
  0xcd   :  { %v552_v15 = vpop.f32.mrf.mxu0 }
  0xce   :  { %871 = vst [vmem:[%s2296_s4] sm:$0xff] %v552_v15  ;;  %v1004_v16 = vmul.f32 %v552_v15, %v552_v15  ;;  %v935_v19 = vadd.f32 %v1292_v14, %v552_v15 }
  0xcf   :  { %v1295_v17 = vpop.f32.mrf.mxu0 }
  0xd0   :  { %874 = vst [vmem:[%s2296_s4 + $0x18] sm:$0xff] %v1295_v17  ;;  %v1068_v21 = vadd.f32 %v1005_v18, %v1004_v16  ;;  %v1007_v27 = vmul.f32 %v1295_v17, %v1295_v17 }
  0xd1   :  { %v562_v20 = vpop.f32.mrf.mxu0 }
  0xd2   :  { %873 = vst [vmem:[%s2296_s4 + $0x10] sm:$0xff] %v562_v20  ;;  %v936_v22 = vadd.f32 %v935_v19, %v562_v20  ;;  %v1006_v23 = vmul.f32 %v562_v20, %v562_v20 }
  0xd3   :  { %v1298_v24 = vpop.f32.mrf.mxu0 }
  0xd4   :  { %v1069_v28 = vadd.f32 %v1068_v21, %v1006_v23  ;;  %876 = vst [vmem:[%s2296_s4 + $0x28] sm:$0xff] %v1298_v24  ;;  %v937_v31 = vadd.f32 %v1295_v17, %v936_v22  ;;  %v1009_v35 = vmul.f32 %v1298_v24, %v1298_v24 }
  0xd5   :  { %v572_v32 = vpop.f32.mrf.mxu0 }
  0xd6   :  { %875 = vst [vmem:[%s2296_s4 + $0x20] sm:$0xff] %v572_v32  ;;  %v938_v0 = vadd.f32 %v937_v31, %v572_v32  ;;  %v1008_v25 = vmul.f32 %v572_v32, %v572_v32  ;;  %v1070_v33 = vadd.f32 %v1069_v28, %v1007_v27 }
  0xd7   :  { %v1301_v34 = vpop.f32.mrf.mxu0 }
  0xd8   :  { %v1071_v37 = vadd.f32 %v1070_v33, %v1008_v25  ;;  %878 = vst [vmem:[%s2296_s4 + $0x38] sm:$0xff] %v1301_v34  ;;  %v939_v38 = vadd.f32 %v1298_v24, %v938_v0  ;;  %v1011_v1 = vmul.f32 %v1301_v34, %v1301_v34  ;;  %v1947_v58 = vpop.f32.mrf.mxu1 }
  0xd9   :  { %v582_v39 = vpop.f32.mrf.mxu0  ;;  %904 = vst [vmem:[%s2296_s4 + $0x108] sm:$0xff] %v1947_v58 }
  0xda   :  { %877 = vst [vmem:[%s2296_s4 + $0x30] sm:$0xff] %v582_v39  ;;  %v940_v29 = vadd.f32 %v939_v38, %v582_v39  ;;  %v1010_v40 = vmul.f32 %v582_v39, %v582_v39  ;;  %v1072_v30 = vadd.f32 %v1071_v37, %v1009_v35  ;;  %v1956_v2 = vpop.f32.mrf.mxu1 }
  0xdb   :  { %v1304_v42 = vpop.f32.mrf.mxu0  ;;  %903 = vst [vmem:[%s2296_s4 + $0x100] sm:$0xff] %v1956_v2 }
  0xdc   :  { %v1073_v26 = vadd.f32 %v1072_v30, %v1010_v40  ;;  %880 = vst [vmem:[%s2296_s4 + $0x48] sm:$0xff] %v1304_v42  ;;  %v941_v36 = vadd.f32 %v1301_v34, %v940_v29  ;;  %v1013_v47 = vmul.f32 %v1304_v42, %v1304_v42  ;;  %v1965_v9 = vpop.f32.mrf.mxu1 }
  0xdd   :  { %v592_v43 = vpop.f32.mrf.mxu0  ;;  %906 = vst [vmem:[%s2296_s4 + $0x118] sm:$0xff] %v1965_v9 }
  0xde   :  { %879 = vst [vmem:[%s2296_s4 + $0x40] sm:$0xff] %v592_v43  ;;  %v942_v44 = vadd.f32 %v941_v36, %v592_v43  ;;  %v1012_v45 = vmul.f32 %v592_v43, %v592_v43  ;;  %v1074_v46 = vadd.f32 %v1073_v26, %v1011_v1  ;;  %v1974_v49 = vpop.f32.mrf.mxu1 }
  0xdf   :  { %v1307_v41 = vpop.f32.mrf.mxu0  ;;  %905 = vst [vmem:[%s2296_s4 + $0x110] sm:$0xff] %v1974_v49 }
  0xe0   :  { %v1075_v48 = vadd.f32 %v1074_v46, %v1012_v45  ;;  %882 = vst [vmem:[%s2296_s4 + $0x58] sm:$0xff] %v1307_v41  ;;  %v943_v50 = vadd.f32 %v1304_v42, %v942_v44  ;;  %v1015_v59 = vmul.f32 %v1307_v41, %v1307_v41  ;;  %v1983_v12 = vpop.f32.mrf.mxu1 }
  0xe1   :  { %v602_v52 = vpop.f32.mrf.mxu0  ;;  %908 = vst [vmem:[%s2296_s4 + $0x128] sm:$0xff] %v1983_v12 }
  0xe2   :  { %881 = vst [vmem:[%s2296_s4 + $0x50] sm:$0xff] %v602_v52  ;;  %v944_v53 = vadd.f32 %v943_v50, %v602_v52  ;;  %v1014_v54 = vmul.f32 %v602_v52, %v602_v52  ;;  %v1076_v55 = vadd.f32 %v1075_v48, %v1013_v47  ;;  %v1992_v18 = vpop.f32.mrf.mxu1 }
  0xe3   :  { %v1310_v57 = vpop.f32.mrf.mxu0  ;;  %907 = vst [vmem:[%s2296_s4 + $0x120] sm:$0xff] %v1992_v18 }
  0xe4   :  { %v1077_v60 = vadd.f32 %v1076_v55, %v1014_v54  ;;  %884 = vst [vmem:[%s2296_s4 + $0x68] sm:$0xff] %v1310_v57  ;;  %v945_v62 = vadd.f32 %v1307_v41, %v944_v53  ;;  %v1017_v6 = vmul.f32 %v1310_v57, %v1310_v57  ;;  %v2001_v23 = vpop.f32.mrf.mxu1 }
  0xe5   :  { %v612_v63 = vpop.f32.mrf.mxu0  ;;  %910 = vst [vmem:[%s2296_s4 + $0x138] sm:$0xff] %v2001_v23 }
  0xe6   :  { %883 = vst [vmem:[%s2296_s4 + $0x60] sm:$0xff] %v612_v63  ;;  %v946_v3 = vadd.f32 %v945_v62, %v612_v63  ;;  %v1016_v4 = vmul.f32 %v612_v63, %v612_v63  ;;  %v1078_v7 = vadd.f32 %v1077_v60, %v1015_v59  ;;  %v2010_v32 = vpop.f32.mrf.mxu1 }
  0xe7   :  { %v1313_v8 = vpop.f32.mrf.mxu0  ;;  %909 = vst [vmem:[%s2296_s4 + $0x130] sm:$0xff] %v2010_v32 }
  0xe8   :  { %v1079_v11 = vadd.f32 %v1078_v7, %v1016_v4  ;;  %886 = vst [vmem:[%s2296_s4 + $0x78] sm:$0xff] %v1313_v8  ;;  %v947_v51 = vadd.f32 %v1310_v57, %v946_v3  ;;  %v1019_v14 = vmul.f32 %v1313_v8, %v1313_v8  ;;  %v2019_v35 = vpop.f32.mrf.mxu1 }
  0xe9   :  { %v622_v13 = vpop.f32.mrf.mxu0  ;;  %912 = vst [vmem:[%s2296_s4 + $0x148] sm:$0xff] %v2019_v35 }
  0xea   :  { %885 = vst [vmem:[%s2296_s4 + $0x70] sm:$0xff] %v622_v13  ;;  %v948_v56 = vadd.f32 %v947_v51, %v622_v13  ;;  %v1018_v61 = vmul.f32 %v622_v13, %v622_v13  ;;  %v1080_v5 = vadd.f32 %v1079_v11, %v1017_v6  ;;  %v2028_v40 = vpop.f32.mrf.mxu1 }
  0xeb   :  { %v1316_v10 = vpop.f32.mrf.mxu0  ;;  %911 = vst [vmem:[%s2296_s4 + $0x140] sm:$0xff] %v2028_v40 }
  0xec   :  { %v1081_v15 = vadd.f32 %v1080_v5, %v1018_v61  ;;  %888 = vst [vmem:[%s2296_s4 + $0x88] sm:$0xff] %v1316_v10  ;;  %v949_v16 = vadd.f32 %v1313_v8, %v948_v56  ;;  %v1021_v24 = vmul.f32 %v1316_v10, %v1316_v10  ;;  %v2037_v36 = vpop.f32.mrf.mxu1 }
  0xed   :  { %v632_v17 = vpop.f32.mrf.mxu0  ;;  %914 = vst [vmem:[%s2296_s4 + $0x158] sm:$0xff] %v2037_v36 }
  0xee   :  { %887 = vst [vmem:[%s2296_s4 + $0x80] sm:$0xff] %v632_v17  ;;  %v950_v19 = vadd.f32 %v949_v16, %v632_v17  ;;  %v1020_v20 = vmul.f32 %v632_v17, %v632_v17  ;;  %v1082_v21 = vadd.f32 %v1081_v15, %v1019_v14  ;;  %v2046_v41 = vpop.f32.mrf.mxu1 }
  0xef   :  { %v1319_v22 = vpop.f32.mrf.mxu0  ;;  %913 = vst [vmem:[%s2296_s4 + $0x150] sm:$0xff] %v2046_v41 }
  0xf0   :  { %v1083_v27 = vadd.f32 %v1082_v21, %v1020_v20  ;;  %890 = vst [vmem:[%s2296_s4 + $0x98] sm:$0xff] %v1319_v22  ;;  %v951_v28 = vadd.f32 %v1316_v10, %v950_v19  ;;  %v1023_v37 = vmul.f32 %v1319_v22, %v1319_v22 }
  0xf1   :  { %v642_v31 = vpop.f32.mrf.mxu0 }
  0xf2   :  { %889 = vst [vmem:[%s2296_s4 + $0x90] sm:$0xff] %v642_v31  ;;  %v952_v0 = vadd.f32 %v951_v28, %v642_v31  ;;  %v1022_v25 = vmul.f32 %v642_v31, %v642_v31  ;;  %v1084_v33 = vadd.f32 %v1083_v27, %v1021_v24 }
  0xf3   :  { %v1322_v34 = vpop.f32.mrf.mxu0 }
  0xf4   :  { %v1085_v38 = vadd.f32 %v1084_v33, %v1022_v25  ;;  %892 = vst [vmem:[%s2296_s4 + $0xa8] sm:$0xff] %v1322_v34  ;;  %v953_v39 = vadd.f32 %v1319_v22, %v952_v0  ;;  %v1025_v43 = vmul.f32 %v1322_v34, %v1322_v34 }
  0xf5   :  { %v652_v29 = vpop.f32.mrf.mxu0 }
  0xf6   :  { %891 = vst [vmem:[%s2296_s4 + $0xa0] sm:$0xff] %v652_v29  ;;  %v954_v30 = vadd.f32 %v953_v39, %v652_v29  ;;  %v1024_v42 = vmul.f32 %v652_v29, %v652_v29  ;;  %v1086_v1 = vadd.f32 %v1085_v38, %v1023_v37  ;;  %v2055_v53 = vpop.f32.mrf.mxu1 }
  0xf7   :  { %v1325_v26 = vpop.f32.mrf.mxu0  ;;  %916 = vst [vmem:[%s2296_s4 + $0x168] sm:$0xff] %v2055_v53 }
  0xf8   :  { %v1087_v44 = vadd.f32 %v1086_v1, %v1024_v42  ;;  %894 = vst [vmem:[%s2296_s4 + $0xb8] sm:$0xff] %v1325_v26  ;;  %v955_v45 = vadd.f32 %v1322_v34, %v954_v30  ;;  %v1027_v54 = vmul.f32 %v1325_v26, %v1325_v26  ;;  %v2064_v60 = vpop.f32.mrf.mxu1 }
  0xf9   :  { %v662_v46 = vpop.f32.mrf.mxu0  ;;  %915 = vst [vmem:[%s2296_s4 + $0x160] sm:$0xff] %v2064_v60 }
  0xfa   :  { %893 = vst [vmem:[%s2296_s4 + $0xb0] sm:$0xff] %v662_v46  ;;  %v956_v47 = vadd.f32 %v955_v45, %v662_v46  ;;  %v1026_v48 = vmul.f32 %v662_v46, %v662_v46  ;;  %v1088_v50 = vadd.f32 %v1087_v44, %v1025_v43  ;;  %v2073_v7 = vpop.f32.mrf.mxu1  ;;  %v1036_v45 = vmul.f32 %v1956_v2, %v1956_v2 }
  0xfb   :  { %v1328_v52 = vpop.f32.mrf.mxu0  ;;  %918 = vst [vmem:[%s2296_s4 + $0x178] sm:$0xff] %v2073_v7 }
  0xfc   :  { %v1089_v55 = vadd.f32 %v1088_v50, %v1026_v48  ;;  %896 = vst [vmem:[%s2296_s4 + $0xc8] sm:$0xff] %v1328_v52  ;;  %v957_v57 = vadd.f32 %v1325_v26, %v956_v47  ;;  %v1029_v8 = vmul.f32 %v1328_v52, %v1328_v52  ;;  %v2082_v13 = vpop.f32.mrf.mxu1  ;;  %v1037_v47 = vmul.f32 %v1947_v58, %v1947_v58 }
  0xfd   :  { %v672_v59 = vpop.f32.mrf.mxu0  ;;  %917 = vst [vmem:[%s2296_s4 + $0x170] sm:$0xff] %v2082_v13 }
  0xfe   :  { %895 = vst [vmem:[%s2296_s4 + $0xc0] sm:$0xff] %v672_v59  ;;  %v958_v62 = vadd.f32 %v957_v57, %v672_v59  ;;  %v1028_v63 = vmul.f32 %v672_v59, %v672_v59  ;;  %v1090_v3 = vadd.f32 %v1089_v55, %v1027_v54  ;;  %v2091_v14 = vpop.f32.mrf.mxu1  ;;  %v1038_v54 = vmul.f32 %v1974_v49, %v1974_v49 }
  0xff   :  { %v1331_v4 = vpop.f32.mrf.mxu0  ;;  %920 = vst [vmem:[%s2296_s4 + $0x188] sm:$0xff] %v2091_v14 }
 0x100   :  { %v1091_v6 = vadd.f32 %v1090_v3, %v1028_v63  ;;  %898 = vst [vmem:[%s2296_s4 + $0xd8] sm:$0xff] %v1331_v4  ;;  %v959_v11 = vadd.f32 %v1328_v52, %v958_v62  ;;  %v1031_v15 = vmul.f32 %v1331_v4, %v1331_v4  ;;  %v2100_v20 = vpop.f32.mrf.mxu1  ;;  %v1040_v3 = vmul.f32 %v1992_v18, %v1992_v18 }
 0x101   :  { %v682_v51 = vpop.f32.mrf.mxu0  ;;  %919 = vst [vmem:[%s2296_s4 + $0x180] sm:$0xff] %v2100_v20 }
 0x102   :  { %897 = vst [vmem:[%s2296_s4 + $0xd0] sm:$0xff] %v682_v51  ;;  %v960_v56 = vadd.f32 %v959_v11, %v682_v51  ;;  %v1030_v61 = vmul.f32 %v682_v51, %v682_v51  ;;  %v1092_v5 = vadd.f32 %v1091_v6, %v1029_v8  ;;  %v2109_v28 = vpop.f32.mrf.mxu1 }
 0x103   :  { %v1334_v10 = vpop.f32.mrf.mxu0  ;;  %922 = vst [vmem:[%s2296_s4 + $0x198] sm:$0xff] %v2109_v28 }
 0x104   :  { %v1093_v16 = vadd.f32 %v1092_v5, %v1030_v61  ;;  %900 = vst [vmem:[%s2296_s4 + $0xe8] sm:$0xff] %v1334_v10  ;;  %v961_v17 = vadd.f32 %v1331_v4, %v960_v56  ;;  %v1033_v31 = vmul.f32 %v1334_v10, %v1334_v10  ;;  %v2118_v34 = vpop.f32.mrf.mxu1  ;;  %v1042_v56 = vmul.f32 %v2010_v32, %v2010_v32 }
 0x105   :  { %v692_v19 = vpop.f32.mrf.mxu0  ;;  %921 = vst [vmem:[%s2296_s4 + $0x190] sm:$0xff] %v2118_v34 }
 0x106   :  { %899 = vst [vmem:[%s2296_s4 + $0xe0] sm:$0xff] %v692_v19  ;;  %v962_v21 = vadd.f32 %v961_v17, %v692_v19  ;;  %v1032_v22 = vmul.f32 %v692_v19, %v692_v19  ;;  %v1094_v24 = vadd.f32 %v1093_v16, %v1031_v15  ;;  %v2127_v29 = vpop.f32.mrf.mxu1  ;;  %v1044_v17 = vmul.f32 %v2028_v40, %v2028_v40 }
 0x107   :  { %v1337_v27 = vpop.f32.mrf.mxu0  ;;  %924 = vst [vmem:[%s2296_s4 + $0x1a8] sm:$0xff] %v2127_v29 }
 0x108   :  { %v1095_v0 = vadd.f32 %v1094_v24, %v1032_v22  ;;  %902 = vst [vmem:[%s2296_s4 + $0xf8] sm:$0xff] %v1337_v27  ;;  %v963_v25 = vadd.f32 %v1334_v10, %v962_v21  ;;  %v1035_v30 = vmul.f32 %v1337_v27, %v1337_v27  ;;  %v2133_v26 = vpop.f32.mrf.mxu1 }
 0x109   :  { %v702_v33 = vpop.f32.mrf.mxu0  ;;  %923 = vst [vmem:[%s2296_s4 + $0x1a0] sm:$0xff] %v2133_v26 }
 0x10a   :  { %901 = vst [vmem:[%s2296_s4 + $0xf0] sm:$0xff] %v702_v33  ;;  %v964_v37 = vadd.f32 %v963_v25, %v702_v33  ;;  %v1034_v38 = vmul.f32 %v702_v33, %v702_v33  ;;  %v1096_v39 = vadd.f32 %v1095_v0, %v1033_v31  ;;  %v2142_v46 = vpop.f32.mrf.mxu1  ;;  %v1046_v31 = vmul.f32 %v2046_v41, %v2046_v41 }
 0x10b   :  { %926 = vst [vmem:[%s2296_s4 + $0x1b8] sm:$0xff] %v2142_v46  ;;  %v1047_v25 = vmul.f32 %v2037_v36, %v2037_v36 }
 0x10c   :  { %v965_v42 = vadd.f32 %v1337_v27, %v964_v37  ;;  %v1097_v1 = vadd.f32 %v1096_v39, %v1034_v38  ;;  %v2151_v52 = vpop.f32.mrf.mxu1  ;;  %v1048_v38 = vmul.f32 %v2064_v60, %v2064_v60 }
 0x10d   :  { %925 = vst [vmem:[%s2296_s4 + $0x1b0] sm:$0xff] %v2151_v52 }
 0x10e   :  { %v1098_v43 = vadd.f32 %v1097_v1, %v1035_v30  ;;  %v966_v44 = vadd.f32 %v965_v42, %v1956_v2  ;;  %v2160_v57 = vpop.f32.mrf.mxu1 }
 0x10f   :  { %928 = vst [vmem:[%s2296_s4 + $0x1c8] sm:$0xff] %v2160_v57 }
 0x110   :  { %v1099_v48 = vadd.f32 %v1098_v43, %v1036_v45  ;;  %v967_v50 = vadd.f32 %v1947_v58, %v966_v44  ;;  %v1039_v58 = vmul.f32 %v1965_v9, %v1965_v9  ;;  %v1050_v43 = vmul.f32 %v2082_v13, %v2082_v13 }
 0x112   :  { %v968_v2 = vadd.f32 %v967_v50, %v1974_v49  ;;  %v1100_v55 = vadd.f32 %v1099_v48, %v1037_v47  ;;  %v2169_v49 = vpop.f32.mrf.mxu1  ;;  %v1052_v48 = vmul.f32 %v2100_v20, %v2100_v20 }
 0x113   :  { %927 = vst [vmem:[%s2296_s4 + $0x1c0] sm:$0xff] %v2169_v49 }
 0x114   :  { %v1101_v59 = vadd.f32 %v1100_v55, %v1038_v54  ;;  %v969_v62 = vadd.f32 %v1965_v9, %v968_v2  ;;  %v2178_v8 = vpop.f32.mrf.mxu1  ;;  %v1041_v9 = vmul.f32 %v1983_v12, %v1983_v12  ;;  %v1054_v55 = vmul.f32 %v2118_v34, %v2118_v34 }
 0x115   :  { %930 = vst [vmem:[%s2296_s4 + $0x1d8] sm:$0xff] %v2178_v8 }
 0x116   :  { %v970_v63 = vadd.f32 %v969_v62, %v1992_v18  ;;  %v1102_v4 = vadd.f32 %v1101_v59, %v1039_v58  ;;  %v2187_v18 = vpop.f32.mrf.mxu1 }
 0x117   :  { %929 = vst [vmem:[%s2296_s4 + $0x1d0] sm:$0xff] %v2187_v18 }
 0x118   :  { %v1103_v6 = vadd.f32 %v1102_v4, %v1040_v3  ;;  %v971_v11 = vadd.f32 %v1983_v12, %v970_v63  ;;  %v2196_v5 = vpop.f32.mrf.mxu1  ;;  %v1043_v12 = vmul.f32 %v2001_v23, %v2001_v23  ;;  %v1056_v63 = vmul.f32 %v2133_v26, %v2133_v26 }
 0x119   :  { %932 = vst [vmem:[%s2296_s4 + $0x1e8] sm:$0xff] %v2196_v5 }
 0x11a   :  { %v972_v51 = vadd.f32 %v971_v11, %v2010_v32  ;;  %v1104_v61 = vadd.f32 %v1103_v6, %v1041_v9  ;;  %v2205_v32 = vpop.f32.mrf.mxu1  ;;  %v1058_v6 = vmul.f32 %v2151_v52, %v2151_v52 }
 0x11b   :  { %931 = vst [vmem:[%s2296_s4 + $0x1e0] sm:$0xff] %v2205_v32 }
 0x11c   :  { %v1105_v10 = vadd.f32 %v1104_v61, %v1042_v56  ;;  %v973_v15 = vadd.f32 %v2001_v23, %v972_v51  ;;  %v2214_v21 = vpop.f32.mrf.mxu1  ;;  %v1045_v23 = vmul.f32 %v2019_v35, %v2019_v35  ;;  %v1060_v61 = vmul.f32 %v2169_v49, %v2169_v49 }
 0x11d   :  { %934 = vst [vmem:[%s2296_s4 + $0x1f8] sm:$0xff] %v2214_v21 }
 0x11e   :  { %v974_v16 = vadd.f32 %v973_v15, %v2028_v40  ;;  %v1106_v19 = vadd.f32 %v1105_v10, %v1043_v12  ;;  %v862_v40 = vpop.f32.mrf.mxu1 }
 0x11f   :  { %933 = vst [vmem:[%s2296_s4 + $0x1f0] sm:$0xff] %v862_v40 }
 0x120   :  { %v1107_v22 = vadd.f32 %v1106_v19, %v1044_v17  ;;  %v975_v24 = vadd.f32 %v2019_v35, %v974_v16  ;;  %v1062_v16 = vmul.f32 %v2187_v18, %v2187_v18 }
 0x122   :  { %v976_v27 = vadd.f32 %v975_v24, %v2046_v41  ;;  %v1108_v0 = vadd.f32 %v1107_v22, %v1045_v23  ;;  %v1049_v41 = vmul.f32 %v2055_v53, %v2055_v53  ;;  %v1064_v22 = vmul.f32 %v2205_v32, %v2205_v32 }
 0x124   :  { %v1109_v35 = vadd.f32 %v1108_v0, %v1046_v31  ;;  %v977_v33 = vadd.f32 %v2037_v36, %v976_v27  ;;  %v1051_v36 = vmul.f32 %v2073_v7, %v2073_v7  ;;  %v1066_v0 = vmul.f32 %v862_v40, %v862_v40 }
 0x126   :  { %v978_v37 = vadd.f32 %v977_v33, %v2064_v60  ;;  %v1110_v39 = vadd.f32 %v1109_v35, %v1047_v25  ;;  %v1067_v35 = vmul.f32 %v2214_v21, %v2214_v21 }
 0x128   :  { %v1111_v30 = vadd.f32 %v1110_v39, %v1048_v38  ;;  %v979_v42 = vadd.f32 %v2055_v53, %v978_v37  ;;  %v1053_v53 = vmul.f32 %v2091_v14, %v2091_v14 }
 0x12a   :  { %v980_v1 = vadd.f32 %v979_v42, %v2082_v13  ;;  %v1112_v44 = vadd.f32 %v1111_v30, %v1049_v41 }
 0x12c   :  { %v1113_v45 = vadd.f32 %v1112_v44, %v1050_v43  ;;  %v981_v47 = vadd.f32 %v2073_v7, %v980_v1  ;;  %v1055_v7 = vmul.f32 %v2109_v28, %v2109_v28 }
 0x12e   :  { %v982_v60 = vadd.f32 %v981_v47, %v2100_v20  ;;  %v1114_v50 = vadd.f32 %v1113_v45, %v1051_v36 }
 0x130   :  { %v1115_v2 = vadd.f32 %v1114_v50, %v1052_v48  ;;  %v983_v54 = vadd.f32 %v2091_v14, %v982_v60  ;;  %v1057_v14 = vmul.f32 %v2127_v29, %v2127_v29 }
 0x132   :  { %v984_v13 = vadd.f32 %v983_v54, %v2118_v34  ;;  %v1116_v58 = vadd.f32 %v1115_v2, %v1053_v53 }
 0x134   :  { %v1117_v59 = vadd.f32 %v1116_v58, %v1054_v55  ;;  %v985_v62 = vadd.f32 %v2109_v28, %v984_v13  ;;  %v1059_v28 = vmul.f32 %v2142_v46, %v2142_v46 }
 0x136   :  { %v986_v20 = vadd.f32 %v985_v62, %v2133_v26  ;;  %v1118_v3 = vadd.f32 %v1117_v59, %v1055_v7 }
 0x138   :  { %v1119_v4 = vadd.f32 %v1118_v3, %v1056_v63  ;;  %v987_v9 = vadd.f32 %v2127_v29, %v986_v20  ;;  %v1061_v29 = vmul.f32 %v2160_v57, %v2160_v57 }
 0x13a   :  { %v988_v34 = vadd.f32 %v987_v9, %v2151_v52  ;;  %v1120_v11 = vadd.f32 %v1119_v4, %v1057_v14 }
 0x13c   :  { %v1121_v51 = vadd.f32 %v1120_v11, %v1058_v6  ;;  %v989_v56 = vadd.f32 %v2142_v46, %v988_v34  ;;  %v1063_v46 = vmul.f32 %v2178_v8, %v2178_v8 }
 0x13e   :  { %v990_v26 = vadd.f32 %v989_v56, %v2169_v49  ;;  %v1122_v12 = vadd.f32 %v1121_v51, %v1059_v28 }
 0x140   :  { %v1123_v10 = vadd.f32 %v1122_v12, %v1060_v61  ;;  %v991_v15 = vadd.f32 %v2160_v57, %v990_v26  ;;  %v1065_v57 = vmul.f32 %v2196_v5, %v2196_v5 }
 0x142   :  { %v992_v52 = vadd.f32 %v991_v15, %v2187_v18  ;;  %v1124_v17 = vadd.f32 %v1123_v10, %v1061_v29 }
 0x144   :  { %v1125_v19 = vadd.f32 %v1124_v17, %v1062_v16  ;;  %v993_v23 = vadd.f32 %v2178_v8, %v992_v52 }
 0x146   :  { %v994_v49 = vadd.f32 %v993_v23, %v2205_v32  ;;  %v1126_v24 = vadd.f32 %v1125_v19, %v1063_v46 }
 0x148   :  { %v1127_v27 = vadd.f32 %v1126_v24, %v1064_v22  ;;  %v995_v31 = vadd.f32 %v2196_v5, %v994_v49 }
 0x14a   :  { %v996_v18 = vadd.f32 %v995_v31, %v862_v40  ;;  %v1128_v25 = vadd.f32 %v1127_v27, %v1065_v57 }
 0x14c   :  { %v997_v8 = vadd.f32 %v2214_v21, %v996_v18  ;;  %v1129_v33 = vadd.f32 %v1128_v25, %v1066_v0 }
 0x14e   :  { %v998_v37 = vrot.slane %v997_v8, 4  ;;  %v1130_v38 = vadd.f32 %v1129_v33, %v1067_v35 }
 0x150   :  { %v999_v39 = vadd.f32 %v998_v37, %v997_v8  ;;  %v1131_v32 = vrot.slane %v1130_v38, 4 }
 0x152   :  { %v1000_v41 = vrot.slane %v999_v39, 2  ;;  %v1132_v30 = vadd.f32 %v1131_v32, %v1130_v38 }
 0x154   :  { %v1001_v42 = vadd.f32 %v1000_v41, %v999_v39  ;;  %v1133_v1 = vrot.slane %v1132_v30, 2 }
 0x156   :  { %v1002_v43 = vrot.slane %v1001_v42, 1  ;;  %v1134_v44 = vadd.f32 %v1133_v1, %v1132_v30 }
 0x158   :  { %v1135_v5 = vrot.slane %v1134_v44, 1  ;;  %v1003_v40 = vadd.f32 %v1002_v43, %v1001_v42 }
 0x15a   :  { %v1136_v36 = vadd.f32 %v1135_v5, %v1134_v44 }
 0x15c   :  { %v1138_v45 = vsel %vm1137_vm1, %v1003_v40, %v1136_v36 }
 0x15d   :  { %1139 = vst [vmem:[%s2297_s5] sm:$0x3] %v1138_v45 }

// kernel: bottleneck_forward.5
= control target key start
LH: loop header
LB: loop body
LE: loop exit
PB: predicated region body
PF: predicated region fallthrough
CT: control target
= control target key end

     0   :  { %s3975_s24 = smov 0   ;;  %s3977_s25 = smov 0   ;;  %s5286_s0 = inlined_call_operand.vmem [shape: f32[2,16,16,32], index: 0, kind: input, shape index: {}, may-alias: {0,1,2}]   ;;  %s5287_s1 = inlined_call_operand.vmem [shape: f32[2,16,16,32], index: 1, kind: input, shape index: {}, may-alias: {0,1,2}]   ;;  %s5288_s2 = inlined_call_operand.vmem [shape: f32[2,16,16,32], index: 2, kind: input, shape index: {}, may-alias: {0,1,2}]   ;;  %s5289_s3 = inlined_call_operand.vmem [shape: f32[1,32], index: 3, kind: input, shape index: {}]   ;;  %s5290_s4 = inlined_call_operand.vmem [shape: f32[1,32], index: 4, kind: input, shape index: {}]   ;;  %s5291_s5 = inlined_call_operand.vmem [shape: f32[3,3,32,32], index: 5, kind: input, shape index: {}]   ;;  %s5292_s6 = inlined_call_operand.vmem [shape: f32[2,16,16,32], index: 6, kind: output, shape index: {0}]   ;;  %s5293_s7 = inlined_call_operand.vmem [shape: f32[2,2,2,32], index: 7, kind: output, shape index: {1}]  }
   0x1   :  { %s3979_s26 = smov 0   ;;  %s3981_s27 = smov 0  }
   0x2   :  { %s3983_s28 = smov 0  }
   0x3 LB: > { %s27_s29 = sadd.s32 1, %s3924_s26  ;;  %s30_s30 = sadd.s32 1, %s3928_s27  ;;  %s3932_s28 = sphi %s3983_s28, %s18_s28   ;;  %s3928_s27 = sphi %s3981_s27, %s5324_s27   ;;  %s3924_s26 = sphi %s3979_s26, %s5323_s26   ;;  %s3920_s25 = sphi %s3977_s25, %s5322_s25   ;;  %s3916_s24 = sphi %s3975_s24, %s5321_s24  }
   0x4   : > { %p28_p0 = scmp.ge.s32.totalorder %s27_s29, 2  ;;  %p2971_p1 = scmp.ge.s32.totalorder %s3932_s28, 1 }
   0x5   : > { %p328_p2 = scmp.lt.s32.totalorder %s3932_s28, 5 }
   0x6   : > { %s5326_s29 = smov (%p28_p0, %s27_s29), 0  ;;  %s5328_s30 = smov (!%p28_p0, %s30_s30), %s3928_s27 }
   0x7   : > { %p329_p3 = pnand %p2971_p1, %p328_p2  ;;  %p32_p4 = scmp.ge.s32.totalorder %s5328_s30, 2 }
   0x9   : > { %s5330_s30 = smov (%p32_p4, %s5328_s30), 0  ;;  %332 = sbr.rel (%p329_p3) target bundleno = 468 (0x1d4), region = 44 }
   0xe   : > { %v685_v0 = vld [vmem:[%s5291_s5 + $0x38] sm:$0xff]  ;;  %v684_v1 = vld [vmem:[%s5291_s5 + $0x30] sm:$0xff]  ;;  %s4014_s12 = sshll.u32 %s3916_s24, 3  ;;  %p405_p5 = scmp.lt.s32.totalorder %s3920_s25, 1  ;;  %v683_v2 = vld [vmem:[%s5291_s5 + $0x28] sm:$0xff]  ;;  %vm714_vm0 = vcmask 261120   ;;  %v594_v60 = vlaneseq }
   0xf   : > { %3845 = vmatprep.subr.mxu1 %v685_v0  ;;  %3449 = vmatprep.subr.mxu0 %v685_v0  ;;  %p407_p6 = scmp.lt.s32.totalorder %s4014_s12, 15  ;;  %v682_v3 = vld [vmem:[%s5291_s5 + $0x20] sm:$0xff]  ;;  %s4030_s19 = sadd.s32 4294967295, %s4014_s12  ;;  %v681_v4 = vld [vmem:[%s5291_s5 + $0x18] sm:$0xff]  ;;  %v680_v26 = vld [vmem:[%s5291_s5 + $0x10] sm:$0xff]  ;;  %v5295_v35 = vmov 0.0  }
  0x10   : > { %3849 = vmatpush3.msra.mxu1 %v685_v0  ;;  %3450 = vmatpush3.msra.mxu0 %v685_v0  ;;  %s5332_s25 = smov (!%p405_p5, %s3920_s25), 1  ;;  %p417_p7 = scmp.gt.s32.totalorder %s4030_s19, 0  ;;  %v4042_v5 = vld [vmem:[%s5291_s5 + $0x58] sm:$0xff]  ;;  %v4048_v6 = vld [vmem:[%s5289_s3] ss:$0 sm:$0xff]  ;;  %v679_v39 = vld [vmem:[%s5291_s5 + $0x8] sm:$0xff] }
  0x11   : > { %3846 = vmatprep.subr.mxu1 %v684_v1  ;;  %3451 = vmatprep.subr.mxu0 %v684_v1  ;;  %s408_s15 = scalar_select %p407_p6, %s4014_s12, 15  ;;  %v4061_v7 = vld [vmem:[%s5290_s4] ss:$0 sm:$0xff]  ;;  %v688_v61 = vld [vmem:[%s5291_s5 + $0x50] sm:$0xff]  ;;  %v4166_v0 = vld [vmem:[%s5291_s5 + $0x78] sm:$0xff]  ;;  %vm2769_vm5 = vcmask 1040384  }
  0x12   : > { %3850 = vmatpush3.msra.mxu1 %v684_v1  ;;  %3452 = vmatpush3.msra.mxu0 %v684_v1  ;;  %s4027_s18 = sshll.u32 %s5332_s25, 5  ;;  %p2978_p8 = scmp.lt.s32.totalorder %s4030_s19, 15  ;;  %v678_v46 = vld [vmem:[%s5291_s5] sm:$0xff]  ;;  %vm2771_vm6 = vcmask 254976  }
  0x13   : > { %3847 = vmatprep.subr.mxu1 %v683_v2  ;;  %3453 = vmatprep.subr.mxu0 %v683_v2  ;;  %s2973_s20 = sshll.u32 %s408_s15, 1  ;;  %p546_p9 = scmp.eq.s32.totalorder %s3916_s24, 0 }
  0x14   : > { %3851 = vmatpush3.msra.mxu1 %v683_v2  ;;  %s4034_s21 = sadd.s32 %s4027_s18, %s2973_s20  ;;  %3454 = vmatpush3.msra.mxu0 %v683_v2  ;;  %p560_p11 = scmp.eq.s32.totalorder %s3916_s24, 1 }
  0x15   : > { %3848 = vmatprep.subr.mxu1 %v682_v3  ;;  %s2975_s10 = sshll.u32 %s4034_s21, 3  ;;  %3455 = vmatprep.subr.mxu0 %v682_v3  ;;  %p462_p12 = scmp.lt.s32.totalorder %s3916_s24, 1 }
  0x16   : > { %3852 = vmatpush3.msra.mxu1 %v682_v3  ;;  %s4056_s16 = scalar_lea.vmem %s5286_s0, %s2975_s10  ;;  %3456 = vmatpush3.msra.mxu0 %v682_v3  ;;  %s2997_s21 = sshll.u32 %s5332_s25, 1 }
  0x17   : > { %v476_v8 = vld [vmem:[%s4056_s16 + $0x30] sm:$0xff]  ;;  %v477_v9 = vld [vmem:[%s4056_s16 + $0x38] sm:$0xff]  ;;  %3493 = vmatprep.subr.mxu1 %v681_v4  ;;  %s418_s22 = scalar_select %p417_p7, %s4030_s19, 0  ;;  %3537 = vmatprep.subr.mxu0 %v4042_v5  ;;  %v478_v10 = vld [vmem:[%s4056_s16 + $0x40] sm:$0xff] }
  0x18   : > { %v498_v11 = vmul.f32 %v4048_v6, %v476_v8  ;;  %v499_v12 = vmul.f32 %v4048_v6, %v477_v9  ;;  %v500_v13 = vmul.f32 %v4048_v6, %v478_v10  ;;  %v479_v14 = vld [vmem:[%s4056_s16 + $0x48] sm:$0xff]  ;;  %v480_v16 = vld [vmem:[%s4056_s16 + $0x50] sm:$0xff]  ;;  %s4083_s23 = scalar_select %p546_p9, 1, 0  ;;  %v470_v23 = vld [vmem:[%s4056_s16] sm:$0xff]  ;;  %v4182_v10 = vshrl.u32 %v594_v60, 7 }
  0x19   : > { %s5334_s22 = smov (!%p2978_p8, %s418_s22), 15  ;;  %v501_v15 = vmul.f32 %v4048_v6, %v479_v14  ;;  %v502_v24 = vmul.f32 %v4048_v6, %v480_v16  ;;  %v481_v25 = vld [vmem:[%s4056_s16 + $0x58] sm:$0xff]  ;;  %v471_v27 = vld [vmem:[%s4056_s16 + $0x8] sm:$0xff]  ;;  %v492_v32 = vmul.f32 %v4048_v6, %v470_v23  ;;  %v482_v40 = vld [vmem:[%s4056_s16 + $0x60] sm:$0xff]  ;;  %s5340_s24 = smov (!%p462_p12, %s3916_s24), 1 }
  0x1a   : > { %v520_v17 = vadd.f32 %v4061_v7, %v498_v11  ;;  %v521_v18 = vadd.f32 %v4061_v7, %v499_v12  ;;  %s2983_s8 = sshll.u32 %s5334_s22, 1  ;;  %v522_v19 = vadd.f32 %v4061_v7, %v500_v13  ;;  %v556_v29 = vstv %s4083_s23  ;;  %v483_v42 = vld [vmem:[%s4056_s16 + $0x68] sm:$0xff]  ;;  %v472_v45 = vld [vmem:[%s4056_s16 + $0x10] sm:$0xff]  ;;  %v473_v57 = vld [vmem:[%s4056_s16 + $0x18] sm:$0xff]  ;;  %s5160_s23 = scalar_lea.vmem %s5292_s6, %s2975_s10 }
  0x1b   : > { %s425_s19 = sadd.s32 %s2983_s8, %s4027_s18  ;;  %v523_v22 = vadd.f32 %v4061_v7, %v501_v15  ;;  %v503_v33 = vmul.f32 %v4048_v6, %v481_v25  ;;  %v524_v38 = vadd.f32 %v4061_v7, %v502_v24  ;;  %v493_v41 = vmul.f32 %v4048_v6, %v471_v27  ;;  %v474_v9 = vld [vmem:[%s4056_s16 + $0x20] sm:$0xff]  ;;  %v687_v11 = vld [vmem:[%s5291_s5 + $0x48] sm:$0xff]  ;;  %s433_s8 = sadd.s32 8, %s4014_s12 }
  0x1c   : > { %v4086_v20 = vmax.f32 %v520_v17, 0.0  ;;  %v4088_v21 = vmax.f32 %v521_v18, 0.0  ;;  %s2985_s9 = sshll.u32 %s425_s19, 3  ;;  %v4107_v31 = vmax.f32 %v522_v19, 0.0  ;;  %vm4129_vm1 = vcmp.eq.s32.totalorder %v556_v29, 1  ;;  %v475_v12 = vld [vmem:[%s4056_s16 + $0x28] sm:$0xff]  ;;  %s465_s10 = sadd.s32 %s2997_s21, %s5340_s24 }
  0x1d   : > { %s427_s14 = scalar_lea.vmem %s5287_s1, %s2985_s9  ;;  %v4114_v37 = vmax.f32 %v523_v22, 0.0  ;;  %v514_v48 = vadd.f32 %v4061_v7, %v492_v32  ;;  %v525_v49 = vadd.f32 %v4061_v7, %v503_v33  ;;  %v504_v50 = vmul.f32 %v4048_v6, %v482_v40  ;;  %v686_v16 = vld [vmem:[%s5291_s5 + $0x40] sm:$0xff]  ;;  %v4215_v22 = vld [vmem:[%s5291_s5 + $0x98] sm:$0xff]  ;;  %p4232_p10 = scmp.lt.s32.totalorder %s433_s8, 15 }
  0x1e   : > { %3475 = vmatprep.mubr.msk.f32.mxu1 %vm714_vm0, %v4086_v20  ;;  %v547_v28 = vld [vmem:[%s427_s14] sm:$0xff]  ;;  %v548_v30 = vld [vmem:[%s427_s14 + $0x8] sm:$0xff]  ;;  %v4140_v53 = vmax.f32 %v524_v38, 0.0  ;;  %v505_v54 = vmul.f32 %v4048_v6, %v483_v42  ;;  %v515_v55 = vadd.f32 %v4061_v7, %v493_v41  ;;  %v494_v56 = vmul.f32 %v4048_v6, %v472_v45  ;;  %v692_v41 = vld [vmem:[%s5291_s5 + $0x70] sm:$0xff] }
  0x1f   : > { %3476 = vmatmul.mubr.msk.f32.vlgmr.msra.gmra.mxu1 %vm714_vm0, %v4088_v21  ;;  %v549_v34 = vmul.f32 %v4048_v6, %v547_v28  ;;  %v550_v36 = vmul.f32 %v4048_v6, %v548_v30  ;;  %v4160_v62 = vmax.f32 %v525_v49, 0.0  ;;  %v526_v63 = vadd.f32 %v4061_v7, %v504_v50  ;;  %s5336_s8 = smov (!%p4232_p10, %s433_s8), 15 }
  0x20   : > { %3494 = vmatpush3.msra.mxu1 %v681_v4  ;;  %3478 = vmatprep.mubr.f32.mxu1 %v5295_v35  ;;  %v4170_v1 = vmax.f32 %v514_v48, 0.0  ;;  %v495_v2 = vmul.f32 %v4048_v6, %v473_v57  ;;  %v527_v3 = vadd.f32 %v4061_v7, %v505_v54  ;;  %v4178_v4 = vmax.f32 %v515_v55, 0.0  ;;  %s5338_s8 = smov (!%p4232_p10, %s5336_s8), 15 }
  0x21   : > { %3495 = vmatprep.subr.mxu1 %v680_v26  ;;  %v551_v43 = vadd.f32 %v4061_v7, %v549_v34  ;;  %v552_v44 = vadd.f32 %v4061_v7, %v550_v36  ;;  %v516_v8 = vadd.f32 %v4061_v7, %v494_v56  ;;  %v496_v15 = vmul.f32 %v4048_v6, %v474_v9  ;;  %v484_v34 = vld [vmem:[%s4056_s16 + $0x70] sm:$0xff]  ;;  %v485_v36 = vld [vmem:[%s4056_s16 + $0x78] sm:$0xff]  ;;  %s2990_s16 = sshll.u32 %s5338_s8, 1 }
  0x22   : > { %3496 = vmatpush3.msra.mxu1 %v680_v26  ;;  %v517_v13 = vadd.f32 %v4061_v7, %v495_v2  ;;  %v4197_v14 = vmax.f32 %v527_v3, 0.0  ;;  %v497_v19 = vmul.f32 %v4048_v6, %v475_v12  ;;  %vm596_vm2 = vcmp.lt.s32.totalorder %v4182_v10, 1  ;;  %s442_s11 = sadd.s32 %s2990_s16, %s4027_s18 }
  0x23   : > { %3479 = vmatmul.mubr.msk.f32.gmra.mxu1 %vm714_vm0, %v4107_v31  ;;  %3497 = vmatprep.subr.mxu1 %v679_v39  ;;  %v553_v51 = vmax.f32 %v551_v43, 0.0  ;;  %v554_v52 = vmax.f32 %v552_v44, 0.0  ;;  %v4206_v18 = vmax.f32 %v516_v8, 0.0  ;;  %v518_v25 = vadd.f32 %v4061_v7, %v496_v15  ;;  %s2992_s15 = sshll.u32 %s442_s11, 3 }
  0x24   : > { %3481 = vmatprep.mubr.msk.f32.mxu1 %vm714_vm0, %v4114_v37  ;;  %3498 = vmatpush3.msra.mxu1 %v679_v39  ;;  %v4219_v24 = vmax.f32 %v517_v13, 0.0  ;;  %v519_v26 = vadd.f32 %v4061_v7, %v497_v19  ;;  %v576_v30 = vrot.slane %v4170_v1, 7  ;;  %v577_v33 = vrot.slane %v4178_v4, 7  ;;  %s444_s20 = scalar_lea.vmem %s5288_s2, %s2992_s15  ;;  %v695_v19 = vld [vmem:[%s5291_s5 + $0x88] sm:$0xff] }
  0x25   : > { %3499 = vmatprep.subr.mxu1 %v678_v46  ;;  %v4148_v58 = vsel %vm4129_vm1, 0.0, %v553_v51  ;;  %v4152_v59 = vsel %vm4129_vm1, 0.0, %v554_v52  ;;  %v4238_v28 = vmax.f32 %v518_v25, 0.0  ;;  %vm647_vm3 = vcmp.lt.s32.totalorder %v4182_v10, 7  ;;  %v691_v51 = vld [vmem:[%s5291_s5 + $0x68] sm:$0xff] }
  0x26   : > { %5305 = vst [vmem:[#allocation2_spill] sm:$0xff] %v4148_v58  ;;  %3500 = vmatpush3.msra.mxu1 %v678_v46  ;;  %3457 = vmatprep.mubr.msk.f32.mxu0 %vm714_vm0, %v4148_v58  ;;  %v574_v17 = vrot.slane %v4148_v58, 7  ;;  %v575_v23 = vrot.slane %v4152_v59, 7  ;;  %v4245_v32 = vmax.f32 %v519_v26, 0.0  ;;  %v5294_v38 = vrot.slane %v4148_v58, 1  ;;  %v562_v9 = vld [vmem:[%s444_s20 + $0x8] sm:$0xff] }
  0x27   : > { %3482 = vmatmul.mubr.f32.gmra.mxu1 %v5295_v35  ;;  %3458 = vmatmul.mubr.msk.f32.vlgmr.msra.gmra.mxu0 %vm714_vm0, %v4152_v59  ;;  %v628_v39 = vrot.slane %v4152_v59, 1  ;;  %v4268_v42 = vsel %vm596_vm2, 0.0, %v576_v30  ;;  %v506_v43 = vmul.f32 %v4048_v6, %v484_v34  ;;  %v507_v44 = vmul.f32 %v4048_v6, %v485_v36  ;;  %v561_v59 = vld [vmem:[%s444_s20] sm:$0xff]  ;;  %s569_s8 = scalar_select %p560_p11, 1, 0 }
  0x28   : > { %3484 = vmatprep.mubr.msk.f32.mxu1 %vm714_vm0, %v4140_v53  ;;  %3538 = vmatpush3.msra.mxu0 %v4042_v5  ;;  %v4191_v5 = vmax.f32 %v526_v63, 0.0  ;;  %v626_v27 = vsel %vm596_vm2, 0.0, %v574_v17  ;;  %v625_v29 = vsel %vm596_vm2, %v574_v17, %v575_v23  ;;  %v624_v40 = vsel %vm596_vm2, %v575_v23, 0.0  ;;  %v696_v63 = vld [vmem:[%s5291_s5 + $0x90] sm:$0xff] }
  0x29   : > { %3460 = vmatprep.mubr.f32.mxu0 %v5295_v35  ;;  %3539 = vmatprep.subr.mxu0 %v688_v61  ;;  %v4277_v45 = vsel %vm596_vm2, %v576_v30, %v577_v33  ;;  %v578_v46 = vrot.slane %v4206_v18, 7  ;;  %v676_v47 = vsel %vm647_vm3, %v5294_v38, %v628_v39  ;;  %v629_v48 = vrot.slane %v4170_v1, 1 }
  0x2a   : > { %3581 = vmatprep.subr.mxu1 %v4166_v0  ;;  %3540 = vmatpush3.msra.mxu0 %v688_v61  ;;  %v4286_v49 = vadd.f32 %v4061_v7, %v506_v43  ;;  %v4289_v50 = vadd.f32 %v4061_v7, %v507_v44  ;;  %v4302_v52 = vsel %vm596_vm2, %v577_v33, 0.0  ;;  %v630_v54 = vrot.slane %v4178_v4, 1 }
  0x2b   : > { %3485 = vmatmul.mubr.msk.f32.gmra.mxu1 %vm714_vm0, %v4160_v62  ;;  %3461 = vmatmul.mubr.msk.f32.gmra.mxu0 %vm714_vm0, %v4170_v1  ;;  %v579_v55 = vrot.slane %v4219_v24, 7  ;;  %v675_v56 = vsel %vm647_vm3, %v628_v39, 0.0  ;;  %v4314_v57 = vsel %vm596_vm2, 0.0, %v578_v46  ;;  %v674_v60 = vsel %vm647_vm3, 0.0, %v629_v48 }
  0x2c   : > { %3487 = vmatprep.mubr.f32.mxu1 %v5295_v35  ;;  %3463 = vmatprep.mubr.msk.f32.mxu0 %vm714_vm0, %v4178_v4  ;;  %v563_v61 = vmul.f32 %v4048_v6, %v561_v59  ;;  %v631_v3 = vrot.slane %v4206_v18, 1  ;;  %v580_v8 = vrot.slane %v4238_v28, 7  ;;  %v581_v12 = vrot.slane %v4245_v32, 7 }
  0x2d   : > { %3541 = vmatprep.subr.mxu0 %v687_v11  ;;  %v4334_v2 = vsel %vm596_vm2, %v578_v46, %v579_v55  ;;  %v564_v13 = vmul.f32 %v4048_v6, %v562_v9  ;;  %v632_v17 = vrot.slane %v4219_v24, 1  ;;  %v690_v6 = vld [vmem:[%s5291_s5 + $0x60] sm:$0xff]  ;;  %v570_v25 = vstv %s569_s8  ;;  %s2998_s8 = sshll.u32 %s465_s10, 1 }
  0x2e   : > { %3542 = vmatpush3.msra.mxu0 %v687_v11  ;;  %v4342_v11 = vsel %vm596_vm2, %v579_v55, 0.0  ;;  %v565_v15 = vadd.f32 %v4061_v7, %v563_v61  ;;  %v4367_v26 = vsel %vm647_vm3, 0.0, %v631_v3  ;;  %vm571_vm4 = vcmp.eq.s32.totalorder %v570_v25, 1  ;;  %s467_s9 = scalar_lea.vmem %s5293_s7, %s2998_s8 }
  0x2f   : > { %3488 = vmatmul.mubr.msk.f32.gmra.mxu1 %vm714_vm0, %v4191_v5  ;;  %3543 = vmatprep.subr.mxu0 %v686_v16  ;;  %v582_v30 = vrot.slane %v4086_v20, 7  ;;  %v4389_v36 = vsel %vm647_vm3, %v631_v3, %v632_v17  ;;  %v633_v39 = vrot.slane %v4238_v28, 1  ;;  %v4408_v44 = vsel %vm596_vm2, %v581_v12, 0.0 }
  0x30   : > { %3464 = vmatmul.mubr.f32.gmra.mxu0 %v5295_v35  ;;  %3490 = vmatprep.mubr.msk.f32.mxu1 %vm714_vm0, %v4197_v14  ;;  %v567_v23 = vmax.f32 %v565_v15, 0.0  ;;  %v583_v46 = vrot.slane %v4088_v21, 7  ;;  %v634_v55 = vrot.slane %v4245_v32, 1  ;;  %v584_v3 = vrot.slane %v4107_v31, 7 }
  0x31   : > { %3466 = vmatprep.mubr.msk.f32.mxu0 %vm714_vm0, %v4206_v18  ;;  %3544 = vmatpush3.msra.mxu0 %v686_v16  ;;  %v4351_v16 = vsel %vm647_vm3, %v630_v54, 0.0  ;;  %v4434_v59 = vsel %vm647_vm3, 0.0, %v633_v39  ;;  %v635_v9 = vrot.slane %v4086_v20, 1  ;;  %v589_v38 = vrot.slane %v4197_v14, 7 }
  0x32   : > { %3625 = vmatprep.subr.mxu0 %v4215_v22  ;;  %v4385_v34 = vsel %vm571_vm4, 0.0, %v567_v23  ;;  %v4471_v15 = vsel %vm647_vm3, %v634_v55, 0.0  ;;  %v586_v23 = vrot.slane %v4140_v53, 7 }
  0x33   : > { %3491 = vmatmul.mubr.f32.gmra.mxu1 %v5295_v35 }
  0x34   : > { %3467 = vmatmul.mubr.msk.f32.gmra.mxu0 %vm714_vm0, %v4219_v24  ;;  %3501 = vmatprep.mubr.msk.f32.mxu1 %vm714_vm0, %v626_v27  ;;  %v4373_v27 = vsel %vm596_vm2, 0.0, %v580_v8 }
  0x35   : > { %3469 = vmatprep.mubr.f32.mxu0 %v5295_v35 }
  0x37   : > { %3502 = vmatmul.mubr.msk.f32.vlgmr.msra.gmra.mxu1 %vm714_vm0, %v625_v29  ;;  %v4382_v29 = vsel %vm596_vm2, %v580_v8, %v581_v12  ;;  %v4461_v8 = vsel %vm647_vm3, %v633_v39, %v634_v55  ;;  %v4466_v12 = vsel %vm596_vm2, %v583_v46, 0.0 }
  0x38   : > { %3470 = vmatmul.mubr.msk.f32.gmra.mxu0 %vm714_vm0, %v4238_v28  ;;  %3582 = vmatpush3.msra.mxu1 %v4166_v0  ;;  %v4328_v0 = vsel %vm647_vm3, %v629_v48, %v630_v54  ;;  %v4425_v54 = vsel %vm647_vm3, %v632_v17, 0.0  ;;  %v636_v17 = vrot.slane %v4088_v21, 1 }
  0x39   : > { %3472 = vmatprep.mubr.msk.f32.mxu0 %vm714_vm0, %v4245_v32  ;;  %3504 = vmatprep.mubr.msk.f32.mxu1 %vm714_vm0, %v624_v40  ;;  %v592_v40 = vrot.slane %v4385_v34, 7 }
  0x3a   : > { %3583 = vmatprep.subr.mxu1 %v692_v41  ;;  %v4497_v25 = vsel %vm647_vm3, %v635_v9, %v636_v17  ;;  %v4515_v39 = vsel %vm647_vm3, %v636_v17, 0.0 }
  0x3b   : > { %3505 = vmatmul.mubr.msk.f32.gmra.mxu1 %vm714_vm0, %v4268_v42  ;;  %v4418_v48 = vsel %vm596_vm2, 0.0, %v592_v40 }
  0x3c   : > { %3473 = vmatmul.mubr.f32.gmra.mxu0 %v5295_v35  ;;  %3507 = vmatprep.mubr.msk.f32.mxu1 %vm714_vm0, %v4277_v45  ;;  %5307 = vst [vmem:[#allocation3_spill] sm:$0xff] %v4418_v48  ;;  %v640_v35 = vrot.slane %v4160_v62, 1  ;;  %v4597_v48 = vmax.f32 %v4286_v49, 0.0 }
  0x3d   : > { %3545 = vmatprep.mubr.msk.f32.mxu0 %vm714_vm0, %v676_v47  ;;  %3584 = vmatpush3.msra.mxu1 %v692_v41  ;;  %v4398_v41 = vld [vmem:[%s5291_s5 + $0xb8] sm:$0xff] }
  0x3e   : > { %3585 = vmatprep.subr.mxu1 %v691_v51  ;;  %v4414_v47 = vld [vmem:[%s5291_s5 + $0xd8] sm:$0xff] }
  0x3f   : > { %3508 = vmatmul.mubr.msk.f32.gmra.mxu1 %vm714_vm0, %v4302_v52 }
  0x40   : > { %3546 = vmatmul.mubr.msk.f32.vlgmr.msra.gmra.mxu0 %vm714_vm0, %v675_v56  ;;  %3510 = vmatprep.mubr.msk.f32.mxu1 %vm714_vm0, %v4314_v57  ;;  %v4430_v56 = vsel %vm596_vm2, 0.0, %v582_v30 }
  0x41   : > { %3626 = vmatpush3.msra.mxu0 %v4215_v22  ;;  %3548 = vmatprep.mubr.msk.f32.mxu0 %vm714_vm0, %v674_v60  ;;  %v566_v22 = vadd.f32 %v4061_v7, %v564_v13  ;;  %v694_v7 = vld [vmem:[%s5291_s5 + $0x80] sm:$0xff]  ;;  %v585_v13 = vrot.slane %v4114_v37, 7 }
  0x42   : > { %3627 = vmatprep.subr.mxu0 %v696_v63  ;;  %3586 = vmatpush3.msra.mxu1 %v691_v51 }
  0x43   : > { %3511 = vmatmul.mubr.msk.f32.gmra.mxu1 %vm714_vm0, %v4334_v2  ;;  %3628 = vmatpush3.msra.mxu0 %v696_v63  ;;  %v568_v33 = vmax.f32 %v566_v22, 0.0  ;;  %v4454_v63 = vsel %vm596_vm2, %v582_v30, %v583_v46  ;;  %v4492_v22 = vsel %vm596_vm2, %v584_v3, %v585_v13  ;;  %v4508_v30 = vsel %vm596_vm2, %v585_v13, 0.0 }
  0x44   : > { %3549 = vmatmul.mubr.msk.f32.gmra.mxu0 %vm714_vm0, %v4328_v0  ;;  %3513 = vmatprep.mubr.msk.f32.mxu1 %vm714_vm0, %v4342_v11  ;;  %v4520_v46 = vsel %vm596_vm2, 0.0, %v586_v23  ;;  %v639_v13 = vrot.slane %v4140_v53, 1 }
  0x45   : > { %3551 = vmatprep.mubr.msk.f32.mxu0 %vm714_vm0, %v4351_v16  ;;  %3629 = vmatprep.subr.mxu0 %v695_v19  ;;  %v4400_v43 = vsel %vm571_vm4, 0.0, %v568_v33  ;;  %v587_v33 = vrot.slane %v4160_v62, 7 }
  0x46   : > { %3630 = vmatpush3.msra.mxu0 %v695_v19  ;;  %3587 = vmatprep.subr.mxu1 %v690_v6  ;;  %v593_v51 = vrot.slane %v4400_v43, 7  ;;  %v4482_v19 = vsel %vm596_vm2, 0.0, %v584_v3  ;;  %v588_v3 = vrot.slane %v4191_v5, 7  ;;  %v4576_v58 = vsel %vm647_vm3, %v639_v13, %v640_v35 }
  0x47   : > { %3514 = vmatmul.mubr.msk.f32.gmra.mxu1 %vm714_vm0, %v4373_v27  ;;  %3631 = vmatprep.subr.mxu0 %v694_v7  ;;  %v4534_v55 = vsel %vm596_vm2, %v586_v23, %v587_v33  ;;  %v4546_v17 = vsel %vm596_vm2, %v587_v33, 0.0  ;;  %v4568_v33 = vsel %vm647_vm3, 0.0, %v639_v13  ;;  %v642_v13 = vrot.slane %v4197_v14, 1 }
  0x48   : > { %3552 = vmatmul.mubr.msk.f32.gmra.mxu0 %vm714_vm0, %v4367_v26  ;;  %3516 = vmatprep.mubr.msk.f32.mxu1 %vm714_vm0, %v4382_v29  ;;  %v4439_v60 = vsel %vm596_vm2, %v592_v40, %v593_v51  ;;  %v4443_v61 = vsel %vm596_vm2, %v593_v51, 0.0  ;;  %v638_v40 = vrot.slane %v4114_v37, 1  ;;  %5310 = vst [vmem:[#allocation6_spill] sm:$0xff] %v4568_v33 }
  0x49   : > { %3554 = vmatprep.mubr.msk.f32.mxu0 %vm714_vm0, %v4389_v36  ;;  %3588 = vmatpush3.msra.mxu1 %v690_v6  ;;  %5308 = vst [vmem:[#allocation4_spill] sm:$0xff] %v4439_v60  ;;  %5309 = vst [vmem:[#allocation5_spill] sm:$0xff] %v4443_v61  ;;  %v4488_v6 = vsel %vm647_vm3, 0.0, %v635_v9  ;;  %v641_v61 = vrot.slane %v4191_v5, 1  ;;  %v4587_v60 = vsel %vm596_vm2, %v589_v38, 0.0  ;;  %v4618_v49 = vsel %vm647_vm3, %v642_v13, 0.0 }
  0x4a   : > { %3632 = vmatpush3.msra.mxu0 %v694_v7  ;;  %3669 = vmatprep.subr.mxu1 %v4398_v41  ;;  %v637_v7 = vrot.slane %v4107_v31, 1  ;;  %v4551_v23 = vsel %vm647_vm3, %v638_v40, 0.0 }
  0x4b   : > { %3517 = vmatmul.mubr.msk.f32.gmra.mxu1 %vm714_vm0, %v4408_v44  ;;  %3713 = vmatprep.subr.mxu0 %v4414_v47 }
  0x4c   : > { %3555 = vmatmul.mubr.msk.f32.gmra.mxu0 %vm714_vm0, %v4425_v54  ;;  %3519 = vmatprep.mubr.msk.f32.mxu1 %vm714_vm0, %v4430_v56  ;;  %v4524_v51 = vsel %vm647_vm3, 0.0, %v637_v7  ;;  %v4541_v9 = vsel %vm647_vm3, %v637_v7, %v638_v40  ;;  %v4562_v7 = vsel %vm596_vm2, 0.0, %v588_v3  ;;  %v4572_v40 = vsel %vm596_vm2, %v588_v3, %v589_v38 }
  0x4d   : > { %3557 = vmatprep.mubr.msk.f32.mxu0 %vm714_vm0, %v4434_v59  ;;  %v4593_v3 = vsel %vm647_vm3, %v640_v35, 0.0  ;;  %v4613_v35 = vsel %vm647_vm3, %v641_v61, %v642_v13  ;;  %v5302_v38 = vrot.slane %v4597_v48, 1  ;;  %v5301_v13 = vrot.slane %v4385_v34, 1 }
  0x4f   : > { %3520 = vmatmul.mubr.msk.f32.gmra.mxu1 %vm714_vm0, %v4454_v63 }
  0x50   : > { %3558 = vmatmul.mubr.msk.f32.gmra.mxu0 %vm714_vm0, %v4461_v8  ;;  %3522 = vmatprep.mubr.msk.f32.mxu1 %vm714_vm0, %v4466_v12 }
  0x51   : > { %3560 = vmatprep.mubr.msk.f32.mxu0 %vm714_vm0, %v4471_v15 }
  0x53   : > { %3523 = vmatmul.mubr.msk.f32.gmra.mxu1 %vm714_vm0, %v4482_v19 }
  0x54   : > { %3561 = vmatmul.mubr.msk.f32.gmra.mxu0 %vm714_vm0, %v4488_v6  ;;  %3525 = vmatprep.mubr.msk.f32.mxu1 %vm714_vm0, %v4492_v22 }
  0x55   : > { %3563 = vmatprep.mubr.msk.f32.mxu0 %vm714_vm0, %v4497_v25 }
  0x57   : > { %3526 = vmatmul.mubr.msk.f32.gmra.mxu1 %vm714_vm0, %v4508_v30 }
  0x58   : > { %3564 = vmatmul.mubr.msk.f32.gmra.mxu0 %vm714_vm0, %v4515_v39  ;;  %3528 = vmatprep.mubr.msk.f32.mxu1 %vm714_vm0, %v4520_v46 }
  0x59   : > { %3566 = vmatprep.mubr.msk.f32.mxu0 %vm714_vm0, %v4524_v51 }
  0x5b   : > { %3529 = vmatmul.mubr.msk.f32.gmra.mxu1 %vm714_vm0, %v4534_v55 }
  0x5c   : > { %3567 = vmatmul.mubr.msk.f32.gmra.mxu0 %vm714_vm0, %v4541_v9  ;;  %3531 = vmatprep.mubr.msk.f32.mxu1 %vm714_vm0, %v4546_v17 }
  0x5d   : > { %3569 = vmatprep.mubr.msk.f32.mxu0 %vm714_vm0, %v4551_v23 }
  0x5f   : > { %3532 = vmatmul.mubr.msk.f32.gmra.mxu1 %vm714_vm0, %v4562_v7 }
  0x60   : > { %3570 = vmatmul.mubr.msk.f32.gmra.mxu0 %vm714_vm0, %v4568_v33  ;;  %3534 = vmatprep.mubr.msk.f32.mxu1 %vm714_vm0, %v4572_v40  ;;  %v4601_v33 = vsel %vm647_vm3, 0.0, %v641_v61  ;;  %v4634_v61 = vsel %vm647_vm3, 0.0, %v5302_v38 }
  0x61   : > { %3572 = vmatprep.mubr.msk.f32.mxu0 %vm714_vm0, %v4576_v58 }
  0x63   : > { %3535 = vmatmul.mubr.msk.f32.gmra.mxu1 %vm714_vm0, %v4587_v60 }
  0x64   : > { %3573 = vmatmul.mubr.msk.f32.gmra.mxu0 %vm714_vm0, %v4593_v3  ;;  %3589 = vmatprep.mubr.msk.f32.mxu1 %vm714_vm0, %v4268_v42  ;;  %v700_v42 = vld [vmem:[%s5291_s5 + $0xb0] sm:$0xff] }
  0x65   : > { %3575 = vmatprep.mubr.msk.f32.mxu0 %vm714_vm0, %v4601_v33 }
  0x67   : > { %3590 = vmatmul.mubr.msk.f32.vlgmr.msra.gmra.mxu1 %vm714_vm0, %v4277_v45  ;;  %v699_v45 = vld [vmem:[%s5291_s5 + $0xa8] sm:$0xff] }
  0x68   : > { %3576 = vmatmul.mubr.msk.f32.gmra.mxu0 %vm714_vm0, %v4613_v35  ;;  %3670 = vmatpush3.msra.mxu1 %v4398_v41  ;;  %v5311_v41 = vmov 0.0  }
  0x69   : > { %3578 = vmatprep.mubr.msk.f32.mxu0 %vm714_vm0, %v4618_v49  ;;  %3592 = vmatprep.mubr.msk.f32.mxu1 %vm714_vm0, %v4302_v52  ;;  %v704_v52 = vld [vmem:[%s5291_s5 + $0xd0] sm:$0xff] }
  0x6a   : > { %3671 = vmatprep.subr.mxu1 %v700_v42 }
  0x6b   : > { %3593 = vmatmul.mubr.msk.f32.gmra.mxu1 %vm714_vm0, %v4314_v57 }
  0x6c   : > { %3579 = vmatmul.mubr.msk.f32.gmra.mxu0 %vm714_vm0, %v4634_v61  ;;  %3595 = vmatprep.mubr.msk.f32.mxu1 %vm714_vm0, %v4334_v2 }
  0x6d   : > { %3633 = vmatprep.mubr.msk.f32.mxu0 %vm714_vm0, %v4170_v1  ;;  %3672 = vmatpush3.msra.mxu1 %v700_v42  ;;  %v703_v1 = vld [vmem:[%s5291_s5 + $0xc8] sm:$0xff]  ;;  %v5300_v42 = vrot.slane %v4400_v43, 1 }
  0x6e   : > { %3673 = vmatprep.subr.mxu1 %v699_v45 }
  0x6f   : > { %3596 = vmatmul.mubr.msk.f32.gmra.mxu1 %vm714_vm0, %v4342_v11 }
  0x70   : > { %3634 = vmatmul.mubr.msk.f32.vlgmr.msra.gmra.mxu0 %vm714_vm0, %v4178_v4  ;;  %3598 = vmatprep.mubr.msk.f32.mxu1 %vm714_vm0, %v4373_v27  ;;  %v698_v4 = vld [vmem:[%s5291_s5 + $0xa0] sm:$0xff] }
  0x71   : > { %3714 = vmatpush3.msra.mxu0 %v4414_v47  ;;  %3636 = vmatprep.mubr.f32.mxu0 %v5311_v41  ;;  %v702_v47 = vld [vmem:[%s5291_s5 + $0xc0] sm:$0xff] }
  0x72   : > { %3715 = vmatprep.subr.mxu0 %v704_v52  ;;  %3674 = vmatpush3.msra.mxu1 %v699_v45  ;;  %v709_v45 = vld [vmem:[%s5291_s5 + $0xf8] sm:$0xff] }
  0x73   : > { %3599 = vmatmul.mubr.msk.f32.gmra.mxu1 %vm714_vm0, %v4382_v29  ;;  %3716 = vmatpush3.msra.mxu0 %v704_v52  ;;  %v4690_v52 = vsel %vm647_vm3, %v5301_v13, %v5300_v42 }
  0x74   : > { %3637 = vmatmul.mubr.msk.f32.gmra.mxu0 %vm714_vm0, %v4206_v18  ;;  %3601 = vmatprep.mubr.msk.f32.mxu1 %vm714_vm0, %v4408_v44 }
  0x75   : > { %3639 = vmatprep.mubr.msk.f32.mxu0 %vm714_vm0, %v4219_v24  ;;  %3717 = vmatprep.subr.mxu0 %v703_v1 }
  0x76   : > { %3718 = vmatpush3.msra.mxu0 %v703_v1  ;;  %3675 = vmatprep.subr.mxu1 %v698_v4  ;;  %v713_v1 = vld [vmem:[%s5291_s5 + $0x118] sm:$0xff] }
  0x77   : > { %3602 = vmatmul.mubr.msk.f32.gmra.mxu1 %vm714_vm0, %v4430_v56  ;;  %3719 = vmatprep.subr.mxu0 %v702_v47 }
  0x78   : > { %3640 = vmatmul.mubr.f32.gmra.mxu0 %v5311_v41  ;;  %3604 = vmatprep.mubr.msk.f32.mxu1 %vm714_vm0, %v4454_v63 }
  0x79   : > { %3642 = vmatprep.mubr.msk.f32.mxu0 %vm714_vm0, %v4238_v28  ;;  %3676 = vmatpush3.msra.mxu1 %v698_v4  ;;  %v4723_v4 = vmax.f32 %v4289_v50, 0.0 }
  0x7a   : > { %3720 = vmatpush3.msra.mxu0 %v702_v47  ;;  %3757 = vmatprep.subr.mxu1 %v709_v45  ;;  %v590_v47 = vrot.slane %v4597_v48, 7 }
  0x7b   : > { %3605 = vmatmul.mubr.msk.f32.gmra.mxu1 %vm714_vm0, %v4466_v12  ;;  %3801 = vmatprep.subr.mxu0 %v713_v1  ;;  %v591_v42 = vrot.slane %v4723_v4, 7 }
  0x7c   : > { %3643 = vmatmul.mubr.msk.f32.gmra.mxu0 %vm714_vm0, %v4245_v32  ;;  %3607 = vmatprep.mubr.msk.f32.mxu1 %vm714_vm0, %v4482_v19  ;;  %v4742_v50 = vsel %vm596_vm2, 0.0, %v590_v47 }
  0x7d   : > { %3645 = vmatprep.mubr.f32.mxu0 %v5311_v41  ;;  %v4748_v13 = vsel %vm596_vm2, %v590_v47, %v591_v42  ;;  %v4757_v38 = vsel %vm596_vm2, %v591_v42, 0.0  ;;  %v708_v42 = vld [vmem:[%s5291_s5 + $0xf0] sm:$0xff] }
  0x7f   : > { %3608 = vmatmul.mubr.msk.f32.gmra.mxu1 %vm714_vm0, %v4492_v22 }
  0x80   : > { %3646 = vmatmul.mubr.msk.f32.gmra.mxu0 %vm714_vm0, %v4086_v20  ;;  %3610 = vmatprep.mubr.msk.f32.mxu1 %vm714_vm0, %v4508_v30 }
  0x81   : > { %3648 = vmatprep.mubr.msk.f32.mxu0 %vm714_vm0, %v4088_v21 }
  0x83   : > { %3611 = vmatmul.mubr.msk.f32.gmra.mxu1 %vm714_vm0, %v4520_v46 }
  0x84   : > { %3649 = vmatmul.mubr.f32.gmra.mxu0 %v5311_v41  ;;  %3613 = vmatprep.mubr.msk.f32.mxu1 %vm714_vm0, %v4534_v55 }
  0x85   : > { %3651 = vmatprep.mubr.msk.f32.mxu0 %vm714_vm0, %v4107_v31 }
  0x87   : > { %3614 = vmatmul.mubr.msk.f32.gmra.mxu1 %vm714_vm0, %v4546_v17 }
  0x88   : > { %3652 = vmatmul.mubr.msk.f32.gmra.mxu0 %vm714_vm0, %v4114_v37  ;;  %3616 = vmatprep.mubr.msk.f32.mxu1 %vm714_vm0, %v4562_v7 }
  0x89   : > { %3654 = vmatprep.mubr.f32.mxu0 %v5311_v41 }
  0x8b   : > { %3617 = vmatmul.mubr.msk.f32.gmra.mxu1 %vm714_vm0, %v4572_v40 }
  0x8c   : > { %3655 = vmatmul.mubr.msk.f32.gmra.mxu0 %vm714_vm0, %v4140_v53  ;;  %3619 = vmatprep.mubr.msk.f32.mxu1 %vm714_vm0, %v4587_v60 }
  0x8d   : > { %3657 = vmatprep.mubr.msk.f32.mxu0 %vm714_vm0, %v4160_v62 }
  0x8f   : > { %3620 = vmatmul.mubr.msk.f32.gmra.mxu1 %vm714_vm0, %v4742_v50 }
  0x90   : > { %3658 = vmatmul.mubr.f32.gmra.mxu0 %v5311_v41  ;;  %3622 = vmatprep.mubr.msk.f32.mxu1 %vm714_vm0, %v4748_v13 }
  0x91   : > { %3660 = vmatprep.mubr.msk.f32.mxu0 %vm714_vm0, %v4191_v5 }
  0x93   : > { %3623 = vmatmul.mubr.msk.f32.gmra.mxu1 %vm714_vm0, %v4757_v38 }
  0x94   : > { %3661 = vmatmul.mubr.msk.f32.gmra.mxu0 %vm714_vm0, %v4197_v14  ;;  %3677 = vmatprep.mubr.msk.f32.mxu1 %vm714_vm0, %v4328_v0  ;;  %v707_v0 = vld [vmem:[%s5291_s5 + $0xe8] sm:$0xff] }
  0x95   : > { %3663 = vmatprep.mubr.f32.mxu0 %v5311_v41 }
  0x97   : > { %3678 = vmatmul.mubr.msk.f32.vlgmr.msra.gmra.mxu1 %vm714_vm0, %v4351_v16  ;;  %v712_v16 = vld [vmem:[%s5291_s5 + $0x110] sm:$0xff] }
  0x98   : > { %3664 = vmatmul.mubr.msk.f32.gmra.mxu0 %vm714_vm0, %v4597_v48  ;;  %3758 = vmatpush3.msra.mxu1 %v709_v45 }
  0x99   : > { %3666 = vmatprep.mubr.msk.f32.mxu0 %vm714_vm0, %v4723_v4  ;;  %3680 = vmatprep.mubr.msk.f32.mxu1 %vm714_vm0, %v4367_v26  ;;  %v5312_v26 = vld [vmem:[#allocation6_spill] sm:$0xff] }
  0x9a   : > { %3759 = vmatprep.subr.mxu1 %v708_v42 }
  0x9b   : > { %3681 = vmatmul.mubr.msk.f32.gmra.mxu1 %vm714_vm0, %v4389_v36 }
  0x9c   : > { %3667 = vmatmul.mubr.f32.gmra.mxu0 %v5311_v41  ;;  %3683 = vmatprep.mubr.msk.f32.mxu1 %vm714_vm0, %v4425_v54 }
  0x9d   : > { %3721 = vmatprep.mubr.msk.f32.mxu0 %vm714_vm0, %v4314_v57  ;;  %3760 = vmatpush3.msra.mxu1 %v708_v42  ;;  %v711_v57 = vld [vmem:[%s5291_s5 + $0x108] sm:$0xff] }
  0x9e   : > { %3761 = vmatprep.subr.mxu1 %v707_v0 }
  0x9f   : > { %3684 = vmatmul.mubr.msk.f32.gmra.mxu1 %vm714_vm0, %v4434_v59 }
  0xa0   : > { %3722 = vmatmul.mubr.msk.f32.vlgmr.msra.gmra.mxu0 %vm714_vm0, %v4334_v2  ;;  %3686 = vmatprep.mubr.msk.f32.mxu1 %vm714_vm0, %v4461_v8  ;;  %v706_v2 = vld [vmem:[%s5291_s5 + $0xe0] sm:$0xff] }
  0xa1   : > { %3802 = vmatpush3.msra.mxu0 %v713_v1  ;;  %3724 = vmatprep.mubr.msk.f32.mxu0 %vm714_vm0, %v4342_v11  ;;  %v710_v11 = vld [vmem:[%s5291_s5 + $0x100] sm:$0xff] }
  0xa2   : > { %3803 = vmatprep.subr.mxu0 %v712_v16  ;;  %3762 = vmatpush3.msra.mxu1 %v707_v0 }
  0xa3   : > { %3687 = vmatmul.mubr.msk.f32.gmra.mxu1 %vm714_vm0, %v4471_v15  ;;  %3804 = vmatpush3.msra.mxu0 %v712_v16 }
  0xa4   : > { %3725 = vmatmul.mubr.msk.f32.gmra.mxu0 %vm714_vm0, %v4373_v27  ;;  %3689 = vmatprep.mubr.msk.f32.mxu1 %vm714_vm0, %v4488_v6  ;;  %v644_v27 = vrot.slane %v4723_v4, 1 }
  0xa5   : > { %3727 = vmatprep.mubr.msk.f32.mxu0 %vm714_vm0, %v4382_v29  ;;  %3805 = vmatprep.subr.mxu0 %v711_v57  ;;  %v5313_v29 = vrot.slane %v4597_v48, 1 }
  0xa6   : > { %3806 = vmatpush3.msra.mxu0 %v711_v57  ;;  %3763 = vmatprep.subr.mxu1 %v706_v2 }
  0xa7   : > { %3690 = vmatmul.mubr.msk.f32.gmra.mxu1 %vm714_vm0, %v4497_v25  ;;  %3807 = vmatprep.subr.mxu0 %v710_v11 }
  0xa8   : > { %3728 = vmatmul.mubr.msk.f32.gmra.mxu0 %vm714_vm0, %v4408_v44  ;;  %3692 = vmatprep.mubr.msk.f32.mxu1 %vm714_vm0, %v4515_v39  ;;  %v4868_v44 = vsel %vm647_vm3, %v5313_v29, %v644_v27 }
  0xa9   : > { %3730 = vmatprep.mubr.msk.f32.mxu0 %vm714_vm0, %v4430_v56  ;;  %3764 = vmatpush3.msra.mxu1 %v706_v2  ;;  %v4874_v56 = vsel %vm647_vm3, %v644_v27, 0.0 }
  0xaa   : > { %3808 = vmatpush3.msra.mxu0 %v710_v11 }
  0xab   : > { %3693 = vmatmul.mubr.msk.f32.gmra.mxu1 %vm714_vm0, %v4524_v51 }
  0xac   : > { %3731 = vmatmul.mubr.msk.f32.gmra.mxu0 %vm714_vm0, %v4454_v63  ;;  %3695 = vmatprep.mubr.msk.f32.mxu1 %vm714_vm0, %v4541_v9  ;;  %v5314_v63 = vrot.slane %v4385_v34, 1 }
  0xad   : > { %3733 = vmatprep.mubr.msk.f32.mxu0 %vm714_vm0, %v4466_v12 }
  0xae   : > { %v4886_v12 = vsel %vm647_vm3, 0.0, %v5314_v63 }
  0xaf   : > { %3696 = vmatmul.mubr.msk.f32.gmra.mxu1 %vm714_vm0, %v4551_v23 }
  0xb0   : > { %3734 = vmatmul.mubr.msk.f32.gmra.mxu0 %vm714_vm0, %v4482_v19  ;;  %3698 = vmatprep.mubr.msk.f32.mxu1 %vm714_vm0, %v5312_v26  ;;  %v5316_v19 = vld [vmem:[#allocation4_spill] sm:$0xff] }
  0xb1   : > { %3736 = vmatprep.mubr.msk.f32.mxu0 %vm714_vm0, %v4492_v22  ;;  %v5317_v22 = vld [vmem:[#allocation5_spill] sm:$0xff] }
  0xb3   : > { %3699 = vmatmul.mubr.msk.f32.gmra.mxu1 %vm714_vm0, %v4576_v58 }
  0xb4   : > { %3737 = vmatmul.mubr.msk.f32.gmra.mxu0 %vm714_vm0, %v4508_v30  ;;  %3701 = vmatprep.mubr.msk.f32.mxu1 %vm714_vm0, %v4593_v3 }
  0xb5   : > { %3739 = vmatprep.mubr.msk.f32.mxu0 %vm714_vm0, %v4520_v46 }
  0xb7   : > { %3702 = vmatmul.mubr.msk.f32.gmra.mxu1 %vm714_vm0, %v4601_v33 }
  0xb8   : > { %3740 = vmatmul.mubr.msk.f32.gmra.mxu0 %vm714_vm0, %v4534_v55  ;;  %3704 = vmatprep.mubr.msk.f32.mxu1 %vm714_vm0, %v4613_v35 }
  0xb9   : > { %3742 = vmatprep.mubr.msk.f32.mxu0 %vm714_vm0, %v4546_v17 }
  0xbb   : > { %3705 = vmatmul.mubr.msk.f32.gmra.mxu1 %vm714_vm0, %v4618_v49 }
  0xbc   : > { %3743 = vmatmul.mubr.msk.f32.gmra.mxu0 %vm714_vm0, %v4562_v7  ;;  %3707 = vmatprep.mubr.msk.f32.mxu1 %vm714_vm0, %v4634_v61 }
  0xbd   : > { %3745 = vmatprep.mubr.msk.f32.mxu0 %vm714_vm0, %v4572_v40 }
  0xbf   : > { %3708 = vmatmul.mubr.msk.f32.gmra.mxu1 %vm714_vm0, %v4868_v44 }
  0xc0   : > { %3746 = vmatmul.mubr.msk.f32.gmra.mxu0 %vm714_vm0, %v4587_v60  ;;  %3710 = vmatprep.mubr.msk.f32.mxu1 %vm714_vm0, %v4874_v56  ;;  %v5315_v60 = vld [vmem:[#allocation3_spill] sm:$0xff] }
  0xc1   : > { %3748 = vmatprep.mubr.msk.f32.mxu0 %vm714_vm0, %v4742_v50 }
  0xc3   : > { %3711 = vmatmul.mubr.msk.f32.gmra.mxu1 %vm714_vm0, %v4886_v12 }
  0xc4   : > { %3749 = vmatmul.mubr.msk.f32.gmra.mxu0 %vm714_vm0, %v4748_v13  ;;  %3765 = vmatprep.mubr.msk.f32.mxu1 %vm714_vm0, %v4206_v18 }
  0xc5   : > { %3751 = vmatprep.mubr.msk.f32.mxu0 %vm714_vm0, %v4757_v38 }
  0xc7   : > { %3766 = vmatmul.mubr.msk.f32.vlgmr.msra.gmra.mxu1 %vm714_vm0, %v4219_v24 }
  0xc8   : > { %3752 = vmatmul.mubr.msk.f32.gmra.mxu0 %vm714_vm0, %v5315_v60  ;;  %3768 = vmatprep.mubr.f32.mxu1 %v5311_v41 }
  0xc9   : > { %3754 = vmatprep.mubr.msk.f32.mxu0 %vm714_vm0, %v5316_v19 }
  0xcb   : > { %3769 = vmatmul.mubr.msk.f32.gmra.mxu1 %vm714_vm0, %v4238_v28 }
  0xcc   : > { %3755 = vmatmul.mubr.msk.f32.gmra.mxu0 %vm714_vm0, %v5317_v22  ;;  %3771 = vmatprep.mubr.msk.f32.mxu1 %vm714_vm0, %v4245_v32 }
  0xcd   : > { %3809 = vmatprep.mubr.msk.f32.mxu0 %vm714_vm0, %v4389_v36 }
  0xcf   : > { %3772 = vmatmul.mubr.f32.gmra.mxu1 %v5311_v41 }
  0xd0   : > { %3810 = vmatmul.mubr.msk.f32.vlgmr.msra.gmra.mxu0 %vm714_vm0, %v4425_v54  ;;  %3774 = vmatprep.mubr.msk.f32.mxu1 %vm714_vm0, %v4086_v20 }
  0xd1   : > { %3812 = vmatprep.mubr.msk.f32.mxu0 %vm714_vm0, %v4434_v59 }
  0xd3   : > { %3775 = vmatmul.mubr.msk.f32.gmra.mxu1 %vm714_vm0, %v4088_v21 }
  0xd4   : > { %3813 = vmatmul.mubr.msk.f32.gmra.mxu0 %vm714_vm0, %v4461_v8  ;;  %3777 = vmatprep.mubr.f32.mxu1 %v5311_v41 }
  0xd5   : > { %3815 = vmatprep.mubr.msk.f32.mxu0 %vm714_vm0, %v4471_v15 }
  0xd7   : > { %3778 = vmatmul.mubr.msk.f32.gmra.mxu1 %vm714_vm0, %v4107_v31 }
  0xd8   : > { %3816 = vmatmul.mubr.msk.f32.gmra.mxu0 %vm714_vm0, %v4488_v6  ;;  %3780 = vmatprep.mubr.msk.f32.mxu1 %vm714_vm0, %v4114_v37  ;;  %v5318_v6 = vrot.slane %v4400_v43, 1 }
  0xd9   : > { %3818 = vmatprep.mubr.msk.f32.mxu0 %vm714_vm0, %v4497_v25 }
  0xda   : > { %v648_v25 = vsel %vm647_vm3, %v5318_v6, 0.0 }
  0xdb   : > { %3781 = vmatmul.mubr.f32.gmra.mxu1 %v5311_v41 }
  0xdc   : > { %3819 = vmatmul.mubr.msk.f32.gmra.mxu0 %vm714_vm0, %v4515_v39  ;;  %3783 = vmatprep.mubr.msk.f32.mxu1 %vm714_vm0, %v4140_v53 }
  0xdd   : > { %3821 = vmatprep.mubr.msk.f32.mxu0 %vm714_vm0, %v4524_v51  ;;  %v5319_v51 = vld [vmem:[#allocation2_spill] sm:$0xff] }
  0xde   : > { %v5320_v55 = vrot.slane %v5319_v51, 1 }
  0xdf   : > { %v4942_v20 = vpop.f32.mrf.mxu1  ;;  %3784 = vmatmul.mubr.msk.f32.gmra.mxu1 %vm714_vm0, %v4160_v62 }
  0xe0   : > { %3822 = vmatmul.mubr.msk.f32.gmra.mxu0 %vm714_vm0, %v4541_v9  ;;  %3786 = vmatprep.mubr.f32.mxu1 %v5311_v41  ;;  %v677_v9 = vsel %vm647_vm3, 0.0, %v5320_v55 }
  0xe1   : > { %3824 = vmatprep.mubr.msk.f32.mxu0 %vm714_vm0, %v4551_v23  ;;  %v4951_v21 = vpop.f32.mrf.mxu1 }
  0xe3   : > { %v4953_v31 = vpop.f32.mrf.mxu1  ;;  %3787 = vmatmul.mubr.msk.f32.gmra.mxu1 %vm714_vm0, %v4191_v5 }
  0xe4   : > { %3825 = vmatmul.mubr.msk.f32.gmra.mxu0 %vm714_vm0, %v5312_v26  ;;  %3789 = vmatprep.mubr.msk.f32.mxu1 %vm714_vm0, %v4197_v14 }
  0xe5   : > { %3827 = vmatprep.mubr.msk.f32.mxu0 %vm714_vm0, %v4576_v58  ;;  %v898_v37 = vpop.f32.mrf.mxu1 }
  0xe7   : > { %v3483_v53 = vpop.f32.mrf.mxu1  ;;  %3790 = vmatmul.mubr.f32.gmra.mxu1 %v5311_v41  ;;  %v3459_v62 = vpop.f32.mrf.mxu0 }
  0xe8   : > { %3828 = vmatmul.mubr.msk.f32.gmra.mxu0 %vm714_vm0, %v4593_v3  ;;  %3792 = vmatprep.mubr.msk.f32.mxu1 %vm714_vm0, %v4597_v48 }
  0xe9   : > { %3830 = vmatprep.mubr.msk.f32.mxu0 %vm714_vm0, %v4601_v33  ;;  %v4970_v5 = vpop.f32.mrf.mxu1  ;;  %v832_v14 = vpop.f32.mrf.mxu0 }
  0xeb   : > { %v4972_v18 = vpop.f32.mrf.mxu1  ;;  %3793 = vmatmul.mubr.msk.f32.gmra.mxu1 %vm714_vm0, %v4723_v4  ;;  %v3462_v58 = vpop.f32.mrf.mxu0 }
  0xec   : > { %3831 = vmatmul.mubr.msk.f32.gmra.mxu0 %vm714_vm0, %v4613_v35  ;;  %3795 = vmatprep.mubr.f32.mxu1 %v5311_v41 }
  0xed   : > { %3833 = vmatprep.mubr.msk.f32.mxu0 %vm714_vm0, %v4618_v49  ;;  %v4981_v24 = vpop.f32.mrf.mxu1  ;;  %v842_v28 = vpop.f32.mrf.mxu0 }
  0xef   : > { %v4983_v32 = vpop.f32.mrf.mxu1  ;;  %3796 = vmatmul.mubr.msk.f32.gmra.mxu1 %vm714_vm0, %v4385_v34 }
  0xf0   : > { %v3465_v36 = vpop.f32.mrf.mxu0  ;;  %3834 = vmatmul.mubr.msk.f32.gmra.mxu0 %vm714_vm0, %v4634_v61  ;;  %3798 = vmatprep.mubr.msk.f32.mxu1 %vm714_vm0, %v4400_v43 }
  0xf1   : > { %3836 = vmatprep.mubr.msk.f32.mxu0 %vm714_vm0, %v4868_v44  ;;  %v926_v48 = vpop.f32.mrf.mxu1 }
  0xf2   : > { %v851_v54 = vpop.f32.mrf.mxu0 }
  0xf3   : > { %v3492_v59 = vpop.f32.mrf.mxu1  ;;  %3799 = vmatmul.mubr.f32.gmra.mxu1 %v5311_v41 }
  0xf4   : > { %v3468_v8 = vpop.f32.mrf.mxu0  ;;  %3837 = vmatmul.mubr.msk.f32.gmra.mxu0 %vm714_vm0, %v4874_v56 }
  0xf5   : > { %3839 = vmatprep.mubr.msk.f32.mxu0 %vm714_vm0, %v4886_v12  ;;  %v4998_v34 = vpop.f32.mrf.mxu1 }
  0xf6   : > { %v860_v15 = vpop.f32.mrf.mxu0 }
  0xf7   : > { %v3503_v30 = vpop.f32.mrf.mxu1 }
  0xf8   : > { %v3471_v39 = vpop.f32.mrf.mxu0  ;;  %3840 = vmatmul.mubr.msk.f32.gmra.mxu0 %vm714_vm0, %v4690_v52  ;;  %v1087_v46 = vadd.f32 %v3503_v30, %v3459_v62 }
  0xf9   : > { %3842 = vmatprep.mubr.msk.f32.mxu0 %vm714_vm0, %v648_v25  ;;  %v1081_v17 = vpop.f32.mrf.mxu1 }
  0xfa   : > { %v870_v23 = vpop.f32.mrf.mxu0  ;;  %v1082_v7 = vadd.f32 %v1081_v17, %v832_v14 }
  0xfb   : > { %v3506_v43 = vpop.f32.mrf.mxu1 }
  0xfc   : > { %v3474_v33 = vpop.f32.mrf.mxu0  ;;  %3843 = vmatmul.mubr.msk.f32.gmra.mxu0 %vm714_vm0, %v677_v9  ;;  %v1096_v40 = vadd.f32 %v3506_v43, %v3462_v58 }
  0xfd   : > { %v1091_v3 = vpop.f32.mrf.mxu1 }
  0xfe   : > { %v879_v35 = vpop.f32.mrf.mxu0 }
  0xff   : > { %v3509_v38 = vpop.f32.mrf.mxu1 }
 0x100   : > { %v3547_v49 = vpop.f32.mrf.mxu0 }
 0x101   : > { %v5012_v61 = vadd.f32 %v3547_v49, %v1087_v46  ;;  %v1100_v41 = vpop.f32.mrf.mxu1 }
 0x102   : > { %v1330_v13 = vpop.f32.mrf.mxu0  ;;  %v1101_v45 = vadd.f32 %v1100_v41, %v851_v54 }
 0x103   : > { %v5014_v52 = vadd.f32 %v1330_v13, %v1082_v7  ;;  %v3512_v10 = vpop.f32.mrf.mxu1 }
 0x104   : > { %v3550_v1 = vpop.f32.mrf.mxu0  ;;  %v1115_v4 = vadd.f32 %v3512_v10, %v3468_v8 }
 0x105   : > { %v5016_v47 = vadd.f32 %v3550_v1, %v1096_v40  ;;  %v1109_v50 = vpop.f32.mrf.mxu1 }
 0x106   : > { %v1340_v42 = vpop.f32.mrf.mxu0  ;;  %v1110_v0 = vadd.f32 %v1109_v50, %v860_v15 }
 0x107   : > { %v3515_v16 = vpop.f32.mrf.mxu1 }
 0x108   : > { %v3553_v57 = vpop.f32.mrf.mxu0  ;;  %v1124_v2 = vadd.f32 %v3515_v16, %v3471_v39 }
 0x109   : > { %v1119_v11 = vpop.f32.mrf.mxu1 }
 0x10a   : > { %v1349_v26 = vpop.f32.mrf.mxu0 }
 0x10b   : > { %v5018_v27 = vadd.f32 %v1349_v26, %v1101_v45  ;;  %v3518_v29 = vpop.f32.mrf.mxu1 }
 0x10c   : > { %v3556_v44 = vpop.f32.mrf.mxu0 }
 0x10d   : > { %v5020_v56 = vadd.f32 %v3556_v44, %v1115_v4  ;;  %v1128_v63 = vpop.f32.mrf.mxu1 }
 0x10e   : > { %v1358_v12 = vpop.f32.mrf.mxu0  ;;  %v1129_v60 = vadd.f32 %v1128_v63, %v879_v35 }
 0x10f   : > { %v5022_v19 = vadd.f32 %v1358_v12, %v1110_v0  ;;  %v3521_v22 = vpop.f32.mrf.mxu1 }
 0x110   : > { %v3559_v37 = vpop.f32.mrf.mxu0  ;;  %v1143_v53 = vadd.f32 %v3521_v22, %v4942_v20 }
 0x111   : > { %v5025_v62 = vadd.f32 %v3559_v37, %v1124_v2  ;;  %v1137_v14 = vpop.f32.mrf.mxu1 }
 0x112   : > { %v1368_v58 = vpop.f32.mrf.mxu0  ;;  %v1138_v28 = vadd.f32 %v1137_v14, %v4951_v21 }
 0x113   : > { %v3524_v36 = vpop.f32.mrf.mxu1 }
 0x114   : > { %v3562_v48 = vpop.f32.mrf.mxu0  ;;  %v1152_v54 = vadd.f32 %v3524_v36, %v4953_v31 }
 0x115   : > { %v1147_v59 = vpop.f32.mrf.mxu1 }
 0x116   : > { %v1377_v8 = vpop.f32.mrf.mxu0 }
 0x117   : > { %v5029_v15 = vadd.f32 %v1377_v8, %v1129_v60  ;;  %v3527_v6 = vpop.f32.mrf.mxu1 }
 0x118   : > { %v3565_v25 = vpop.f32.mrf.mxu0 }
 0x119   : > { %v5031_v30 = vadd.f32 %v3565_v25, %v1143_v53  ;;  %v1156_v39 = vpop.f32.mrf.mxu1 }
 0x11a   : > { %v1386_v20 = vpop.f32.mrf.mxu0  ;;  %v1157_v46 = vadd.f32 %v1156_v39, %v4970_v5 }
 0x11b   : > { %v5034_v51 = vadd.f32 %v1386_v20, %v1138_v28  ;;  %v3530_v55 = vpop.f32.mrf.mxu1 }
 0x11c   : > { %v3568_v21 = vpop.f32.mrf.mxu0  ;;  %v1171_v9 = vadd.f32 %v3530_v55, %v4972_v18 }
 0x11d   : > { %v5037_v17 = vadd.f32 %v3568_v21, %v1152_v54  ;;  %v1165_v31 = vpop.f32.mrf.mxu1 }
 0x11e   : > { %v1396_v23 = vpop.f32.mrf.mxu0  ;;  %v1166_v7 = vadd.f32 %v1165_v31, %v4981_v24 }
 0x11f   : > { %v3533_v43 = vpop.f32.mrf.mxu1 }
 0x120   : > { %v3571_v33 = vpop.f32.mrf.mxu0  ;;  %v1180_v40 = vadd.f32 %v3533_v43, %v4983_v32 }
 0x121   : > { %v1175_v3 = vpop.f32.mrf.mxu1 }
 0x122   : > { %v1405_v35 = vpop.f32.mrf.mxu0 }
 0x123   : > { %v5041_v38 = vadd.f32 %v1405_v35, %v1157_v46  ;;  %v3536_v5 = vpop.f32.mrf.mxu1 }
 0x124   : > { %v3574_v49 = vpop.f32.mrf.mxu0 }
 0x125   : > { %v5043_v41 = vadd.f32 %v3574_v49, %v1171_v9  ;;  %v1184_v13 = vpop.f32.mrf.mxu1 }
 0x126   : > { %v1414_v18 = vpop.f32.mrf.mxu0  ;;  %v1185_v45 = vadd.f32 %v1184_v13, %v4998_v34 }
 0x127   : > { %v5046_v10 = vadd.f32 %v1414_v18, %v1166_v7  ;;  %v3591_v1 = vpop.f32.mrf.mxu1 }
 0x128   : > { %v3577_v24 = vpop.f32.mrf.mxu0  ;;  %v1644_v4 = vadd.f32 %v3591_v1, %v5012_v61 }
 0x129   : > { %v5049_v50 = vadd.f32 %v3577_v24, %v1180_v40  ;;  %v1532_v32 = vpop.f32.mrf.mxu1 }
 0x12a   : > { %v1424_v42 = vpop.f32.mrf.mxu0  ;;  %v1643_v0 = vadd.f32 %v1532_v32, %v5014_v52 }
 0x12b   : > { %v3594_v16 = vpop.f32.mrf.mxu1 }
 0x12c   : > { %v3580_v57 = vpop.f32.mrf.mxu0  ;;  %v1645_v2 = vadd.f32 %v3594_v16, %v5016_v47 }
 0x12d   : > { %v1542_v11 = vpop.f32.mrf.mxu1 }
 0x12e   : > { %v1433_v26 = vpop.f32.mrf.mxu0 }
 0x12f   : > { %v5053_v29 = vadd.f32 %v1433_v26, %v1185_v45  ;;  %v3597_v34 = vpop.f32.mrf.mxu1 }
 0x130   : > { %v3635_v44 = vpop.f32.mrf.mxu0 }
 0x131   : > { %v5055_v63 = vadd.f32 %v3635_v44, %v1644_v4  ;;  %v1551_v12 = vpop.f32.mrf.mxu1 }
 0x132   : > { %v1731_v61 = vpop.f32.mrf.mxu0  ;;  %v1646_v60 = vadd.f32 %v1551_v12, %v5018_v27 }
 0x133   : > { %v5058_v22 = vadd.f32 %v1731_v61, %v1643_v0  ;;  %v3600_v37 = vpop.f32.mrf.mxu1 }
 0x134   : > { %v3638_v52 = vpop.f32.mrf.mxu0  ;;  %v1648_v53 = vadd.f32 %v3600_v37, %v5020_v56 }
 0x135   : > { %v5061_v14 = vadd.f32 %v3638_v52, %v1645_v2  ;;  %v1560_v47 = vpop.f32.mrf.mxu1 }
 0x136   : > { %v1741_v58 = vpop.f32.mrf.mxu0  ;;  %v1647_v28 = vadd.f32 %v1560_v47, %v5022_v19 }
 0x137   : > { %v3603_v36 = vpop.f32.mrf.mxu1 }
 0x138   : > { %v3641_v48 = vpop.f32.mrf.mxu0  ;;  %v1649_v54 = vadd.f32 %v3603_v36, %v5025_v62 }
 0x139   : > { %v1570_v59 = vpop.f32.mrf.mxu1 }
 0x13a   : > { %v1750_v8 = vpop.f32.mrf.mxu0 }
 0x13b   : > { %v5065_v6 = vadd.f32 %v1750_v8, %v1646_v60  ;;  %v3606_v27 = vpop.f32.mrf.mxu1 }
 0x13c   : > { %v3644_v25 = vpop.f32.mrf.mxu0 }
 0x13d   : > { %v5067_v39 = vadd.f32 %v3644_v25, %v1648_v53  ;;  %v1579_v20 = vpop.f32.mrf.mxu1 }
 0x13e   : > { %v1759_v56 = vpop.f32.mrf.mxu0  ;;  %v1650_v46 = vadd.f32 %v1579_v20, %v5029_v15 }
 0x13f   : > { %v5070_v55 = vadd.f32 %v1759_v56, %v1647_v28  ;;  %v3609_v21 = vpop.f32.mrf.mxu1 }
 0x140   : > { %v3647_v19 = vpop.f32.mrf.mxu0  ;;  %v1652_v9 = vadd.f32 %v3609_v21, %v5031_v30 }
 0x141   : > { %v5073_v31 = vadd.f32 %v3647_v19, %v1649_v54  ;;  %v1588_v62 = vpop.f32.mrf.mxu1 }
 0x142   : > { %v1769_v23 = vpop.f32.mrf.mxu0  ;;  %v1651_v7 = vadd.f32 %v1588_v62, %v5034_v51 }
 0x143   : > { %v3612_v43 = vpop.f32.mrf.mxu1 }
 0x144   : > { %v3650_v33 = vpop.f32.mrf.mxu0  ;;  %v1653_v40 = vadd.f32 %v3612_v43, %v5037_v17 }
 0x145   : > { %v1598_v3 = vpop.f32.mrf.mxu1 }
 0x146   : > { %v1778_v35 = vpop.f32.mrf.mxu0 }
 0x147   : > { %v5077_v5 = vadd.f32 %v1778_v35, %v1650_v46  ;;  %v3615_v15 = vpop.f32.mrf.mxu1 }
 0x148   : > { %v3653_v49 = vpop.f32.mrf.mxu0 }
 0x149   : > { %v5079_v13 = vadd.f32 %v3653_v49, %v1652_v9  ;;  %v1607_v18 = vpop.f32.mrf.mxu1 }
 0x14a   : > { %v1787_v30 = vpop.f32.mrf.mxu0  ;;  %v1654_v45 = vadd.f32 %v1607_v18, %v5041_v38 }
 0x14b   : > { %v5082_v1 = vadd.f32 %v1787_v30, %v1651_v7  ;;  %v3618_v24 = vpop.f32.mrf.mxu1 }
 0x14c   : > { %v3656_v51 = vpop.f32.mrf.mxu0  ;;  %v1656_v4 = vadd.f32 %v3618_v24, %v5043_v41 }
 0x14d   : > { %v5085_v32 = vadd.f32 %v3656_v51, %v1653_v40  ;;  %v1616_v17 = vpop.f32.mrf.mxu1 }
 0x14e   : > { %v1797_v42 = vpop.f32.mrf.mxu0  ;;  %v1655_v0 = vadd.f32 %v1616_v17, %v5046_v10 }
 0x14f   : > { %v3621_v16 = vpop.f32.mrf.mxu1 }
 0x150   : > { %v3659_v57 = vpop.f32.mrf.mxu0  ;;  %v1657_v2 = vadd.f32 %v3621_v16, %v5049_v50 }
 0x151   : > { %v1626_v11 = vpop.f32.mrf.mxu1 }
 0x152   : > { %v1806_v26 = vpop.f32.mrf.mxu0 }
 0x153   : > { %v5089_v34 = vadd.f32 %v1806_v26, %v1654_v45  ;;  %v3624_v38 = vpop.f32.mrf.mxu1 }
 0x154   : > { %v3662_v44 = vpop.f32.mrf.mxu0 }
 0x155   : > { %v5091_v12 = vadd.f32 %v3662_v44, %v1656_v4  ;;  %v1635_v61 = vpop.f32.mrf.mxu1 }
 0x156   : > { %v1815_v41 = vpop.f32.mrf.mxu0  ;;  %v1658_v60 = vadd.f32 %v1635_v61, %v5053_v29 }
 0x157   : > { %v5094_v37 = vadd.f32 %v1815_v41, %v1655_v0  ;;  %v3679_v52 = vpop.f32.mrf.mxu1 }
 0x158   : > { %v3665_v10 = vpop.f32.mrf.mxu0 }
 0x159   : > { %v5096_v53 = vadd.f32 %v3665_v10, %v1657_v2  ;;  %v1933_v47 = vpop.f32.mrf.mxu1 }
 0x15a   : > { %v1825_v50 = vpop.f32.mrf.mxu0 }
 0x15b   : > { %v3682_v58 = vpop.f32.mrf.mxu1 }
 0x15c   : > { %v3668_v28 = vpop.f32.mrf.mxu0 }
 0x15d   : > { %v1943_v36 = vpop.f32.mrf.mxu1 }
 0x15e   : > { %v1834_v48 = vpop.f32.mrf.mxu0 }
 0x15f   : > { %v5098_v54 = vadd.f32 %v1834_v48, %v1658_v60  ;;  %v3685_v59 = vpop.f32.mrf.mxu1  ;;  %v2045_v48 = vadd.f32 %v3679_v52, %v5055_v63 }
 0x160   : > { %v3723_v8 = vpop.f32.mrf.mxu0 }
 0x161   : > { %v5100_v27 = vpop.f32.mrf.mxu1 }
 0x162   : > { %v2135_v25 = vpop.f32.mrf.mxu0 }
 0x163   : > { %v5102_v29 = vpop.f32.mrf.mxu1 }
 0x164   : > { %v3726_v20 = vpop.f32.mrf.mxu0 }
 0x165   : > { %v5104_v56 = vpop.f32.mrf.mxu1 }
 0x166   : > { %v2145_v46 = vpop.f32.mrf.mxu0 }
 0x167   : > { %v5106_v21 = vpop.f32.mrf.mxu1 }
 0x168   : > { %v3729_v19 = vpop.f32.mrf.mxu0 }
 0x169   : > { %v1971_v9 = vpop.f32.mrf.mxu1  ;;  %v2044_v19 = vadd.f32 %v1933_v47, %v5058_v22 }
 0x16a   : > { %v5108_v62 = vpop.f32.mrf.mxu0  ;;  %v2247_v9 = vadd.f32 %v3723_v8, %v2045_v48 }
 0x16b   : > { %v3694_v23 = vpop.f32.mrf.mxu1 }
 0x16c   : > { %v5110_v7 = vpop.f32.mrf.mxu0 }
 0x16d   : > { %v5112_v43 = vpop.f32.mrf.mxu1 }
 0x16e   : > { %v5114_v33 = vpop.f32.mrf.mxu0 }
 0x16f   : > { %v5116_v40 = vpop.f32.mrf.mxu1 }
 0x170   : > { %v5118_v3 = vpop.f32.mrf.mxu0 }
 0x171   : > { %v5120_v35 = vpop.f32.mrf.mxu1 }
 0x172   : > { %v2173_v15 = vpop.f32.mrf.mxu0 }
 0x173   : > { %v5122_v49 = vpop.f32.mrf.mxu1 }
 0x174   : > { %v3738_v18 = vpop.f32.mrf.mxu0 }
 0x175   : > { %v1999_v30 = vpop.f32.mrf.mxu1  ;;  %v2046_v18 = vadd.f32 %v3682_v58, %v5061_v14 }
 0x176   : > { %v5124_v45 = vpop.f32.mrf.mxu0  ;;  %v2246_v30 = vadd.f32 %v2135_v25, %v2044_v19 }
 0x177   : > { %v3703_v24 = vpop.f32.mrf.mxu1  ;;  %v2248_v52 = vadd.f32 %v3726_v20, %v2046_v18 }
 0x178   : > { %v5126_v51 = vpop.f32.mrf.mxu0 }
 0x179   : > { %v5128_v4 = vpop.f32.mrf.mxu1 }
 0x17a   : > { %v5130_v17 = vpop.f32.mrf.mxu0 }
 0x17b   : > { %v5132_v42 = vpop.f32.mrf.mxu1 }
 0x17c   : > { %v5134_v0 = vpop.f32.mrf.mxu0 }
 0x17d   : > { %v5136_v16 = vpop.f32.mrf.mxu1 }
 0x17e   : > { %v2201_v57 = vpop.f32.mrf.mxu0 }
 0x17f   : > { %v5138_v2 = vpop.f32.mrf.mxu1 }
 0x180   : > { %v3747_v11 = vpop.f32.mrf.mxu0 }
 0x181   : > { %v2027_v26 = vpop.f32.mrf.mxu1 }
 0x182   : > { %v5140_v38 = vpop.f32.mrf.mxu0 }
 0x183   : > { %v3712_v44 = vpop.f32.mrf.mxu1 }
 0x184   : > { %v5142_v61 = vpop.f32.mrf.mxu0  ;;  %v2047_v44 = vadd.f32 %v5100_v27, %v5065_v6 }
 0x185   : > { %v5144_v41 = vpop.f32.mrf.mxu1 }
 0x186   : > { %v5146_v60 = vpop.f32.mrf.mxu0  ;;  %v2249_v19 = vadd.f32 %v5108_v62, %v2047_v44 }
 0x187   : > { %v3767_v10 = vpop.f32.mrf.mxu1 }
 0x188   : > { %v5148_v50 = vpop.f32.mrf.mxu0  ;;  %v2446_v24 = vadd.f32 %v3767_v10, %v2247_v9 }
 0x189   : > { %v2334_v28 = vpop.f32.mrf.mxu1 }
 0x18a   : > { %v2229_v36 = vpop.f32.mrf.mxu0  ;;  %v2445_v22 = vadd.f32 %v2334_v28, %v2246_v30 }
 0x18b   : > { %v3770_v59 = vpop.f32.mrf.mxu1 }
 0x18c   : > { %v3756_v46 = vpop.f32.mrf.mxu0  ;;  %v2447_v26 = vadd.f32 %v3770_v59, %v2248_v52  ;;  %v2049_v59 = vadd.f32 %v5102_v29, %v5067_v39  ;;  %v2048_v39 = vadd.f32 %v5104_v56, %v5070_v55 }
 0x18d   : > { %v2344_v23 = vpop.f32.mrf.mxu1 }
 0x18e   : > { %v5152_v15 = vpop.f32.mrf.mxu0  ;;  %v2251_v29 = vadd.f32 %v5110_v7, %v2049_v59 }
 0x18f   : > { %v3773_v57 = vpop.f32.mrf.mxu1 }
 0x190   : > { %v3811_v63 = vpop.f32.mrf.mxu0 }
 0x191   : > { %v2648_v47 = vadd.f32 %v3811_v63, %v2446_v24  ;;  %v2353_v8 = vpop.f32.mrf.mxu1 }
 0x192   : > { %v2536_v11 = vpop.f32.mrf.mxu0 }
 0x193   : > { %2664 = vst.msk [vmem:[%s5160_s23 + $0x8] sm:$0xff] %vm714_vm0, %v2648_v47  ;;  %v2717_v14 = vmul.f32 %v2648_v47, %v2648_v47  ;;  %v2647_v58 = vadd.f32 %v2536_v11, %v2445_v22  ;;  %v3776_v25 = vpop.f32.mrf.mxu1  ;;  %v2680_v36 = vsel %vm714_vm0, %v2648_v47, 0.0  ;;  %v2448_v22 = vadd.f32 %v2353_v8, %v2249_v19 }
 0x194   : > { %v3814_v10 = vpop.f32.mrf.mxu0  ;;  %v2050_v11 = vadd.f32 %v5106_v21, %v5073_v31  ;;  %v2450_v44 = vadd.f32 %v3776_v25, %v2251_v29 }
 0x195   : > { %2663 = vst.msk [vmem:[%s5160_s23] sm:$0xff] %vm714_vm0, %v2647_v58  ;;  %v2679_v20 = vsel %vm714_vm0, %v2647_v58, 0.0  ;;  %v2716_v28 = vmul.f32 %v2647_v58, %v2647_v58  ;;  %v2649_v48 = vadd.f32 %v3814_v10, %v2447_v26  ;;  %v2362_v46 = vpop.f32.mrf.mxu1  ;;  %v2733_v18 = vsel %vm714_vm0, %v2717_v14, 0.0 }
 0x196   : > { %v2681_v9 = vadd.f32 %v2680_v36, %v2679_v20  ;;  %v2546_v23 = vpop.f32.mrf.mxu0  ;;  %v2250_v58 = vadd.f32 %v5114_v33, %v2048_v39  ;;  %v2252_v20 = vadd.f32 %v5118_v3, %v2050_v11  ;;  %v2051_v3 = vadd.f32 %v5112_v43, %v5077_v5 }
 0x197   : > { %v2732_v6 = vsel %vm714_vm0, %v2716_v28, 0.0  ;;  %2665 = vst.msk [vmem:[%s5160_s23 + $0x10] sm:$0xff] %vm714_vm0, %v2649_v48  ;;  %v2682_v27 = vsel %vm714_vm0, %v2649_v48, 0.0  ;;  %v2718_v30 = vmul.f32 %v2649_v48, %v2649_v48  ;;  %v3779_v24 = vpop.f32.mrf.mxu1 }
 0x198   : > { %v2734_v57 = vadd.f32 %v2733_v18, %v2732_v6  ;;  %v2683_v63 = vadd.f32 %v2682_v27, %v2681_v9  ;;  %v3817_v52 = vpop.f32.mrf.mxu0  ;;  %v2449_v56 = vadd.f32 %v2362_v46, %v2250_v58  ;;  %v2451_v59 = vadd.f32 %v3779_v24, %v2252_v20 }
 0x199   : > { %v2735_v62 = vsel %vm714_vm0, %v2718_v30, 0.0  ;;  %v2372_v47 = vpop.f32.mrf.mxu1  ;;  %v2053_v24 = vadd.f32 %v5116_v40, %v5079_v13  ;;  %v2253_v52 = vadd.f32 %v5124_v45, %v2051_v3  ;;  %v2054_v58 = vadd.f32 %v5122_v49, %v5085_v32 }
 0x19a   : > { %v2736_v26 = vadd.f32 %v2735_v62, %v2734_v57  ;;  %v2555_v14 = vpop.f32.mrf.mxu0  ;;  %v2052_v62 = vadd.f32 %v5120_v35, %v5082_v1 }
 0x19b   : > { %v2650_v10 = vadd.f32 %v2555_v14, %v2448_v22  ;;  %v3782_v36 = vpop.f32.mrf.mxu1  ;;  %v2255_v13 = vadd.f32 %v5126_v51, %v2053_v24 }
 0x19c   : > { %v3820_v55 = vpop.f32.mrf.mxu0  ;;  %v2254_v1 = vadd.f32 %v5130_v17, %v2052_v62 }
 0x19d   : > { %2666 = vst.msk [vmem:[%s5160_s23 + $0x18] sm:$0xff] %vm714_vm0, %v2650_v10  ;;  %v2684_v7 = vsel %vm714_vm0, %v2650_v10, 0.0  ;;  %v2719_v8 = vmul.f32 %v2650_v10, %v2650_v10  ;;  %v2652_v28 = vadd.f32 %v3820_v55, %v2450_v44  ;;  %v2381_v31 = vpop.f32.mrf.mxu1 }
 0x19e   : > { %v2685_v21 = vadd.f32 %v2684_v7, %v2683_v63  ;;  %v2564_v48 = vpop.f32.mrf.mxu0 }
 0x19f   : > { %v2737_v33 = vsel %vm714_vm0, %v2719_v8, 0.0  ;;  %2668 = vst.msk [vmem:[%s5160_s23 + $0x28] sm:$0xff] %vm714_vm0, %v2652_v28  ;;  %v2651_v25 = vadd.f32 %v2564_v48, %v2449_v56  ;;  %v3785_v19 = vpop.f32.mrf.mxu1  ;;  %v2721_v23 = vmul.f32 %v2652_v28, %v2652_v28  ;;  %v2688_v39 = vsel %vm714_vm0, %v2652_v28, 0.0 }
 0x1a0   : > { %v2738_v46 = vadd.f32 %v2737_v33, %v2736_v26  ;;  %v3823_v9 = vpop.f32.mrf.mxu0  ;;  %v2452_v26 = vadd.f32 %v2381_v31, %v2253_v52  ;;  %v2454_v20 = vadd.f32 %v3785_v19, %v2255_v13  ;;  %v2256_v56 = vadd.f32 %v5134_v0, %v2054_v58 }
 0x1a1   : > { %2667 = vst.msk [vmem:[%s5160_s23 + $0x20] sm:$0xff] %vm714_vm0, %v2651_v25  ;;  %v2686_v18 = vsel %vm714_vm0, %v2651_v25, 0.0  ;;  %v2720_v6 = vmul.f32 %v2651_v25, %v2651_v25  ;;  %v2653_v27 = vadd.f32 %v3823_v9, %v2451_v59  ;;  %v2390_v30 = vpop.f32.mrf.mxu1  ;;  %v2741_v40 = vsel %vm714_vm0, %v2721_v23, 0.0 }
 0x1a2   : > { %v2687_v57 = vadd.f32 %v2686_v18, %v2685_v21  ;;  %v2574_v63 = vpop.f32.mrf.mxu0  ;;  %v2453_v28 = vadd.f32 %v2390_v30, %v2254_v1  ;;  %v2055_v19 = vadd.f32 %v5128_v4, %v5089_v34  ;;  %v2057_v30 = vadd.f32 %v5132_v42, %v5091_v12 }
 0x1a3   : > { %v2739_v5 = vsel %vm714_vm0, %v2720_v6, 0.0  ;;  %2669 = vst.msk [vmem:[%s5160_s23 + $0x30] sm:$0xff] %vm714_vm0, %v2653_v27  ;;  %v2722_v43 = vmul.f32 %v2653_v27, %v2653_v27  ;;  %v3788_v29 = vpop.f32.mrf.mxu1  ;;  %v2690_v45 = vsel %vm714_vm0, %v2653_v27, 0.0 }
 0x1a4   : > { %v2740_v22 = vadd.f32 %v2739_v5, %v2738_v46  ;;  %v2689_v47 = vadd.f32 %v2688_v39, %v2687_v57  ;;  %v3826_v11 = vpop.f32.mrf.mxu0  ;;  %v2455_v59 = vadd.f32 %v3788_v29, %v2256_v56  ;;  %v2257_v63 = vadd.f32 %v5140_v38, %v2055_v19 }
 0x1a5   : > { %v2400_v14 = vpop.f32.mrf.mxu1  ;;  %v2743_v35 = vsel %vm714_vm0, %v2722_v43, 0.0  ;;  %v2056_v5 = vadd.f32 %v5136_v16, %v5094_v37  ;;  %v2259_v12 = vadd.f32 %v5142_v61, %v2057_v30  ;;  %v2058_v11 = vadd.f32 %v5138_v2, %v5096_v53 }
 0x1a6   : > { %v2691_v44 = vadd.f32 %v2690_v45, %v2689_v47  ;;  %v2742_v10 = vadd.f32 %v2741_v40, %v2740_v22  ;;  %v2583_v36 = vpop.f32.mrf.mxu0 }
 0x1a7   : > { %v2654_v51 = vadd.f32 %v2583_v36, %v2452_v26  ;;  %v3791_v55 = vpop.f32.mrf.mxu1  ;;  %v2258_v37 = vadd.f32 %v5146_v60, %v2056_v5  ;;  %v2260_v58 = vadd.f32 %v5148_v50, %v2058_v11  ;;  %v2059_v50 = vadd.f32 %v5144_v41, %v5098_v54 }
 0x1a8   : > { %v2744_v7 = vadd.f32 %v2743_v35, %v2742_v10  ;;  %v3829_v8 = vpop.f32.mrf.mxu0 }
 0x1a9   : > { %2670 = vst.msk [vmem:[%s5160_s23 + $0x38] sm:$0xff] %vm714_vm0, %v2654_v51  ;;  %v2692_v32 = vsel %vm714_vm0, %v2654_v51, 0.0  ;;  %v2723_v49 = vmul.f32 %v2654_v51, %v2654_v51  ;;  %v2656_v31 = vadd.f32 %v3829_v8, %v2454_v20  ;;  %v2409_v21 = vpop.f32.mrf.mxu1 }
 0x1aa   : > { %v2693_v17 = vadd.f32 %v2692_v32, %v2691_v44  ;;  %v2592_v48 = vpop.f32.mrf.mxu0  ;;  %v2456_v22 = vadd.f32 %v2409_v21, %v2257_v63 }
 0x1ab   : > { %v2745_v33 = vsel %vm714_vm0, %v2723_v49, 0.0  ;;  %2672 = vst.msk [vmem:[%s5160_s23 + $0x48] sm:$0xff] %vm714_vm0, %v2656_v31  ;;  %v2655_v25 = vadd.f32 %v2592_v48, %v2453_v28  ;;  %v3794_v0 = vpop.f32.mrf.mxu1  ;;  %v2725_v9 = vmul.f32 %v2656_v31, %v2656_v31  ;;  %v2696_v52 = vsel %vm714_vm0, %v2656_v31, 0.0 }
 0x1ac   : > { %v2746_v3 = vadd.f32 %v2745_v33, %v2744_v7  ;;  %v3832_v46 = vpop.f32.mrf.mxu0  ;;  %v2458_v26 = vadd.f32 %v3794_v0, %v2259_v12  ;;  %v2261_v48 = vadd.f32 %v5152_v15, %v2059_v50 }
 0x1ad   : > { %2671 = vst.msk [vmem:[%s5160_s23 + $0x40] sm:$0xff] %vm714_vm0, %v2655_v25  ;;  %v2694_v23 = vsel %vm714_vm0, %v2655_v25, 0.0  ;;  %v2724_v18 = vmul.f32 %v2655_v25, %v2655_v25  ;;  %v2657_v6 = vadd.f32 %v3832_v46, %v2455_v59  ;;  %v2418_v27 = vpop.f32.mrf.mxu1  ;;  %v2749_v42 = vsel %vm714_vm0, %v2725_v9, 0.0 }
 0x1ae   : > { %v2695_v24 = vadd.f32 %v2694_v23, %v2693_v17  ;;  %v2602_v57 = vpop.f32.mrf.mxu0  ;;  %v2457_v36 = vadd.f32 %v2418_v27, %v2258_v37 }
 0x1af   : > { %v2747_v34 = vsel %vm714_vm0, %v2724_v18, 0.0  ;;  %2673 = vst.msk [vmem:[%s5160_s23 + $0x50] sm:$0xff] %vm714_vm0, %v2657_v6  ;;  %v2726_v4 = vmul.f32 %v2657_v6, %v2657_v6  ;;  %v3797_v39 = vpop.f32.mrf.mxu1  ;;  %v2698_v38 = vsel %vm714_vm0, %v2657_v6, 0.0 }
 0x1b0   : > { %v2748_v43 = vadd.f32 %v2747_v34, %v2746_v3  ;;  %v2697_v29 = vadd.f32 %v2696_v52, %v2695_v24  ;;  %v3835_v62 = vpop.f32.mrf.mxu0  ;;  %v2459_v51 = vadd.f32 %v3797_v39, %v2260_v58 }
 0x1b1   : > { %v2428_v47 = vpop.f32.mrf.mxu1  ;;  %v2751_v16 = vsel %vm714_vm0, %v2726_v4, 0.0 }
 0x1b2   : > { %v2699_v13 = vadd.f32 %v2698_v38, %v2697_v29  ;;  %v2750_v40 = vadd.f32 %v2749_v42, %v2748_v43  ;;  %v2611_v45 = vpop.f32.mrf.mxu0 }
 0x1b3   : > { %v2658_v61 = vadd.f32 %v2611_v45, %v2456_v22  ;;  %v3800_v14 = vpop.f32.mrf.mxu1 }
 0x1b4   : > { %v2752_v44 = vadd.f32 %v2751_v16, %v2750_v40  ;;  %v3838_v10 = vpop.f32.mrf.mxu0 }
 0x1b5   : > { %2674 = vst.msk [vmem:[%s5160_s23 + $0x58] sm:$0xff] %vm714_vm0, %v2658_v61  ;;  %v2700_v53 = vsel %vm714_vm0, %v2658_v61, 0.0  ;;  %v2727_v2 = vmul.f32 %v2658_v61, %v2658_v61  ;;  %v2660_v1 = vadd.f32 %v3838_v10, %v2458_v26  ;;  %v2437_v21 = vpop.f32.mrf.mxu1 }
 0x1b6   : > { %v2701_v35 = vadd.f32 %v2700_v53, %v2699_v13  ;;  %v2620_v60 = vpop.f32.mrf.mxu0  ;;  %v2460_v46 = vadd.f32 %v2437_v21, %v2261_v48 }
 0x1b7   : > { %v2753_v20 = vsel %vm714_vm0, %v2727_v2, 0.0  ;;  %2676 = vst.msk [vmem:[%s5160_s23 + $0x68] sm:$0xff] %vm714_vm0, %v2660_v1  ;;  %v2659_v55 = vadd.f32 %v2620_v60, %v2457_v36  ;;  %v2729_v8 = vmul.f32 %v2660_v1, %v2660_v1  ;;  %v2704_v33 = vsel %vm714_vm0, %v2660_v1, 0.0 }
 0x1b8   : > { %v2754_v56 = vadd.f32 %v2753_v20, %v2752_v44  ;;  %v3841_v7 = vpop.f32.mrf.mxu0 }
 0x1b9   : > { %2675 = vst.msk [vmem:[%s5160_s23 + $0x60] sm:$0xff] %vm714_vm0, %v2659_v55  ;;  %v2702_v28 = vsel %vm714_vm0, %v2659_v55, 0.0  ;;  %v2728_v32 = vmul.f32 %v2659_v55, %v2659_v55  ;;  %v2661_v49 = vadd.f32 %v3841_v7, %v2459_v51  ;;  %v2757_v19 = vsel %vm714_vm0, %v2729_v8, 0.0 }
 0x1ba   : > { %v2703_v31 = vadd.f32 %v2702_v28, %v2701_v35  ;;  %v2630_v17 = vpop.f32.mrf.mxu0 }
 0x1bb   : > { %v2755_v59 = vsel %vm714_vm0, %v2728_v32, 0.0  ;;  %2677 = vst.msk [vmem:[%s5160_s23 + $0x70] sm:$0xff] %vm714_vm0, %v2661_v49  ;;  %v2730_v54 = vmul.f32 %v2661_v49, %v2661_v49  ;;  %v2706_v3 = vsel %vm714_vm0, %v2661_v49, 0.0 }
 0x1bc   : > { %v2756_v41 = vadd.f32 %v2755_v59, %v2754_v56  ;;  %v2705_v25 = vadd.f32 %v2704_v33, %v2703_v31  ;;  %v3844_v0 = vpop.f32.mrf.mxu0 }
 0x1bd   : > { %v2759_v18 = vsel %vm714_vm0, %v2730_v54, 0.0 }
 0x1be   : > { %v2707_v9 = vadd.f32 %v2706_v3, %v2705_v25  ;;  %v2758_v15 = vadd.f32 %v2757_v19, %v2756_v41  ;;  %v2639_v23 = vpop.f32.mrf.mxu0 }
 0x1bf   : > { %v2662_v6 = vadd.f32 %v2639_v23, %v2460_v46 }
 0x1c0   : > { %v2760_v27 = vadd.f32 %v2759_v18, %v2758_v15 }
 0x1c1   : > { %2678 = vst.msk [vmem:[%s5160_s23 + $0x78] sm:$0xff] %vm714_vm0, %v2662_v6  ;;  %v2708_v30 = vsel %vm714_vm0, %v2662_v6, 0.0  ;;  %v2731_v24 = vmul.f32 %v2662_v6, %v2662_v6 }
 0x1c2   : > { %v2709_v57 = vadd.f32 %v2708_v30, %v2707_v9 }
 0x1c3   : > { %v2761_v63 = vsel %vm714_vm0, %v2731_v24, 0.0 }
 0x1c4   : > { %v2710_v52 = vrot.slane %v2709_v57, 4  ;;  %v2762_v34 = vadd.f32 %v2761_v63, %v2760_v27 }
 0x1c6   : > { %v2711_v4 = vadd.f32 %v2710_v52, %v2709_v57  ;;  %v2763_v39 = vrot.slane %v2762_v34, 4 }
 0x1c8   : > { %v2712_v5 = vrot.slane %v2711_v4, 2  ;;  %v2764_v43 = vadd.f32 %v2763_v39, %v2762_v34 }
 0x1ca   : > { %v2713_v29 = vadd.f32 %v2712_v5, %v2711_v4  ;;  %v2765_v62 = vrot.slane %v2764_v43, 2 }
 0x1cc   : > { %v2714_v12 = vrot.slane %v2713_v29, 1  ;;  %v2766_v42 = vadd.f32 %v2765_v62, %v2764_v43 }
 0x1ce   : > { %v2767_v38 = vrot.slane %v2766_v42, 1  ;;  %v2715_v22 = vadd.f32 %v2714_v12, %v2713_v29 }
 0x1d0   : > { %v2768_v47 = vadd.f32 %v2767_v38, %v2766_v42 }
 0x1d2   : > { %v2770_v11 = vsel %vm2769_vm5, %v2715_v22, %v2768_v47 }
 0x1d3   : > { %2772 = vst.msk [vmem:[%s467_s9] sm:$0x3] %vm2771_vm6, %v2770_v11 }
 0x1d4 PF: > { %s18_s28 = sadd.s32 1, %s3932_s28   ;;  %s5321_s24 = smov %s3924_s26 }
 0x1d5   : > { %p15_p13 = scmp.ge.s32.totalorder %s18_s28, 6   ;;  %s5322_s25 = smov %s3928_s27 }
 0x1d6   : > { %s5323_s26 = smov %s5326_s29  ;;  %s5324_s27 = smov %s5330_s30 }
 0x1d7   :  { %17 = sbr.rel (!%p15_p13) target bundleno = 3 (0x3), region = 92 }

</bundles_post_ra>
